<compile_context>
chip_gen: v5e
topology: v5e:2x2
jax: 0.10.0
libtpu: 0.0.40
codegen_flags: <defaults>
</compile_context>

<pallas_src>
import math
from functools import partial

import jax
import jax.numpy as jnp
from jax import lax
from jax.experimental import pallas as pl
from jax.experimental.pallas import tpu as pltpu

_LANE = 128        # samples per lane row
_SUB_ROWS = 16     # sublane rows per inner compute chunk (16 * 128 = 2048 samples)
_CHUNK = _SUB_ROWS * _LANE


def _lambertw(y, *, iters=2, approx_recip=False):
    """Lambert W (principal branch) for y >= -1/e in f32 via Halley iterations."""
    e = math.e
    # Piecewise initial guess:
    #   y < -0.25 : series around the branch point -1/e in p = sqrt(2(e*y + 1))
    #   y <  3    : log(1 + y)
    #   else      : log(y) - log(log(y))
    # The two non-branch regions share one log of a per-lane-selected argument.
    p = jnp.sqrt(jnp.maximum(2.0 * (e * y + 1.0), 0.0))
    w_branch = -1.0 + p * (1.0 + p * (-1.0 / 3.0 + (11.0 / 72.0) * p))
    big = y >= 3.0
    arg = jnp.where(big, jnp.maximum(y, 1e-30), 1.0 + jnp.maximum(y, -0.999))
    ly = jnp.log(arg)
    w_init = jnp.where(big, ly - jnp.log(jnp.maximum(ly, 1e-30)), ly)
    w = jnp.where(y < -0.25, w_branch, w_init)

    # Halley on f(w) = w*e^w - y:
    #   delta = 2*(w+1)*f / (2*e^w*(w+1)^2 - (w+2)*f)
    for _ in range(iters):
        ew = jnp.exp(w)
        f = w * ew - y
        wp1 = w + 1.0
        near_branch = jnp.abs(wp1) < 1e-6   # branch-point series already accurate
        wp1s = jnp.where(near_branch, 1.0, wp1)
        num = 2.0 * wp1s * f
        den = 2.0 * ew * wp1s * wp1s - (w + 2.0) * f
        den = jnp.where(jnp.abs(den) < 1e-30, 1e-30, den)
        if approx_recip:
            delta = num * pl.reciprocal(den, approx=True)
        else:
            delta = num / den
        w = w - jnp.where(near_branch, 0.0, delta)
    return w


def _superloss_kernel(logits_ref, targets_ref, *rest, tau, lam, n_valid,
                      num_classes, sub_rows, has_weights, native_layout):
    if has_weights:
        cw_ref, out_ref = rest
    else:
        (out_ref,) = rest

    pid = pl.program_id(0)
    block_rows = targets_ref.shape[0]
    block_samples = block_rows * _LANE
    n_chunks = block_rows // sub_rows
    chunk = sub_rows * _LANE
    inv_lam = 1.0 / lam
    y_floor = jnp.float32(-2.0 / math.e)

    # Hoisted once per grid step: sample position within a chunk, and how many
    # samples of this block are real (wrapper padding / partial final block).
    pos = (lax.broadcasted_iota(jnp.int32, (sub_rows, _LANE), 0) * _LANE
           + lax.broadcasted_iota(jnp.int32, (sub_rows, _LANE), 1))
    block_valid = jnp.int32(n_valid) - pid * block_samples

    def body(j, acc):
        r0 = pl.multiple_of(j * sub_rows, sub_rows)
        tgt = targets_ref[pl.ds(r0, sub_rows), :]                     # (S,128) i32

        if native_layout:
            # Native sample-major (chunk, C) slice -> lane-dense (C, S, 128)
            # working layout (in-kernel transpose instead of wrapper HBM copy).
            s0 = pl.multiple_of(j * chunk, chunk)
            x = logits_ref[pl.ds(s0, chunk), :].astype(jnp.float32)   # (chunk, C)
            xt = jnp.transpose(x).reshape(num_classes, sub_rows, _LANE)
            cls_slice = lambda cc: xt[cc]
        else:
            # Fallback layout: logits arrive pre-transposed as (C, rows, 128).
            cls_slice = lambda cc: logits_ref[
                cc, pl.ds(r0, sub_rows), :].astype(jnp.float32)

        # --- weighted cross entropy; class axis is the (unrolled) loop ---
        m = cls_slice(0)
        for cc in range(1, num_classes):
            m = jnp.maximum(m, cls_slice(cc))
        s = jnp.zeros_like(m)
        tgt_logit = jnp.zeros_like(m)
        w_i = jnp.zeros_like(m) if has_weights else None
        for cc in range(num_classes):
            lc = cls_slice(cc)
            s = s + jnp.exp(lc - m)
            sel = tgt == cc
            tgt_logit = jnp.where(sel, lc, tgt_logit)
            if has_weights:
                w_i = jnp.where(sel, cw_ref[cc], w_i)      # class_weights[targets]
        nll = m + jnp.log(s) - tgt_logit
        l_i = w_i * nll if has_weights else nll            # PyTorch weighted CE

        # --- SuperLoss: sigma = exp(-W(y)), y = 0.5*max(-2/e, (l_i - tau)/lam) ---
        diff = l_i - tau
        y = 0.5 * jnp.maximum(y_floor, diff * inv_lam)
        w_lw = _lambertw(y, iters=2, approx_recip=True)
        log_sigma = -w_lw
        sigma = jnp.exp(log_sigma)
        loss_i = diff * sigma + lam * (log_sigma * log_sigma)
        if has_weights:
            loss_i = loss_i * w_i                          # * sample_weights

        # Mask wrapper padding / partial-final-block garbage (one compare+select).
        loss_i = jnp.where(pos < block_valid - j * chunk, loss_i, 0.0)
        return acc + loss_i

    acc = lax.fori_loop(0, n_chunks, body,
                        jnp.zeros((sub_rows, _LANE), jnp.float32))
    out_ref[0] = acc     # per-grid-block partial sum; reduced in the wrapper


def superloss(logits, targets, *, C=10, lam=1.0, batch_size=128,
              class_weights=None, block_rows=512):
    """SuperLoss forward. logits: (N, C) float (f32 or bf16), targets: (N,) int.

    Returns a scalar f32.  Logits are consumed in their native (N, C) layout and
    dtype (feed bf16 on bandwidth-bound chips such as v5e).
    """
    n, c = logits.shape
    assert c == C, "logits second dim must equal number of classes C"
    tau = math.log(C)
    has_weights = class_weights is not None

    # ---- geometry: lane-dense sample tiling, 128 samples per lane row ----
    rows_needed = -(-n // _LANE)
    block_rows = max(_SUB_ROWS, (min(int(block_rows), 1024) // _SUB_ROWS) * _SUB_ROWS)
    if rows_needed <= block_rows:                         # single grid step
        block_rows = -(-rows_needed // _SUB_ROWS) * _SUB_ROWS
    block_samples = block_rows * _LANE
    grid_n = -(-n // block_samples)
    n_cover = grid_n * block_samples

    # Targets are cheap (4 B/sample): pad + reshape to (rows, 128) in the wrapper.
    targets_2d = jnp.pad(targets.astype(jnp.int32),
                         (0, n_cover - n)).reshape(n_cover // _LANE, _LANE)

    cw = None
    if has_weights:
        cw = jnp.asarray(class_weights, dtype=jnp.float32).reshape(c)

    out_shape = jax.ShapeDtypeStruct((grid_n, _SUB_ROWS, _LANE), jnp.float32)
    out_spec = pl.BlockSpec((1, _SUB_ROWS, _LANE), lambda i: (i, 0, 0))
    tgt_spec = pl.BlockSpec((block_rows, _LANE), lambda i: (i, 0))
    cparams = pltpu.CompilerParams(
        dimension_semantics=("parallel",),     # independent per-block partials
        vmem_limit_bytes=32 * 1024 * 1024)

    def run(native_layout, logits_in, logits_spec):
        kernel = partial(_superloss_kernel, tau=tau, lam=float(lam),
                         n_valid=n, num_classes=c, sub_rows=_SUB_ROWS,
                         has_weights=has_weights, native_layout=native_layout)
        inputs = [logits_in, targets_2d]
        in_specs = [logits_spec, tgt_spec]
        if has_weights:
            inputs.append(cw)
            in_specs.append(pl.BlockSpec(memory_space=pltpu.MemorySpace.SMEM))
        bytes_accessed = (logits_in.size * logits_in.dtype.itemsize
                          + targets_2d.size * 4
                          + (c * 4 if has_weights else 0)
                          + grid_n * _SUB_ROWS * _LANE * 4)
        cost = pl.CostEstimate(flops=int(n_cover) * (10 * c + 90),
                               transcendentals=int(n_cover) * (c + 8),
                               bytes_accessed=int(bytes_accessed))
        partials = pl.pallas_call(
            kernel, out_shape=out_shape, grid=(grid_n,),
            in_specs=in_specs, out_specs=out_spec,
            compiler_params=cparams, cost_estimate=cost,
        )(*inputs)
        return jnp.sum(partials) / jnp.float32(batch_size)

    # ---- primary path: native (N, C) logits, lane-dense relayout in-kernel ----
    try:
        if grid_n == 1 and n_cover != n:
            # Single small block: cheap pad so the block never exceeds the array.
            logits_p = jnp.pad(logits, ((0, n_cover - n), (0, 0)))
        else:
            logits_p = logits        # full blocks + Pallas partial final block
        spec = pl.BlockSpec((block_samples, c), lambda i: (i, 0))
        out = run(True, logits_p, spec)
        return jax.block_until_ready(out)
    except Exception:
        pass

    # ---- fallback: pre-transposed (C, rows, 128) layout built by XLA ----
    # Costs one extra HBM read+write of the logits; only used when the in-kernel
    # transpose/reshape is not supported by the installed Mosaic toolchain.
    logits_cn = jnp.pad(jnp.transpose(logits), ((0, 0), (0, n_cover - n)))
    logits_3d = logits_cn.reshape(c, n_cover // _LANE, _LANE)
    spec = pl.BlockSpec((c, block_rows, _LANE), lambda i: (0, i, 0))
    return run(False, logits_3d, spec)


def _superloss_reference(logits, targets, *, C, lam, batch_size,
                         class_weights=None):
    """Pure-JAX reference mirroring the PyTorch module forward (no Pallas)."""
    tau = math.log(C)
    logits = logits.astype(jnp.float32)
    logp = jax.nn.log_softmax(logits, axis=-1)
    nll = -jnp.take_along_axis(
        logp, targets.astype(jnp.int32)[:, None], axis=-1)[:, 0]
    if class_weights is not None:
        w = jnp.asarray(class_weights, jnp.float32)[targets]
        l_i = w * nll
        sample_w = w
    else:
        l_i = nll
        sample_w = jnp.ones_like(nll)
    y = 0.5 * jnp.maximum(-2.0 / math.e, (l_i - tau) / lam)
    w_lw = _lambertw(y, iters=12, approx_recip=False)
    sigma = jnp.exp(-w_lw)
    loss = (l_i - tau) * sigma + lam * jnp.log(sigma) ** 2
    return jnp.sum(loss * sample_w) / batch_size


if __name__ == "__main__":
    key = jax.random.PRNGKey(0)
    k1, k2, k3, k4, k5, k6 = jax.random.split(key, 6)
    C = 10

    def check(name, got, want, rtol=1e-3, atol=1e-4):
        got, want = float(got), float(want)
        assert math.isfinite(got), f"{name}: non-finite loss {got}"
        assert abs(got - want) <= atol + rtol * abs(want), \
            f"{name}: {got} vs {want}"

    # Case 1: module defaults (class_weights=None, batch_size=128), tiny batch.
    N1 = 8
    logits1 = jax.random.normal(k1, (N1, C), dtype=jnp.float32)
    targets1 = jax.random.randint(k2, (N1,), 0, C, dtype=jnp.int32)
    loss1 = superloss(logits1, targets1, C=C, lam=1.0, batch_size=128)
    ref1 = _superloss_reference(logits1, targets1, C=C, lam=1.0, batch_size=128)
    jax.block_until_ready((loss1, ref1))
    check("case1", loss1, ref1)

    # Case 2: class weights + padding mask, single grid block.
    N2 = 600
    cw = jnp.linspace(0.5, 1.5, C, dtype=jnp.float32)
    logits2 = 2.0 * jax.random.normal(k3, (N2, C), dtype=jnp.float32)
    targets2 = jax.random.randint(k4, (N2,), 0, C, dtype=jnp.int32)
    loss2 = superloss(logits2, targets2, C=C, lam=0.5, batch_size=N2,
                      class_weights=cw)
    ref2 = _superloss_reference(logits2, targets2, C=C, lam=0.5, batch_size=N2,
                                class_weights=cw)
    jax.block_until_ready((loss2, ref2))
    check("case2", loss2, ref2)

    # Case 3: multi-block grid (per-block partial sums on the "parallel" axis),
    # bf16 logits input contract, and a partial final block.
    N3 = 3000
    logits3 = (1.5 * jax.random.normal(k5, (N3, C), dtype=jnp.float32)
               ).astype(jnp.bfloat16)
    targets3 = jax.random.randint(k6, (N3,), 0, C, dtype=jnp.int32)
    loss3 = superloss(logits3, targets3, C=C, lam=1.0, batch_size=N3,
                      block_rows=16)
    ref3 = _superloss_reference(logits3, targets3, C=C, lam=1.0, batch_size=N3)
    jax.block_until_ready((loss3, ref3))
    check("case3", loss3, ref3, rtol=2e-3, atol=5e-4)

    print("KERNEL_OK")
</pallas_src>

<mosaic_0001>
module attributes {stable_mosaic.version = 11 : i64} {
  func.func @_superloss_kernel(%arg0: i32, %arg1: memref<2048x10xf32, #tpu.memory_space<vmem>>, %arg2: memref<16x128xi32, #tpu.memory_space<vmem>>, %arg3: memref<1x16x128xf32, #tpu.memory_space<vmem>>) attributes {dimension_semantics = [#tpu.dimension_semantics<parallel>], iteration_bounds = array<i64: 1>, scalar_prefetch = 0 : i64, scratch_operands = 0 : i64, tpu.core_type = #tpu.core_type<tc>, window_params = [{transform_indices = @transform_0, window_bounds = array<i64: 2048, 10>}, {transform_indices = @transform_1, window_bounds = array<i64: 16, 128>}, {transform_indices = @transform_2, window_bounds = array<i64: 1, 16, 128>}]} {
    %0 = tpu.iota {dimensions = array<i32: 0>} : vector<16x128xi32>
    %c128_i32 = arith.constant 128 : i32
    %1 = vector.broadcast %c128_i32 : i32 to vector<16x128xi32>
    %2 = arith.muli %0, %1 : vector<16x128xi32>
    %3 = tpu.iota {dimensions = array<i32: 1>} : vector<16x128xi32>
    %4 = arith.addi %2, %3 : vector<16x128xi32>
    %c2048_i32 = arith.constant 2048 : i32
    %5 = arith.muli %arg0, %c2048_i32 : i32
    %c8_i32 = arith.constant 8 : i32
    %6 = arith.subi %c8_i32, %5 : i32
    %cst = arith.constant 0.000000e+00 : f32
    %7 = vector.broadcast %cst : f32 to vector<16x128xf32>
    %cst_0 = arith.constant -0.735758901 : f32
    %c0_i32 = arith.constant 0 : i32
    %c16_i32 = arith.constant 16 : i32
    %8 = arith.muli %c0_i32, %c16_i32 : i32
    %9 = tpu.assume_multiple %8, 16 : i32
    %10 = arith.index_cast %9 : i32 to index
    %c0 = arith.constant 0 : index
    %11 = vector.load %arg2[%10, %c0] : memref<16x128xi32, #tpu.memory_space<vmem>>, vector<16x128xi32>
    %c2048_i32_1 = arith.constant 2048 : i32
    %12 = arith.muli %c0_i32, %c2048_i32_1 : i32
    %13 = tpu.assume_multiple %12, 2048 : i32
    %14 = arith.index_cast %13 : i32 to index
    %c0_2 = arith.constant 0 : index
    %15 = vector.load %arg1[%14, %c0_2] : memref<2048x10xf32, #tpu.memory_space<vmem>>, vector<2048x10xf32>
    %16 = tpu.transpose %15, [1, 0] : vector<2048x10xf32> -> vector<10x2048xf32>
    %17 = vector.shape_cast %16 : vector<10x2048xf32> to vector<10x16x128xf32>
    %18 = vector.extract_strided_slice %17 {offsets = [0, 0, 0], sizes = [1, 16, 128], strides = [1, 1, 1]} : vector<10x16x128xf32> to vector<1x16x128xf32>
    %19 = vector.shape_cast %18 : vector<1x16x128xf32> to vector<16x128xf32>
    %20 = vector.extract_strided_slice %17 {offsets = [1, 0, 0], sizes = [1, 16, 128], strides = [1, 1, 1]} : vector<10x16x128xf32> to vector<1x16x128xf32>
    %21 = vector.shape_cast %20 : vector<1x16x128xf32> to vector<16x128xf32>
    %22 = arith.maximumf %19, %21 : vector<16x128xf32>
    %23 = vector.extract_strided_slice %17 {offsets = [2, 0, 0], sizes = [1, 16, 128], strides = [1, 1, 1]} : vector<10x16x128xf32> to vector<1x16x128xf32>
    %24 = vector.shape_cast %23 : vector<1x16x128xf32> to vector<16x128xf32>
    %25 = arith.maximumf %22, %24 : vector<16x128xf32>
    %26 = vector.extract_strided_slice %17 {offsets = [3, 0, 0], sizes = [1, 16, 128], strides = [1, 1, 1]} : vector<10x16x128xf32> to vector<1x16x128xf32>
    %27 = vector.shape_cast %26 : vector<1x16x128xf32> to vector<16x128xf32>
    %28 = arith.maximumf %25, %27 : vector<16x128xf32>
    %29 = vector.extract_strided_slice %17 {offsets = [4, 0, 0], sizes = [1, 16, 128], strides = [1, 1, 1]} : vector<10x16x128xf32> to vector<1x16x128xf32>
    %30 = vector.shape_cast %29 : vector<1x16x128xf32> to vector<16x128xf32>
    %31 = arith.maximumf %28, %30 : vector<16x128xf32>
    %32 = vector.extract_strided_slice %17 {offsets = [5, 0, 0], sizes = [1, 16, 128], strides = [1, 1, 1]} : vector<10x16x128xf32> to vector<1x16x128xf32>
    %33 = vector.shape_cast %32 : vector<1x16x128xf32> to vector<16x128xf32>
    %34 = arith.maximumf %31, %33 : vector<16x128xf32>
    %35 = vector.extract_strided_slice %17 {offsets = [6, 0, 0], sizes = [1, 16, 128], strides = [1, 1, 1]} : vector<10x16x128xf32> to vector<1x16x128xf32>
    %36 = vector.shape_cast %35 : vector<1x16x128xf32> to vector<16x128xf32>
    %37 = arith.maximumf %34, %36 : vector<16x128xf32>
    %38 = vector.extract_strided_slice %17 {offsets = [7, 0, 0], sizes = [1, 16, 128], strides = [1, 1, 1]} : vector<10x16x128xf32> to vector<1x16x128xf32>
    %39 = vector.shape_cast %38 : vector<1x16x128xf32> to vector<16x128xf32>
    %40 = arith.maximumf %37, %39 : vector<16x128xf32>
    %41 = vector.extract_strided_slice %17 {offsets = [8, 0, 0], sizes = [1, 16, 128], strides = [1, 1, 1]} : vector<10x16x128xf32> to vector<1x16x128xf32>
    %42 = vector.shape_cast %41 : vector<1x16x128xf32> to vector<16x128xf32>
    %43 = arith.maximumf %40, %42 : vector<16x128xf32>
    %44 = vector.extract_strided_slice %17 {offsets = [9, 0, 0], sizes = [1, 16, 128], strides = [1, 1, 1]} : vector<10x16x128xf32> to vector<1x16x128xf32>
    %45 = vector.shape_cast %44 : vector<1x16x128xf32> to vector<16x128xf32>
    %46 = arith.maximumf %43, %45 : vector<16x128xf32>
    %cst_3 = arith.constant 0.000000e+00 : f32
    %47 = vector.broadcast %cst_3 : f32 to vector<16x128xf32>
    %cst_4 = arith.constant 0.000000e+00 : f32
    %48 = vector.broadcast %cst_4 : f32 to vector<16x128xf32>
    %49 = vector.extract_strided_slice %17 {offsets = [0, 0, 0], sizes = [1, 16, 128], strides = [1, 1, 1]} : vector<10x16x128xf32> to vector<1x16x128xf32>
    %50 = vector.shape_cast %49 : vector<1x16x128xf32> to vector<16x128xf32>
    %51 = arith.subf %50, %46 : vector<16x128xf32>
    %52 = math.exp %51 : vector<16x128xf32>
    %53 = arith.addf %47, %52 : vector<16x128xf32>
    %c0_i32_5 = arith.constant 0 : i32
    %54 = vector.broadcast %c0_i32_5 : i32 to vector<16x128xi32>
    %55 = arith.cmpi eq, %11, %54 : vector<16x128xi32>
    %56 = arith.select %55, %50, %48 : vector<16x128xi1>, vector<16x128xf32>
    %57 = vector.extract_strided_slice %17 {offsets = [1, 0, 0], sizes = [1, 16, 128], strides = [1, 1, 1]} : vector<10x16x128xf32> to vector<1x16x128xf32>
    %58 = vector.shape_cast %57 : vector<1x16x128xf32> to vector<16x128xf32>
    %59 = arith.subf %58, %46 : vector<16x128xf32>
    %60 = math.exp %59 : vector<16x128xf32>
    %61 = arith.addf %53, %60 : vector<16x128xf32>
    %c1_i32 = arith.constant 1 : i32
    %62 = vector.broadcast %c1_i32 : i32 to vector<16x128xi32>
    %63 = arith.cmpi eq, %11, %62 : vector<16x128xi32>
    %64 = arith.select %63, %58, %56 : vector<16x128xi1>, vector<16x128xf32>
    %65 = vector.extract_strided_slice %17 {offsets = [2, 0, 0], sizes = [1, 16, 128], strides = [1, 1, 1]} : vector<10x16x128xf32> to vector<1x16x128xf32>
    %66 = vector.shape_cast %65 : vector<1x16x128xf32> to vector<16x128xf32>
    %67 = arith.subf %66, %46 : vector<16x128xf32>
    %68 = math.exp %67 : vector<16x128xf32>
    %69 = arith.addf %61, %68 : vector<16x128xf32>
    %c2_i32 = arith.constant 2 : i32
    %70 = vector.broadcast %c2_i32 : i32 to vector<16x128xi32>
    %71 = arith.cmpi eq, %11, %70 : vector<16x128xi32>
    %72 = arith.select %71, %66, %64 : vector<16x128xi1>, vector<16x128xf32>
    %73 = vector.extract_strided_slice %17 {offsets = [3, 0, 0], sizes = [1, 16, 128], strides = [1, 1, 1]} : vector<10x16x128xf32> to vector<1x16x128xf32>
    %74 = vector.shape_cast %73 : vector<1x16x128xf32> to vector<16x128xf32>
    %75 = arith.subf %74, %46 : vector<16x128xf32>
    %76 = math.exp %75 : vector<16x128xf32>
    %77 = arith.addf %69, %76 : vector<16x128xf32>
    %c3_i32 = arith.constant 3 : i32
    %78 = vector.broadcast %c3_i32 : i32 to vector<16x128xi32>
    %79 = arith.cmpi eq, %11, %78 : vector<16x128xi32>
    %80 = arith.select %79, %74, %72 : vector<16x128xi1>, vector<16x128xf32>
    %81 = vector.extract_strided_slice %17 {offsets = [4, 0, 0], sizes = [1, 16, 128], strides = [1, 1, 1]} : vector<10x16x128xf32> to vector<1x16x128xf32>
    %82 = vector.shape_cast %81 : vector<1x16x128xf32> to vector<16x128xf32>
    %83 = arith.subf %82, %46 : vector<16x128xf32>
    %84 = math.exp %83 : vector<16x128xf32>
    %85 = arith.addf %77, %84 : vector<16x128xf32>
    %c4_i32 = arith.constant 4 : i32
    %86 = vector.broadcast %c4_i32 : i32 to vector<16x128xi32>
    %87 = arith.cmpi eq, %11, %86 : vector<16x128xi32>
    %88 = arith.select %87, %82, %80 : vector<16x128xi1>, vector<16x128xf32>
    %89 = vector.extract_strided_slice %17 {offsets = [5, 0, 0], sizes = [1, 16, 128], strides = [1, 1, 1]} : vector<10x16x128xf32> to vector<1x16x128xf32>
    %90 = vector.shape_cast %89 : vector<1x16x128xf32> to vector<16x128xf32>
    %91 = arith.subf %90, %46 : vector<16x128xf32>
    %92 = math.exp %91 : vector<16x128xf32>
    %93 = arith.addf %85, %92 : vector<16x128xf32>
    %c5_i32 = arith.constant 5 : i32
    %94 = vector.broadcast %c5_i32 : i32 to vector<16x128xi32>
    %95 = arith.cmpi eq, %11, %94 : vector<16x128xi32>
    %96 = arith.select %95, %90, %88 : vector<16x128xi1>, vector<16x128xf32>
    %97 = vector.extract_strided_slice %17 {offsets = [6, 0, 0], sizes = [1, 16, 128], strides = [1, 1, 1]} : vector<10x16x128xf32> to vector<1x16x128xf32>
    %98 = vector.shape_cast %97 : vector<1x16x128xf32> to vector<16x128xf32>
    %99 = arith.subf %98, %46 : vector<16x128xf32>
    %100 = math.exp %99 : vector<16x128xf32>
    %101 = arith.addf %93, %100 : vector<16x128xf32>
    %c6_i32 = arith.constant 6 : i32
    %102 = vector.broadcast %c6_i32 : i32 to vector<16x128xi32>
    %103 = arith.cmpi eq, %11, %102 : vector<16x128xi32>
    %104 = arith.select %103, %98, %96 : vector<16x128xi1>, vector<16x128xf32>
    %105 = vector.extract_strided_slice %17 {offsets = [7, 0, 0], sizes = [1, 16, 128], strides = [1, 1, 1]} : vector<10x16x128xf32> to vector<1x16x128xf32>
    %106 = vector.shape_cast %105 : vector<1x16x128xf32> to vector<16x128xf32>
    %107 = arith.subf %106, %46 : vector<16x128xf32>
    %108 = math.exp %107 : vector<16x128xf32>
    %109 = arith.addf %101, %108 : vector<16x128xf32>
    %c7_i32 = arith.constant 7 : i32
    %110 = vector.broadcast %c7_i32 : i32 to vector<16x128xi32>
    %111 = arith.cmpi eq, %11, %110 : vector<16x128xi32>
    %112 = arith.select %111, %106, %104 : vector<16x128xi1>, vector<16x128xf32>
    %113 = vector.extract_strided_slice %17 {offsets = [8, 0, 0], sizes = [1, 16, 128], strides = [1, 1, 1]} : vector<10x16x128xf32> to vector<1x16x128xf32>
    %114 = vector.shape_cast %113 : vector<1x16x128xf32> to vector<16x128xf32>
    %115 = arith.subf %114, %46 : vector<16x128xf32>
    %116 = math.exp %115 : vector<16x128xf32>
    %117 = arith.addf %109, %116 : vector<16x128xf32>
    %c8_i32_6 = arith.constant 8 : i32
    %118 = vector.broadcast %c8_i32_6 : i32 to vector<16x128xi32>
    %119 = arith.cmpi eq, %11, %118 : vector<16x128xi32>
    %120 = arith.select %119, %114, %112 : vector<16x128xi1>, vector<16x128xf32>
    %121 = vector.extract_strided_slice %17 {offsets = [9, 0, 0], sizes = [1, 16, 128], strides = [1, 1, 1]} : vector<10x16x128xf32> to vector<1x16x128xf32>
    %122 = vector.shape_cast %121 : vector<1x16x128xf32> to vector<16x128xf32>
    %123 = arith.subf %122, %46 : vector<16x128xf32>
    %124 = math.exp %123 : vector<16x128xf32>
    %125 = arith.addf %117, %124 : vector<16x128xf32>
    %c9_i32 = arith.constant 9 : i32
    %126 = vector.broadcast %c9_i32 : i32 to vector<16x128xi32>
    %127 = arith.cmpi eq, %11, %126 : vector<16x128xi32>
    %128 = arith.select %127, %122, %120 : vector<16x128xi1>, vector<16x128xf32>
    %129 = math.log %125 : vector<16x128xf32>
    %130 = arith.addf %46, %129 : vector<16x128xf32>
    %131 = arith.subf %130, %128 : vector<16x128xf32>
    %cst_7 = arith.constant 2.30258512 : f32
    %132 = vector.broadcast %cst_7 : f32 to vector<16x128xf32>
    %133 = arith.subf %131, %132 : vector<16x128xf32>
    %cst_8 = arith.constant 1.000000e+00 : f32
    %134 = vector.broadcast %cst_8 : f32 to vector<16x128xf32>
    %135 = arith.mulf %133, %134 : vector<16x128xf32>
    %136 = vector.broadcast %cst_0 : f32 to vector<16x128xf32>
    %137 = arith.maximumf %136, %135 : vector<16x128xf32>
    %cst_9 = arith.constant 5.000000e-01 : f32
    %138 = vector.broadcast %cst_9 : f32 to vector<16x128xf32>
    %139 = arith.mulf %138, %137 : vector<16x128xf32>
    %cst_10 = arith.constant 2.71828175 : f32
    %140 = vector.broadcast %cst_10 : f32 to vector<16x128xf32>
    %141 = arith.mulf %140, %139 : vector<16x128xf32>
    %cst_11 = arith.constant 1.000000e+00 : f32
    %142 = vector.broadcast %cst_11 : f32 to vector<16x128xf32>
    %143 = arith.addf %141, %142 : vector<16x128xf32>
    %cst_12 = arith.constant 2.000000e+00 : f32
    %144 = vector.broadcast %cst_12 : f32 to vector<16x128xf32>
    %145 = arith.mulf %144, %143 : vector<16x128xf32>
    %cst_13 = arith.constant 0.000000e+00 : f32
    %146 = vector.broadcast %cst_13 : f32 to vector<16x128xf32>
    %147 = arith.maximumf %145, %146 : vector<16x128xf32>
    %148 = math.sqrt %147 : vector<16x128xf32>
    %cst_14 = arith.constant 0.152777776 : f32
    %149 = vector.broadcast %cst_14 : f32 to vector<16x128xf32>
    %150 = arith.mulf %149, %148 : vector<16x128xf32>
    %cst_15 = arith.constant -0.333333343 : f32
    %151 = vector.broadcast %cst_15 : f32 to vector<16x128xf32>
    %152 = arith.addf %151, %150 : vector<16x128xf32>
    %153 = arith.mulf %148, %152 : vector<16x128xf32>
    %cst_16 = arith.constant 1.000000e+00 : f32
    %154 = vector.broadcast %cst_16 : f32 to vector<16x128xf32>
    %155 = arith.addf %154, %153 : vector<16x128xf32>
    %156 = arith.mulf %148, %155 : vector<16x128xf32>
    %cst_17 = arith.constant -1.000000e+00 : f32
    %157 = vector.broadcast %cst_17 : f32 to vector<16x128xf32>
    %158 = arith.addf %157, %156 : vector<16x128xf32>
    %cst_18 = arith.constant 3.000000e+00 : f32
    %159 = vector.broadcast %cst_18 : f32 to vector<16x128xf32>
    %160 = arith.cmpf oge, %139, %159 : vector<16x128xf32>
    %cst_19 = arith.constant 1.000000e-30 : f32
    %161 = vector.broadcast %cst_19 : f32 to vector<16x128xf32>
    %162 = arith.maximumf %139, %161 : vector<16x128xf32>
    %cst_20 = arith.constant -9.990000e-01 : f32
    %163 = vector.broadcast %cst_20 : f32 to vector<16x128xf32>
    %164 = arith.maximumf %139, %163 : vector<16x128xf32>
    %cst_21 = arith.constant 1.000000e+00 : f32
    %165 = vector.broadcast %cst_21 : f32 to vector<16x128xf32>
    %166 = arith.addf %165, %164 : vector<16x128xf32>
    %167 = arith.select %160, %162, %166 : vector<16x128xi1>, vector<16x128xf32>
    %168 = math.log %167 : vector<16x128xf32>
    %cst_22 = arith.constant 1.000000e-30 : f32
    %169 = vector.broadcast %cst_22 : f32 to vector<16x128xf32>
    %170 = arith.maximumf %168, %169 : vector<16x128xf32>
    %171 = math.log %170 : vector<16x128xf32>
    %172 = arith.subf %168, %171 : vector<16x128xf32>
    %173 = arith.select %160, %172, %168 : vector<16x128xi1>, vector<16x128xf32>
    %cst_23 = arith.constant -2.500000e-01 : f32
    %174 = vector.broadcast %cst_23 : f32 to vector<16x128xf32>
    %175 = arith.cmpf olt, %139, %174 : vector<16x128xf32>
    %176 = arith.select %175, %158, %173 : vector<16x128xi1>, vector<16x128xf32>
    %177 = math.exp %176 : vector<16x128xf32>
    %178 = arith.mulf %176, %177 : vector<16x128xf32>
    %179 = arith.subf %178, %139 : vector<16x128xf32>
    %cst_24 = arith.constant 1.000000e+00 : f32
    %180 = vector.broadcast %cst_24 : f32 to vector<16x128xf32>
    %181 = arith.addf %176, %180 : vector<16x128xf32>
    %182 = math.absf %181 : vector<16x128xf32>
    %cst_25 = arith.constant 9.99999997E-7 : f32
    %183 = vector.broadcast %cst_25 : f32 to vector<16x128xf32>
    %184 = arith.cmpf olt, %182, %183 : vector<16x128xf32>
    %cst_26 = arith.constant 1.000000e+00 : f32
    %185 = vector.broadcast %cst_26 : f32 to vector<16x128xf32>
    %186 = arith.select %184, %185, %181 : vector<16x128xi1>, vector<16x128xf32>
    %cst_27 = arith.constant 2.000000e+00 : f32
    %187 = vector.broadcast %cst_27 : f32 to vector<16x128xf32>
    %188 = arith.mulf %187, %186 : vector<16x128xf32>
    %189 = arith.mulf %188, %179 : vector<16x128xf32>
    %cst_28 = arith.constant 2.000000e+00 : f32
    %190 = vector.broadcast %cst_28 : f32 to vector<16x128xf32>
    %191 = arith.mulf %190, %177 : vector<16x128xf32>
    %192 = arith.mulf %191, %186 : vector<16x128xf32>
    %193 = arith.mulf %192, %186 : vector<16x128xf32>
    %cst_29 = arith.constant 2.000000e+00 : f32
    %194 = vector.broadcast %cst_29 : f32 to vector<16x128xf32>
    %195 = arith.addf %176, %194 : vector<16x128xf32>
    %196 = arith.mulf %195, %179 : vector<16x128xf32>
    %197 = arith.subf %193, %196 : vector<16x128xf32>
    %198 = math.absf %197 : vector<16x128xf32>
    %cst_30 = arith.constant 1.000000e-30 : f32
    %199 = vector.broadcast %cst_30 : f32 to vector<16x128xf32>
    %200 = arith.cmpf olt, %198, %199 : vector<16x128xf32>
    %cst_31 = arith.constant 1.000000e-30 : f32
    %201 = vector.broadcast %cst_31 : f32 to vector<16x128xf32>
    %202 = arith.select %200, %201, %197 : vector<16x128xi1>, vector<16x128xf32>
    %203 = tpu.reciprocal %202 {approx = true} : vector<16x128xf32> -> vector<16x128xf32>
    %204 = arith.mulf %189, %203 : vector<16x128xf32>
    %cst_32 = arith.constant 0.000000e+00 : f32
    %205 = vector.broadcast %cst_32 : f32 to vector<16x128xf32>
    %206 = arith.select %184, %205, %204 : vector<16x128xi1>, vector<16x128xf32>
    %207 = arith.subf %176, %206 : vector<16x128xf32>
    %208 = math.exp %207 : vector<16x128xf32>
    %209 = arith.mulf %207, %208 : vector<16x128xf32>
    %210 = arith.subf %209, %139 : vector<16x128xf32>
    %cst_33 = arith.constant 1.000000e+00 : f32
    %211 = vector.broadcast %cst_33 : f32 to vector<16x128xf32>
    %212 = arith.addf %207, %211 : vector<16x128xf32>
    %213 = math.absf %212 : vector<16x128xf32>
    %cst_34 = arith.constant 9.99999997E-7 : f32
    %214 = vector.broadcast %cst_34 : f32 to vector<16x128xf32>
    %215 = arith.cmpf olt, %213, %214 : vector<16x128xf32>
    %cst_35 = arith.constant 1.000000e+00 : f32
    %216 = vector.broadcast %cst_35 : f32 to vector<16x128xf32>
    %217 = arith.select %215, %216, %212 : vector<16x128xi1>, vector<16x128xf32>
    %cst_36 = arith.constant 2.000000e+00 : f32
    %218 = vector.broadcast %cst_36 : f32 to vector<16x128xf32>
    %219 = arith.mulf %218, %217 : vector<16x128xf32>
    %220 = arith.mulf %219, %210 : vector<16x128xf32>
    %cst_37 = arith.constant 2.000000e+00 : f32
    %221 = vector.broadcast %cst_37 : f32 to vector<16x128xf32>
    %222 = arith.mulf %221, %208 : vector<16x128xf32>
    %223 = arith.mulf %222, %217 : vector<16x128xf32>
    %224 = arith.mulf %223, %217 : vector<16x128xf32>
    %cst_38 = arith.constant 2.000000e+00 : f32
    %225 = vector.broadcast %cst_38 : f32 to vector<16x128xf32>
    %226 = arith.addf %207, %225 : vector<16x128xf32>
    %227 = arith.mulf %226, %210 : vector<16x128xf32>
    %228 = arith.subf %224, %227 : vector<16x128xf32>
    %229 = math.absf %228 : vector<16x128xf32>
    %cst_39 = arith.constant 1.000000e-30 : f32
    %230 = vector.broadcast %cst_39 : f32 to vector<16x128xf32>
    %231 = arith.cmpf olt, %229, %230 : vector<16x128xf32>
    %cst_40 = arith.constant 1.000000e-30 : f32
    %232 = vector.broadcast %cst_40 : f32 to vector<16x128xf32>
    %233 = arith.select %231, %232, %228 : vector<16x128xi1>, vector<16x128xf32>
    %234 = tpu.reciprocal %233 {approx = true} : vector<16x128xf32> -> vector<16x128xf32>
    %235 = arith.mulf %220, %234 : vector<16x128xf32>
    %cst_41 = arith.constant 0.000000e+00 : f32
    %236 = vector.broadcast %cst_41 : f32 to vector<16x128xf32>
    %237 = arith.select %215, %236, %235 : vector<16x128xi1>, vector<16x128xf32>
    %238 = arith.subf %207, %237 : vector<16x128xf32>
    %cst_42 = arith.constant 0.000000e+00 : f32
    %239 = vector.broadcast %cst_42 : f32 to vector<16x128xf32>
    %240 = arith.subf %239, %238 : vector<16x128xf32>
    %241 = math.exp %240 : vector<16x128xf32>
    %242 = arith.mulf %133, %241 : vector<16x128xf32>
    %243 = arith.mulf %240, %240 : vector<16x128xf32>
    %cst_43 = arith.constant 1.000000e+00 : f32
    %244 = vector.broadcast %cst_43 : f32 to vector<16x128xf32>
    %245 = arith.mulf %244, %243 : vector<16x128xf32>
    %246 = arith.addf %242, %245 : vector<16x128xf32>
    %c2048_i32_44 = arith.constant 2048 : i32
    %247 = arith.muli %c0_i32, %c2048_i32_44 : i32
    %248 = arith.subi %6, %247 : i32
    %249 = vector.broadcast %248 : i32 to vector<16x128xi32>
    %250 = arith.cmpi slt, %4, %249 : vector<16x128xi32>
    %cst_45 = arith.constant 0.000000e+00 : f32
    %251 = vector.broadcast %cst_45 : f32 to vector<16x128xf32>
    %252 = arith.select %250, %246, %251 : vector<16x128xi1>, vector<16x128xf32>
    %253 = arith.addf %7, %252 : vector<16x128xf32>
    %c1_i32_46 = arith.constant 1 : i32
    %c0_47 = arith.constant 0 : index
    %c0_48 = arith.constant 0 : index
    %c0_49 = arith.constant 0 : index
    %254 = vector.load %arg3[%c0_47, %c0_48, %c0_49] : memref<1x16x128xf32, #tpu.memory_space<vmem>>, vector<1x16x128xf32>
    %255 = vector.shape_cast %254 : vector<1x16x128xf32> to vector<16x128xf32>
    %256 = vector.shape_cast %253 : vector<16x128xf32> to vector<1x16x128xf32>
    tpu.vector_store %arg3[%c0_47, %c0_48, %c0_49], %256 {strides = array<i32>} : memref<1x16x128xf32, #tpu.memory_space<vmem>>, vector<1x16x128xf32>,
    return
  }
  func.func @transform_0(%arg0: i32) -> (i32, i32) {
    %c0_i32 = arith.constant 0 : i32
    %c0_i32_0 = arith.constant 0 : i32
    return %arg0, %c0_i32 : i32, i32
  }
  func.func @transform_1(%arg0: i32) -> (i32, i32) {
    %c0_i32 = arith.constant 0 : i32
    %c0_i32_0 = arith.constant 0 : i32
    return %arg0, %c0_i32 : i32, i32
  }
  func.func @transform_2(%arg0: i32) -> (i32, i32, i32) {
    %c0_i32 = arith.constant 0 : i32
    %c0_i32_0 = arith.constant 0 : i32
    %c0_i32_1 = arith.constant 0 : i32
    return %arg0, %c0_i32, %c0_i32_0 : i32, i32, i32
  }
}

module attributes {stable_mosaic.version = 11 : i64} {
  func.func @_superloss_kernel(%arg0: i32, %arg1: memref<10x16x128xf32, #tpu.memory_space<vmem>>, %arg2: memref<16x128xi32, #tpu.memory_space<vmem>>, %arg3: memref<1x16x128xf32, #tpu.memory_space<vmem>>) attributes {dimension_semantics = [#tpu.dimension_semantics<parallel>], iteration_bounds = array<i64: 1>, scalar_prefetch = 0 : i64, scratch_operands = 0 : i64, tpu.core_type = #tpu.core_type<tc>, window_params = [{transform_indices = @transform_0, window_bounds = array<i64: 10, 16, 128>}, {transform_indices = @transform_1, window_bounds = array<i64: 16, 128>}, {transform_indices = @transform_2, window_bounds = array<i64: 1, 16, 128>}]} {
    %0 = tpu.iota {dimensions = array<i32: 0>} : vector<16x128xi32>
    %c128_i32 = arith.constant 128 : i32
    %1 = vector.broadcast %c128_i32 : i32 to vector<16x128xi32>
    %2 = arith.muli %0, %1 : vector<16x128xi32>
    %3 = tpu.iota {dimensions = array<i32: 1>} : vector<16x128xi32>
    %4 = arith.addi %2, %3 : vector<16x128xi32>
    %c2048_i32 = arith.constant 2048 : i32
    %5 = arith.muli %arg0, %c2048_i32 : i32
    %c8_i32 = arith.constant 8 : i32
    %6 = arith.subi %c8_i32, %5 : i32
    %cst = arith.constant 0.000000e+00 : f32
    %7 = vector.broadcast %cst : f32 to vector<16x128xf32>
    %cst_0 = arith.constant -0.735758901 : f32
    %c0_i32 = arith.constant 0 : i32
    %c16_i32 = arith.constant 16 : i32
    %8 = arith.muli %c0_i32, %c16_i32 : i32
    %9 = tpu.assume_multiple %8, 16 : i32
    %10 = arith.index_cast %9 : i32 to index
    %c0 = arith.constant 0 : index
    %11 = vector.load %arg2[%10, %c0] : memref<16x128xi32, #tpu.memory_space<vmem>>, vector<16x128xi32>
    %c0_1 = arith.constant 0 : index
    %12 = arith.index_cast %9 : i32 to index
    %c0_2 = arith.constant 0 : index
    %13 = vector.load %arg1[%c0_1, %12, %c0_2] : memref<10x16x128xf32, #tpu.memory_space<vmem>>, vector<1x16x128xf32>
    %14 = vector.shape_cast %13 : vector<1x16x128xf32> to vector<16x128xf32>
    %c1 = arith.constant 1 : index
    %15 = arith.index_cast %9 : i32 to index
    %c0_3 = arith.constant 0 : index
    %16 = vector.load %arg1[%c1, %15, %c0_3] : memref<10x16x128xf32, #tpu.memory_space<vmem>>, vector<1x16x128xf32>
    %17 = vector.shape_cast %16 : vector<1x16x128xf32> to vector<16x128xf32>
    %18 = arith.maximumf %14, %17 : vector<16x128xf32>
    %c2 = arith.constant 2 : index
    %19 = arith.index_cast %9 : i32 to index
    %c0_4 = arith.constant 0 : index
    %20 = vector.load %arg1[%c2, %19, %c0_4] : memref<10x16x128xf32, #tpu.memory_space<vmem>>, vector<1x16x128xf32>
    %21 = vector.shape_cast %20 : vector<1x16x128xf32> to vector<16x128xf32>
    %22 = arith.maximumf %18, %21 : vector<16x128xf32>
    %c3 = arith.constant 3 : index
    %23 = arith.index_cast %9 : i32 to index
    %c0_5 = arith.constant 0 : index
    %24 = vector.load %arg1[%c3, %23, %c0_5] : memref<10x16x128xf32, #tpu.memory_space<vmem>>, vector<1x16x128xf32>
    %25 = vector.shape_cast %24 : vector<1x16x128xf32> to vector<16x128xf32>
    %26 = arith.maximumf %22, %25 : vector<16x128xf32>
    %c4 = arith.constant 4 : index
    %27 = arith.index_cast %9 : i32 to index
    %c0_6 = arith.constant 0 : index
    %28 = vector.load %arg1[%c4, %27, %c0_6] : memref<10x16x128xf32, #tpu.memory_space<vmem>>, vector<1x16x128xf32>
    %29 = vector.shape_cast %28 : vector<1x16x128xf32> to vector<16x128xf32>
    %30 = arith.maximumf %26, %29 : vector<16x128xf32>
    %c5 = arith.constant 5 : index
    %31 = arith.index_cast %9 : i32 to index
    %c0_7 = arith.constant 0 : index
    %32 = vector.load %arg1[%c5, %31, %c0_7] : memref<10x16x128xf32, #tpu.memory_space<vmem>>, vector<1x16x128xf32>
    %33 = vector.shape_cast %32 : vector<1x16x128xf32> to vector<16x128xf32>
    %34 = arith.maximumf %30, %33 : vector<16x128xf32>
    %c6 = arith.constant 6 : index
    %35 = arith.index_cast %9 : i32 to index
    %c0_8 = arith.constant 0 : index
    %36 = vector.load %arg1[%c6, %35, %c0_8] : memref<10x16x128xf32, #tpu.memory_space<vmem>>, vector<1x16x128xf32>
    %37 = vector.shape_cast %36 : vector<1x16x128xf32> to vector<16x128xf32>
    %38 = arith.maximumf %34, %37 : vector<16x128xf32>
    %c7 = arith.constant 7 : index
    %39 = arith.index_cast %9 : i32 to index
    %c0_9 = arith.constant 0 : index
    %40 = vector.load %arg1[%c7, %39, %c0_9] : memref<10x16x128xf32, #tpu.memory_space<vmem>>, vector<1x16x128xf32>
    %41 = vector.shape_cast %40 : vector<1x16x128xf32> to vector<16x128xf32>
    %42 = arith.maximumf %38, %41 : vector<16x128xf32>
    %c8 = arith.constant 8 : index
    %43 = arith.index_cast %9 : i32 to index
    %c0_10 = arith.constant 0 : index
    %44 = vector.load %arg1[%c8, %43, %c0_10] : memref<10x16x128xf32, #tpu.memory_space<vmem>>, vector<1x16x128xf32>
    %45 = vector.shape_cast %44 : vector<1x16x128xf32> to vector<16x128xf32>
    %46 = arith.maximumf %42, %45 : vector<16x128xf32>
    %c9 = arith.constant 9 : index
    %47 = arith.index_cast %9 : i32 to index
    %c0_11 = arith.constant 0 : index
    %48 = vector.load %arg1[%c9, %47, %c0_11] : memref<10x16x128xf32, #tpu.memory_space<vmem>>, vector<1x16x128xf32>
    %49 = vector.shape_cast %48 : vector<1x16x128xf32> to vector<16x128xf32>
    %50 = arith.maximumf %46, %49 : vector<16x128xf32>
    %cst_12 = arith.constant 0.000000e+00 : f32
    %51 = vector.broadcast %cst_12 : f32 to vector<16x128xf32>
    %cst_13 = arith.constant 0.000000e+00 : f32
    %52 = vector.broadcast %cst_13 : f32 to vector<16x128xf32>
    %c0_14 = arith.constant 0 : index
    %53 = arith.index_cast %9 : i32 to index
    %c0_15 = arith.constant 0 : index
    %54 = vector.load %arg1[%c0_14, %53, %c0_15] : memref<10x16x128xf32, #tpu.memory_space<vmem>>, vector<1x16x128xf32>
    %55 = vector.shape_cast %54 : vector<1x16x128xf32> to vector<16x128xf32>
    %56 = arith.subf %55, %50 : vector<16x128xf32>
    %57 = math.exp %56 : vector<16x128xf32>
    %58 = arith.addf %51, %57 : vector<16x128xf32>
    %c0_i32_16 = arith.constant 0 : i32
    %59 = vector.broadcast %c0_i32_16 : i32 to vector<16x128xi32>
    %60 = arith.cmpi eq, %11, %59 : vector<16x128xi32>
    %61 = arith.select %60, %55, %52 : vector<16x128xi1>, vector<16x128xf32>
    %c1_17 = arith.constant 1 : index
    %62 = arith.index_cast %9 : i32 to index
    %c0_18 = arith.constant 0 : index
    %63 = vector.load %arg1[%c1_17, %62, %c0_18] : memref<10x16x128xf32, #tpu.memory_space<vmem>>, vector<1x16x128xf32>
    %64 = vector.shape_cast %63 : vector<1x16x128xf32> to vector<16x128xf32>
    %65 = arith.subf %64, %50 : vector<16x128xf32>
    %66 = math.exp %65 : vector<16x128xf32>
    %67 = arith.addf %58, %66 : vector<16x128xf32>
    %c1_i32 = arith.constant 1 : i32
    %68 = vector.broadcast %c1_i32 : i32 to vector<16x128xi32>
    %69 = arith.cmpi eq, %11, %68 : vector<16x128xi32>
    %70 = arith.select %69, %64, %61 : vector<16x128xi1>, vector<16x128xf32>
    %c2_19 = arith.constant 2 : index
    %71 = arith.index_cast %9 : i32 to index
    %c0_20 = arith.constant 0 : index
    %72 = vector.load %arg1[%c2_19, %71, %c0_20] : memref<10x16x128xf32, #tpu.memory_space<vmem>>, vector<1x16x128xf32>
    %73 = vector.shape_cast %72 : vector<1x16x128xf32> to vector<16x128xf32>
    %74 = arith.subf %73, %50 : vector<16x128xf32>
    %75 = math.exp %74 : vector<16x128xf32>
    %76 = arith.addf %67, %75 : vector<16x128xf32>
    %c2_i32 = arith.constant 2 : i32
    %77 = vector.broadcast %c2_i32 : i32 to vector<16x128xi32>
    %78 = arith.cmpi eq, %11, %77 : vector<16x128xi32>
    %79 = arith.select %78, %73, %70 : vector<16x128xi1>, vector<16x128xf32>
    %c3_21 = arith.constant 3 : index
    %80 = arith.index_cast %9 : i32 to index
    %c0_22 = arith.constant 0 : index
    %81 = vector.load %arg1[%c3_21, %80, %c0_22] : memref<10x16x128xf32, #tpu.memory_space<vmem>>, vector<1x16x128xf32>
    %82 = vector.shape_cast %81 : vector<1x16x128xf32> to vector<16x128xf32>
    %83 = arith.subf %82, %50 : vector<16x128xf32>
    %84 = math.exp %83 : vector<16x128xf32>
    %85 = arith.addf %76, %84 : vector<16x128xf32>
    %c3_i32 = arith.constant 3 : i32
    %86 = vector.broadcast %c3_i32 : i32 to vector<16x128xi32>
    %87 = arith.cmpi eq, %11, %86 : vector<16x128xi32>
    %88 = arith.select %87, %82, %79 : vector<16x128xi1>, vector<16x128xf32>
    %c4_23 = arith.constant 4 : index
    %89 = arith.index_cast %9 : i32 to index
    %c0_24 = arith.constant 0 : index
    %90 = vector.load %arg1[%c4_23, %89, %c0_24] : memref<10x16x128xf32, #tpu.memory_space<vmem>>, vector<1x16x128xf32>
    %91 = vector.shape_cast %90 : vector<1x16x128xf32> to vector<16x128xf32>
    %92 = arith.subf %91, %50 : vector<16x128xf32>
    %93 = math.exp %92 : vector<16x128xf32>
    %94 = arith.addf %85, %93 : vector<16x128xf32>
    %c4_i32 = arith.constant 4 : i32
    %95 = vector.broadcast %c4_i32 : i32 to vector<16x128xi32>
    %96 = arith.cmpi eq, %11, %95 : vector<16x128xi32>
    %97 = arith.select %96, %91, %88 : vector<16x128xi1>, vector<16x128xf32>
    %c5_25 = arith.constant 5 : index
    %98 = arith.index_cast %9 : i32 to index
    %c0_26 = arith.constant 0 : index
    %99 = vector.load %arg1[%c5_25, %98, %c0_26] : memref<10x16x128xf32, #tpu.memory_space<vmem>>, vector<1x16x128xf32>
    %100 = vector.shape_cast %99 : vector<1x16x128xf32> to vector<16x128xf32>
    %101 = arith.subf %100, %50 : vector<16x128xf32>
    %102 = math.exp %101 : vector<16x128xf32>
    %103 = arith.addf %94, %102 : vector<16x128xf32>
    %c5_i32 = arith.constant 5 : i32
    %104 = vector.broadcast %c5_i32 : i32 to vector<16x128xi32>
    %105 = arith.cmpi eq, %11, %104 : vector<16x128xi32>
    %106 = arith.select %105, %100, %97 : vector<16x128xi1>, vector<16x128xf32>
    %c6_27 = arith.constant 6 : index
    %107 = arith.index_cast %9 : i32 to index
    %c0_28 = arith.constant 0 : index
    %108 = vector.load %arg1[%c6_27, %107, %c0_28] : memref<10x16x128xf32, #tpu.memory_space<vmem>>, vector<1x16x128xf32>
    %109 = vector.shape_cast %108 : vector<1x16x128xf32> to vector<16x128xf32>
    %110 = arith.subf %109, %50 : vector<16x128xf32>
    %111 = math.exp %110 : vector<16x128xf32>
    %112 = arith.addf %103, %111 : vector<16x128xf32>
    %c6_i32 = arith.constant 6 : i32
    %113 = vector.broadcast %c6_i32 : i32 to vector<16x128xi32>
    %114 = arith.cmpi eq, %11, %113 : vector<16x128xi32>
    %115 = arith.select %114, %109, %106 : vector<16x128xi1>, vector<16x128xf32>
    %c7_29 = arith.constant 7 : index
    %116 = arith.index_cast %9 : i32 to index
    %c0_30 = arith.constant 0 : index
    %117 = vector.load %arg1[%c7_29, %116, %c0_30] : memref<10x16x128xf32, #tpu.memory_space<vmem>>, vector<1x16x128xf32>
    %118 = vector.shape_cast %117 : vector<1x16x128xf32> to vector<16x128xf32>
    %119 = arith.subf %118, %50 : vector<16x128xf32>
    %120 = math.exp %119 : vector<16x128xf32>
    %121 = arith.addf %112, %120 : vector<16x128xf32>
    %c7_i32 = arith.constant 7 : i32
    %122 = vector.broadcast %c7_i32 : i32 to vector<16x128xi32>
    %123 = arith.cmpi eq, %11, %122 : vector<16x128xi32>
    %124 = arith.select %123, %118, %115 : vector<16x128xi1>, vector<16x128xf32>
    %c8_31 = arith.constant 8 : index
    %125 = arith.index_cast %9 : i32 to index
    %c0_32 = arith.constant 0 : index
    %126 = vector.load %arg1[%c8_31, %125, %c0_32] : memref<10x16x128xf32, #tpu.memory_space<vmem>>, vector<1x16x128xf32>
    %127 = vector.shape_cast %126 : vector<1x16x128xf32> to vector<16x128xf32>
    %128 = arith.subf %127, %50 : vector<16x128xf32>
    %129 = math.exp %128 : vector<16x128xf32>
    %130 = arith.addf %121, %129 : vector<16x128xf32>
    %c8_i32_33 = arith.constant 8 : i32
    %131 = vector.broadcast %c8_i32_33 : i32 to vector<16x128xi32>
    %132 = arith.cmpi eq, %11, %131 : vector<16x128xi32>
    %133 = arith.select %132, %127, %124 : vector<16x128xi1>, vector<16x128xf32>
    %c9_34 = arith.constant 9 : index
    %134 = arith.index_cast %9 : i32 to index
    %c0_35 = arith.constant 0 : index
    %135 = vector.load %arg1[%c9_34, %134, %c0_35] : memref<10x16x128xf32, #tpu.memory_space<vmem>>, vector<1x16x128xf32>
    %136 = vector.shape_cast %135 : vector<1x16x128xf32> to vector<16x128xf32>
    %137 = arith.subf %136, %50 : vector<16x128xf32>
    %138 = math.exp %137 : vector<16x128xf32>
    %139 = arith.addf %130, %138 : vector<16x128xf32>
    %c9_i32 = arith.constant 9 : i32
    %140 = vector.broadcast %c9_i32 : i32 to vector<16x128xi32>
    %141 = arith.cmpi eq, %11, %140 : vector<16x128xi32>
    %142 = arith.select %141, %136, %133 : vector<16x128xi1>, vector<16x128xf32>
    %143 = math.log %139 : vector<16x128xf32>
    %144 = arith.addf %50, %143 : vector<16x128xf32>
    %145 = arith.subf %144, %142 : vector<16x128xf32>
    %cst_36 = arith.constant 2.30258512 : f32
    %146 = vector.broadcast %cst_36 : f32 to vector<16x128xf32>
    %147 = arith.subf %145, %146 : vector<16x128xf32>
    %cst_37 = arith.constant 1.000000e+00 : f32
    %148 = vector.broadcast %cst_37 : f32 to vector<16x128xf32>
    %149 = arith.mulf %147, %148 : vector<16x128xf32>
    %150 = vector.broadcast %cst_0 : f32 to vector<16x128xf32>
    %151 = arith.maximumf %150, %149 : vector<16x128xf32>
    %cst_38 = arith.constant 5.000000e-01 : f32
    %152 = vector.broadcast %cst_38 : f32 to vector<16x128xf32>
    %153 = arith.mulf %152, %151 : vector<16x128xf32>
    %cst_39 = arith.constant 2.71828175 : f32
    %154 = vector.broadcast %cst_39 : f32 to vector<16x128xf32>
    %155 = arith.mulf %154, %153 : vector<16x128xf32>
    %cst_40 = arith.constant 1.000000e+00 : f32
    %156 = vector.broadcast %cst_40 : f32 to vector<16x128xf32>
    %157 = arith.addf %155, %156 : vector<16x128xf32>
    %cst_41 = arith.constant 2.000000e+00 : f32
    %158 = vector.broadcast %cst_41 : f32 to vector<16x128xf32>
    %159 = arith.mulf %158, %157 : vector<16x128xf32>
    %cst_42 = arith.constant 0.000000e+00 : f32
    %160 = vector.broadcast %cst_42 : f32 to vector<16x128xf32>
    %161 = arith.maximumf %159, %160 : vector<16x128xf32>
    %162 = math.sqrt %161 : vector<16x128xf32>
    %cst_43 = arith.constant 0.152777776 : f32
    %163 = vector.broadcast %cst_43 : f32 to vector<16x128xf32>
    %164 = arith.mulf %163, %162 : vector<16x128xf32>
    %cst_44 = arith.constant -0.333333343 : f32
    %165 = vector.broadcast %cst_44 : f32 to vector<16x128xf32>
    %166 = arith.addf %165, %164 : vector<16x128xf32>
    %167 = arith.mulf %162, %166 : vector<16x128xf32>
    %cst_45 = arith.constant 1.000000e+00 : f32
    %168 = vector.broadcast %cst_45 : f32 to vector<16x128xf32>
    %169 = arith.addf %168, %167 : vector<16x128xf32>
    %170 = arith.mulf %162, %169 : vector<16x128xf32>
    %cst_46 = arith.constant -1.000000e+00 : f32
    %171 = vector.broadcast %cst_46 : f32 to vector<16x128xf32>
    %172 = arith.addf %171, %170 : vector<16x128xf32>
    %cst_47 = arith.constant 3.000000e+00 : f32
    %173 = vector.broadcast %cst_47 : f32 to vector<16x128xf32>
    %174 = arith.cmpf oge, %153, %173 : vector<16x128xf32>
    %cst_48 = arith.constant 1.000000e-30 : f32
    %175 = vector.broadcast %cst_48 : f32 to vector<16x128xf32>
    %176 = arith.maximumf %153, %175 : vector<16x128xf32>
    %cst_49 = arith.constant -9.990000e-01 : f32
    %177 = vector.broadcast %cst_49 : f32 to vector<16x128xf32>
    %178 = arith.maximumf %153, %177 : vector<16x128xf32>
    %cst_50 = arith.constant 1.000000e+00 : f32
    %179 = vector.broadcast %cst_50 : f32 to vector<16x128xf32>
    %180 = arith.addf %179, %178 : vector<16x128xf32>
    %181 = arith.select %174, %176, %180 : vector<16x128xi1>, vector<16x128xf32>
    %182 = math.log %181 : vector<16x128xf32>
    %cst_51 = arith.constant 1.000000e-30 : f32
    %183 = vector.broadcast %cst_51 : f32 to vector<16x128xf32>
    %184 = arith.maximumf %182, %183 : vector<16x128xf32>
    %185 = math.log %184 : vector<16x128xf32>
    %186 = arith.subf %182, %185 : vector<16x128xf32>
    %187 = arith.select %174, %186, %182 : vector<16x128xi1>, vector<16x128xf32>
    %cst_52 = arith.constant -2.500000e-01 : f32
    %188 = vector.broadcast %cst_52 : f32 to vector<16x128xf32>
    %189 = arith.cmpf olt, %153, %188 : vector<16x128xf32>
    %190 = arith.select %189, %172, %187 : vector<16x128xi1>, vector<16x128xf32>
    %191 = math.exp %190 : vector<16x128xf32>
    %192 = arith.mulf %190, %191 : vector<16x128xf32>
    %193 = arith.subf %192, %153 : vector<16x128xf32>
    %cst_53 = arith.constant 1.000000e+00 : f32
    %194 = vector.broadcast %cst_53 : f32 to vector<16x128xf32>
    %195 = arith.addf %190, %194 : vector<16x128xf32>
    %196 = math.absf %195 : vector<16x128xf32>
    %cst_54 = arith.constant 9.99999997E-7 : f32
    %197 = vector.broadcast %cst_54 : f32 to vector<16x128xf32>
    %198 = arith.cmpf olt, %196, %197 : vector<16x128xf32>
    %cst_55 = arith.constant 1.000000e+00 : f32
    %199 = vector.broadcast %cst_55 : f32 to vector<16x128xf32>
    %200 = arith.select %198, %199, %195 : vector<16x128xi1>, vector<16x128xf32>
    %cst_56 = arith.constant 2.000000e+00 : f32
    %201 = vector.broadcast %cst_56 : f32 to vector<16x128xf32>
    %202 = arith.mulf %201, %200 : vector<16x128xf32>
    %203 = arith.mulf %202, %193 : vector<16x128xf32>
    %cst_57 = arith.constant 2.000000e+00 : f32
    %204 = vector.broadcast %cst_57 : f32 to vector<16x128xf32>
    %205 = arith.mulf %204, %191 : vector<16x128xf32>
    %206 = arith.mulf %205, %200 : vector<16x128xf32>
    %207 = arith.mulf %206, %200 : vector<16x128xf32>
    %cst_58 = arith.constant 2.000000e+00 : f32
    %208 = vector.broadcast %cst_58 : f32 to vector<16x128xf32>
    %209 = arith.addf %190, %208 : vector<16x128xf32>
    %210 = arith.mulf %209, %193 : vector<16x128xf32>
    %211 = arith.subf %207, %210 : vector<16x128xf32>
    %212 = math.absf %211 : vector<16x128xf32>
    %cst_59 = arith.constant 1.000000e-30 : f32
    %213 = vector.broadcast %cst_59 : f32 to vector<16x128xf32>
    %214 = arith.cmpf olt, %212, %213 : vector<16x128xf32>
    %cst_60 = arith.constant 1.000000e-30 : f32
    %215 = vector.broadcast %cst_60 : f32 to vector<16x128xf32>
    %216 = arith.select %214, %215, %211 : vector<16x128xi1>, vector<16x128xf32>
    %217 = tpu.reciprocal %216 {approx = true} : vector<16x128xf32> -> vector<16x128xf32>
    %218 = arith.mulf %203, %217 : vector<16x128xf32>
    %cst_61 = arith.constant 0.000000e+00 : f32
    %219 = vector.broadcast %cst_61 : f32 to vector<16x128xf32>
    %220 = arith.select %198, %219, %218 : vector<16x128xi1>, vector<16x128xf32>
    %221 = arith.subf %190, %220 : vector<16x128xf32>
    %222 = math.exp %221 : vector<16x128xf32>
    %223 = arith.mulf %221, %222 : vector<16x128xf32>
    %224 = arith.subf %223, %153 : vector<16x128xf32>
    %cst_62 = arith.constant 1.000000e+00 : f32
    %225 = vector.broadcast %cst_62 : f32 to vector<16x128xf32>
    %226 = arith.addf %221, %225 : vector<16x128xf32>
    %227 = math.absf %226 : vector<16x128xf32>
    %cst_63 = arith.constant 9.99999997E-7 : f32
    %228 = vector.broadcast %cst_63 : f32 to vector<16x128xf32>
    %229 = arith.cmpf olt, %227, %228 : vector<16x128xf32>
    %cst_64 = arith.constant 1.000000e+00 : f32
    %230 = vector.broadcast %cst_64 : f32 to vector<16x128xf32>
    %231 = arith.select %229, %230, %226 : vector<16x128xi1>, vector<16x128xf32>
    %cst_65 = arith.constant 2.000000e+00 : f32
    %232 = vector.broadcast %cst_65 : f32 to vector<16x128xf32>
    %233 = arith.mulf %232, %231 : vector<16x128xf32>
    %234 = arith.mulf %233, %224 : vector<16x128xf32>
    %cst_66 = arith.constant 2.000000e+00 : f32
    %235 = vector.broadcast %cst_66 : f32 to vector<16x128xf32>
    %236 = arith.mulf %235, %222 : vector<16x128xf32>
    %237 = arith.mulf %236, %231 : vector<16x128xf32>
    %238 = arith.mulf %237, %231 : vector<16x128xf32>
    %cst_67 = arith.constant 2.000000e+00 : f32
    %239 = vector.broadcast %cst_67 : f32 to vector<16x128xf32>
    %240 = arith.addf %221, %239 : vector<16x128xf32>
    %241 = arith.mulf %240, %224 : vector<16x128xf32>
    %242 = arith.subf %238, %241 : vector<16x128xf32>
    %243 = math.absf %242 : vector<16x128xf32>
    %cst_68 = arith.constant 1.000000e-30 : f32
    %244 = vector.broadcast %cst_68 : f32 to vector<16x128xf32>
    %245 = arith.cmpf olt, %243, %244 : vector<16x128xf32>
    %cst_69 = arith.constant 1.000000e-30 : f32
    %246 = vector.broadcast %cst_69 : f32 to vector<16x128xf32>
    %247 = arith.select %245, %246, %242 : vector<16x128xi1>, vector<16x128xf32>
    %248 = tpu.reciprocal %247 {approx = true} : vector<16x128xf32> -> vector<16x128xf32>
    %249 = arith.mulf %234, %248 : vector<16x128xf32>
    %cst_70 = arith.constant 0.000000e+00 : f32
    %250 = vector.broadcast %cst_70 : f32 to vector<16x128xf32>
    %251 = arith.select %229, %250, %249 : vector<16x128xi1>, vector<16x128xf32>
    %252 = arith.subf %221, %251 : vector<16x128xf32>
    %cst_71 = arith.constant 0.000000e+00 : f32
    %253 = vector.broadcast %cst_71 : f32 to vector<16x128xf32>
    %254 = arith.subf %253, %252 : vector<16x128xf32>
    %255 = math.exp %254 : vector<16x128xf32>
    %256 = arith.mulf %147, %255 : vector<16x128xf32>
    %257 = arith.mulf %254, %254 : vector<16x128xf32>
    %cst_72 = arith.constant 1.000000e+00 : f32
    %258 = vector.broadcast %cst_72 : f32 to vector<16x128xf32>
    %259 = arith.mulf %258, %257 : vector<16x128xf32>
    %260 = arith.addf %256, %259 : vector<16x128xf32>
    %c2048_i32_73 = arith.constant 2048 : i32
    %261 = arith.muli %c0_i32, %c2048_i32_73 : i32
    %262 = arith.subi %6, %261 : i32
    %263 = vector.broadcast %262 : i32 to vector<16x128xi32>
    %264 = arith.cmpi slt, %4, %263 : vector<16x128xi32>
    %cst_74 = arith.constant 0.000000e+00 : f32
    %265 = vector.broadcast %cst_74 : f32 to vector<16x128xf32>
    %266 = arith.select %264, %260, %265 : vector<16x128xi1>, vector<16x128xf32>
    %267 = arith.addf %7, %266 : vector<16x128xf32>
    %c1_i32_75 = arith.constant 1 : i32
    %c0_76 = arith.constant 0 : index
    %c0_77 = arith.constant 0 : index
    %c0_78 = arith.constant 0 : index
    %268 = vector.load %arg3[%c0_76, %c0_77, %c0_78] : memref<1x16x128xf32, #tpu.memory_space<vmem>>, vector<1x16x128xf32>
    %269 = vector.shape_cast %268 : vector<1x16x128xf32> to vector<16x128xf32>
    %270 = vector.shape_cast %267 : vector<16x128xf32> to vector<1x16x128xf32>
    tpu.vector_store %arg3[%c0_76, %c0_77, %c0_78], %270 {strides = array<i32>} : memref<1x16x128xf32, #tpu.memory_space<vmem>>, vector<1x16x128xf32>,
    return
  }
  func.func @transform_0(%arg0: i32) -> (i32, i32, i32) {
    %c0_i32 = arith.constant 0 : i32
    %c0_i32_0 = arith.constant 0 : i32
    %c0_i32_1 = arith.constant 0 : i32
    return %c0_i32, %arg0, %c0_i32_0 : i32, i32, i32
  }
  func.func @transform_1(%arg0: i32) -> (i32, i32) {
    %c0_i32 = arith.constant 0 : i32
    %c0_i32_0 = arith.constant 0 : i32
    return %arg0, %c0_i32 : i32, i32
  }
  func.func @transform_2(%arg0: i32) -> (i32, i32, i32) {
    %c0_i32 = arith.constant 0 : i32
    %c0_i32_0 = arith.constant 0 : i32
    %c0_i32_1 = arith.constant 0 : i32
    return %arg0, %c0_i32, %c0_i32_0 : i32, i32, i32
  }
}

</mosaic_0001>

<bundles_post_ra>
// kernel: tpu_custom_call.1
= control target key start
LH: loop header
LB: loop body
LE: loop exit
PB: predicated region body
PF: predicated region fallthrough
CT: control target
= control target key end

     0   :  { %s2719_s0 = inlined_call_operand.vmem [shape: f32[2048,10], index: 0, kind: input, shape index: {}]   ;;  %s2720_s1 = inlined_call_operand.vmem [shape: s32[16,128], index: 1, kind: input, shape index: {}]   ;;  %s2721_s2 = inlined_call_operand.hbm [shape: f32[1,16,128], index: 2, kind: output, shape index: {}]  }
   0x1   :  { %v25_v0 = vld [vmem:[%s2719_s0] sm:$0xff] }
   0x2   :  { %281 = vxpose.xlu0.b32.start [1/16] (narrow) %v25_v0, 16 }
   0x3   :  { %7 = vsyncpa [#allocation3], 0  ;;  %v26_v1 = vld [vmem:[%s2719_s0 + $0x8] sm:$0xff]  ;;  %v27_v2 = vld [vmem:[%s2719_s0 + $0x10] sm:$0xff]  ;;  %vm794_vm0 = vcmask 1047556   ;;  %s1441_s23 = sshll.u32 %s2721_s2, 4  ;;  %s1442_s23 = int_to_ptr.hbm [resolvable:$true] %s1441_s23 }
   0x4   :  { %v28_v3 = vld [vmem:[%s2719_s0 + $0x18] sm:$0xff]  ;;  %v29_v4 = vld [vmem:[%s2719_s0 + $0x20] sm:$0xff]  ;;  %v30_v5 = vld [vmem:[%s2719_s0 + $0x28] sm:$0xff]  ;;  %s1565_s24 = smov 128   ;;  %s1566_s25 = smov 8  }
   0x5   :  { %v31_v6 = vld [vmem:[%s2719_s0 + $0x30] sm:$0xff]  ;;  %v32_v7 = vld [vmem:[%s2719_s0 + $0x38] sm:$0xff]  ;;  %v33_v8 = vld [vmem:[%s2719_s0 + $0x40] sm:$0xff] }
   0x6   :  { %v34_v9 = vld [vmem:[%s2719_s0 + $0x48] sm:$0xff]  ;;  %v41_v10 = vld [vmem:[%s2719_s0 + $0x80] sm:$0xff]  ;;  %v35_v11 = vld [vmem:[%s2719_s0 + $0x50] sm:$0xff] }
   0x7   :  { %313 = vxpose.xlu1.b32.start [1/16] (narrow) %v41_v10, 16  ;;  %v42_v12 = vld [vmem:[%s2719_s0 + $0x88] sm:$0xff]  ;;  %v36_v13 = vld [vmem:[%s2719_s0 + $0x58] sm:$0xff]  ;;  %v43_v14 = vld [vmem:[%s2719_s0 + $0x90] sm:$0xff] }
   0x8   :  { %v37_v15 = vld [vmem:[%s2719_s0 + $0x60] sm:$0xff]  ;;  %v44_v16 = vld [vmem:[%s2719_s0 + $0x98] sm:$0xff]  ;;  %v38_v17 = vld [vmem:[%s2719_s0 + $0x68] sm:$0xff] }
   0x9   :  { %v57_v18 = vld [vmem:[%s2719_s0 + $0x100] sm:$0xff]  ;;  %v39_v20 = vld [vmem:[%s2719_s0 + $0x70] sm:$0xff]  ;;  %v58_v21 = vld [vmem:[%s2719_s0 + $0x108] sm:$0xff] }
   0xa   :  { %282 = vxpose.xlu0.b32.cont [2/16] (narrow) %v26_v1, 16  ;;  %v45_v19 = vld [vmem:[%s2719_s0 + $0xa0] sm:$0xff]  ;;  %345 = vxpose.xlu2.b32.start [1/16] (narrow) %v57_v18, 16  ;;  %v46_v22 = vld [vmem:[%s2719_s0 + $0xa8] sm:$0xff]  ;;  %v40_v23 = vld [vmem:[%s2719_s0 + $0x78] sm:$0xff] }
   0xb   :  { %v59_v24 = vld [vmem:[%s2719_s0 + $0x110] sm:$0xff]  ;;  %v73_v26 = vld [vmem:[%s2719_s0 + $0x180] sm:$0xff]  ;;  %v60_v27 = vld [vmem:[%s2719_s0 + $0x118] sm:$0xff] }
   0xc   :  { %v47_v25 = vld [vmem:[%s2719_s0 + $0xb0] sm:$0xff]  ;;  %v48_v28 = vld [vmem:[%s2719_s0 + $0xb8] sm:$0xff]  ;;  %v74_v29 = vld [vmem:[%s2719_s0 + $0x188] sm:$0xff] }
   0xd   :  { %v61_v30 = vld [vmem:[%s2719_s0 + $0x120] sm:$0xff]  ;;  %v75_v32 = vld [vmem:[%s2719_s0 + $0x190] sm:$0xff]  ;;  %v62_v33 = vld [vmem:[%s2719_s0 + $0x128] sm:$0xff] }
   0xe   :  { %v49_v31 = vld [vmem:[%s2719_s0 + $0xc0] sm:$0xff]  ;;  %v50_v34 = vld [vmem:[%s2719_s0 + $0xc8] sm:$0xff]  ;;  %v76_v35 = vld [vmem:[%s2719_s0 + $0x198] sm:$0xff] }
   0xf   :  { %314 = vxpose.xlu1.b32.cont [2/16] (narrow) %v42_v12, 16  ;;  %v63_v36 = vld [vmem:[%s2719_s0 + $0x130] sm:$0xff]  ;;  %v77_v38 = vld [vmem:[%s2719_s0 + $0x1a0] sm:$0xff]  ;;  %v64_v39 = vld [vmem:[%s2719_s0 + $0x138] sm:$0xff] }
  0x10   :  { %v51_v37 = vld [vmem:[%s2719_s0 + $0xd0] sm:$0xff]  ;;  %v52_v40 = vld [vmem:[%s2719_s0 + $0xd8] sm:$0xff]  ;;  %v78_v41 = vld [vmem:[%s2719_s0 + $0x1a8] sm:$0xff] }
  0x11   :  { %v65_v42 = vld [vmem:[%s2719_s0 + $0x140] sm:$0xff]  ;;  %v79_v44 = vld [vmem:[%s2719_s0 + $0x1b0] sm:$0xff]  ;;  %v66_v45 = vld [vmem:[%s2719_s0 + $0x148] sm:$0xff] }
  0x12   :  { %283 = vxpose.xlu0.b32.cont [3/16] (narrow) %v27_v2, 16  ;;  %346 = vxpose.xlu2.b32.cont [2/16] (narrow) %v58_v21, 16  ;;  %v53_v43 = vld [vmem:[%s2719_s0 + $0xe0] sm:$0xff]  ;;  %v54_v46 = vld [vmem:[%s2719_s0 + $0xe8] sm:$0xff]  ;;  %v80_v47 = vld [vmem:[%s2719_s0 + $0x1b8] sm:$0xff] }
  0x13   :  { %v67_v48 = vld [vmem:[%s2719_s0 + $0x150] sm:$0xff]  ;;  %v81_v50 = vld [vmem:[%s2719_s0 + $0x1c0] sm:$0xff]  ;;  %v68_v51 = vld [vmem:[%s2719_s0 + $0x158] sm:$0xff] }
  0x14   :  { %v55_v49 = vld [vmem:[%s2719_s0 + $0xf0] sm:$0xff]  ;;  %v56_v52 = vld [vmem:[%s2719_s0 + $0xf8] sm:$0xff]  ;;  %v82_v53 = vld [vmem:[%s2719_s0 + $0x1c8] sm:$0xff] }
  0x15   :  { %v69_v54 = vld [vmem:[%s2719_s0 + $0x160] sm:$0xff]  ;;  %v83_v56 = vld [vmem:[%s2719_s0 + $0x1d0] sm:$0xff]  ;;  %v70_v57 = vld [vmem:[%s2719_s0 + $0x168] sm:$0xff] }
  0x16   :  { %v89_v55 = vld [vmem:[%s2719_s0 + $0x200] sm:$0xff]  ;;  %v90_v58 = vld [vmem:[%s2719_s0 + $0x208] sm:$0xff]  ;;  %v84_v59 = vld [vmem:[%s2719_s0 + $0x1d8] sm:$0xff] }
  0x17   :  { %315 = vxpose.xlu1.b32.cont [3/16] (narrow) %v43_v14, 16  ;;  %v71_v60 = vld [vmem:[%s2719_s0 + $0x170] sm:$0xff]  ;;  %v85_v62 = vld [vmem:[%s2719_s0 + $0x1e0] sm:$0xff]  ;;  %v72_v63 = vld [vmem:[%s2719_s0 + $0x178] sm:$0xff] }
  0x18   :  { %v91_v61 = vld [vmem:[%s2719_s0 + $0x210] sm:$0xff]  ;;  %v92_v0 = vld [vmem:[%s2719_s0 + $0x218] sm:$0xff]  ;;  %v86_v1 = vld [vmem:[%s2719_s0 + $0x1e8] sm:$0xff] }
  0x19   :  { %v105_v2 = vld [vmem:[%s2719_s0 + $0x280] sm:$0xff]  ;;  %v96_v12 = vld [vmem:[%s2719_s0 + $0x238] sm:$0xff]  ;;  %v98_v18 = vld [vmem:[%s2719_s0 + $0x248] sm:$0xff] }
  0x1a   :  { %284 = vxpose.xlu0.b32.cont [4/16] (narrow) %v28_v3, 16  ;;  %347 = vxpose.xlu2.b32.cont [3/16] (narrow) %v59_v24, 16  ;;  %v93_v3 = vld [vmem:[%s2719_s0 + $0x220] sm:$0xff]  ;;  %v99_v21 = vld [vmem:[%s2719_s0 + $0x250] sm:$0xff]  ;;  %v100_v24 = vld [vmem:[%s2719_s0 + $0x258] sm:$0xff] }
  0x1b   :  { %v121_v10 = vld [vmem:[%s2719_s0 + $0x300] sm:$0xff] }
  0x1c   :  { %v109_v14 = vld [vmem:[%s2719_s0 + $0x2a0] sm:$0xff] }
  0x1f   :  { %316 = vxpose.xlu1.b32.cont [4/16] (narrow) %v44_v16, 16  ;;  %v123_v16 = vld [vmem:[%s2719_s0 + $0x310] sm:$0xff] }
  0x22   :  { %285 = vxpose.xlu0.b32.cont [5/16] (narrow) %v29_v4, 16  ;;  %348 = vxpose.xlu2.b32.cont [4/16] (narrow) %v60_v27, 16  ;;  %v87_v4 = vld [vmem:[%s2719_s0 + $0x1f0] sm:$0xff]  ;;  %v101_v27 = vld [vmem:[%s2719_s0 + $0x260] sm:$0xff] }
  0x27   :  { %317 = vxpose.xlu1.b32.cont [5/16] (narrow) %v45_v19, 16  ;;  %v124_v19 = vld [vmem:[%s2719_s0 + $0x318] sm:$0xff] }
  0x2a   :  { %286 = vxpose.xlu0.b32.cont [6/16] (narrow) %v30_v5, 16  ;;  %349 = vxpose.xlu2.b32.cont [5/16] (narrow) %v61_v30, 16  ;;  %v106_v5 = vld [vmem:[%s2719_s0 + $0x288] sm:$0xff] }
  0x2b   :  { %v102_v30 = vld [vmem:[%s2719_s0 + $0x268] sm:$0xff] }
  0x2f   :  { %318 = vxpose.xlu1.b32.cont [6/16] (narrow) %v46_v22, 16  ;;  %v125_v22 = vld [vmem:[%s2719_s0 + $0x320] sm:$0xff] }
  0x32   :  { %287 = vxpose.xlu0.b32.cont [7/16] (narrow) %v31_v6, 16  ;;  %350 = vxpose.xlu2.b32.cont [6/16] (narrow) %v62_v33, 16  ;;  %v94_v6 = vld [vmem:[%s2719_s0 + $0x228] sm:$0xff]  ;;  %v103_v33 = vld [vmem:[%s2719_s0 + $0x270] sm:$0xff] }
  0x37   :  { %319 = vxpose.xlu1.b32.cont [7/16] (narrow) %v47_v25, 16  ;;  %v126_v25 = vld [vmem:[%s2719_s0 + $0x328] sm:$0xff] }
  0x3a   :  { %288 = vxpose.xlu0.b32.cont [8/16] (narrow) %v32_v7, 16  ;;  %351 = vxpose.xlu2.b32.cont [7/16] (narrow) %v63_v36, 16  ;;  %v88_v7 = vld [vmem:[%s2719_s0 + $0x1f8] sm:$0xff] }
  0x3b   :  { %v104_v36 = vld [vmem:[%s2719_s0 + $0x278] sm:$0xff] }
  0x3f   :  { %320 = vxpose.xlu1.b32.cont [8/16] (narrow) %v48_v28, 16  ;;  %v127_v28 = vld [vmem:[%s2719_s0 + $0x330] sm:$0xff] }
  0x42   :  { %289 = vxpose.xlu0.b32.cont [9/16] (narrow) %v33_v8, 16  ;;  %352 = vxpose.xlu2.b32.cont [8/16] (narrow) %v64_v39, 16  ;;  %v107_v8 = vld [vmem:[%s2719_s0 + $0x290] sm:$0xff]  ;;  %v137_v39 = vld [vmem:[%s2719_s0 + $0x380] sm:$0xff] }
  0x47   :  { %321 = vxpose.xlu1.b32.cont [9/16] (narrow) %v49_v31, 16  ;;  %v128_v31 = vld [vmem:[%s2719_s0 + $0x338] sm:$0xff] }
  0x4a   :  { %290 = vxpose.xlu0.b32.cont [10/16] (narrow) %v34_v9, 16  ;;  %353 = vxpose.xlu2.b32.cont [9/16] (narrow) %v65_v42, 16  ;;  %v95_v9 = vld [vmem:[%s2719_s0 + $0x230] sm:$0xff]  ;;  %v138_v42 = vld [vmem:[%s2719_s0 + $0x388] sm:$0xff] }
  0x4f   :  { %322 = vxpose.xlu1.b32.cont [10/16] (narrow) %v50_v34, 16  ;;  %v129_v34 = vld [vmem:[%s2719_s0 + $0x340] sm:$0xff] }
  0x52   :  { %291 = vxpose.xlu0.b32.cont [11/16] (narrow) %v35_v11, 16  ;;  %354 = vxpose.xlu2.b32.cont [10/16] (narrow) %v66_v45, 16  ;;  %v108_v11 = vld [vmem:[%s2719_s0 + $0x298] sm:$0xff]  ;;  %v139_v45 = vld [vmem:[%s2719_s0 + $0x390] sm:$0xff] }
  0x57   :  { %323 = vxpose.xlu1.b32.cont [11/16] (narrow) %v51_v37, 16  ;;  %v130_v37 = vld [vmem:[%s2719_s0 + $0x348] sm:$0xff] }
  0x5a   :  { %292 = vxpose.xlu0.b32.cont [12/16] (narrow) %v36_v13, 16  ;;  %355 = vxpose.xlu2.b32.cont [11/16] (narrow) %v67_v48, 16  ;;  %v122_v13 = vld [vmem:[%s2719_s0 + $0x308] sm:$0xff]  ;;  %v140_v48 = vld [vmem:[%s2719_s0 + $0x398] sm:$0xff] }
  0x5f   :  { %324 = vxpose.xlu1.b32.cont [12/16] (narrow) %v52_v40, 16  ;;  %v131_v40 = vld [vmem:[%s2719_s0 + $0x350] sm:$0xff] }
  0x62   :  { %293 = vxpose.xlu0.b32.cont [13/16] (narrow) %v37_v15, 16  ;;  %356 = vxpose.xlu2.b32.cont [12/16] (narrow) %v68_v51, 16  ;;  %v97_v15 = vld [vmem:[%s2719_s0 + $0x240] sm:$0xff] }
  0x63   :  { %v141_v51 = vld [vmem:[%s2719_s0 + $0x3a0] sm:$0xff] }
  0x67   :  { %325 = vxpose.xlu1.b32.cont [13/16] (narrow) %v53_v43, 16  ;;  %v132_v43 = vld [vmem:[%s2719_s0 + $0x358] sm:$0xff] }
  0x6a   :  { %294 = vxpose.xlu0.b32.cont [14/16] (narrow) %v38_v17, 16  ;;  %357 = vxpose.xlu2.b32.cont [13/16] (narrow) %v69_v54, 16  ;;  %v110_v17 = vld [vmem:[%s2719_s0 + $0x2a8] sm:$0xff] }
  0x6b   :  { %v142_v54 = vld [vmem:[%s2719_s0 + $0x3a8] sm:$0xff] }
  0x6f   :  { %326 = vxpose.xlu1.b32.cont [14/16] (narrow) %v54_v46, 16  ;;  %v133_v46 = vld [vmem:[%s2719_s0 + $0x360] sm:$0xff] }
  0x72   :  { %295 = vxpose.xlu0.b32.cont [15/16] (narrow) %v39_v20, 16  ;;  %358 = vxpose.xlu2.b32.cont [14/16] (narrow) %v70_v57, 16  ;;  %v111_v20 = vld [vmem:[%s2719_s0 + $0x2b0] sm:$0xff] }
  0x73   :  { %v143_v57 = vld [vmem:[%s2719_s0 + $0x3b0] sm:$0xff] }
  0x77   :  { %327 = vxpose.xlu1.b32.cont [15/16] (narrow) %v55_v49, 16  ;;  %v134_v49 = vld [vmem:[%s2719_s0 + $0x368] sm:$0xff] }
  0x7a   :  { %296 = vxpose.xlu0.b32.end [16/16] (narrow) %v40_v23, 16  ;;  %359 = vxpose.xlu2.b32.cont [15/16] (narrow) %v71_v60, 16  ;;  %v112_v23 = vld [vmem:[%s2719_s0 + $0x2b8] sm:$0xff] }
  0x7b   :  { %v144_v60 = vld [vmem:[%s2719_s0 + $0x3b8] sm:$0xff] }
  0x7f   :  { %328 = vxpose.xlu1.b32.end [16/16] (narrow) %v56_v52, 16  ;;  %v135_v52 = vld [vmem:[%s2719_s0 + $0x370] sm:$0xff] }
  0x82   :  { %377 = vxpose.xlu0.b32.start [1/16] (narrow) %v73_v26, 16  ;;  %360 = vxpose.xlu2.b32.end [16/16] (narrow) %v72_v63, 16  ;;  %v113_v26 = vld [vmem:[%s2719_s0 + $0x2c0] sm:$0xff] }
  0x83   :  { %v145_v63 = vld [vmem:[%s2719_s0 + $0x3c0] sm:$0xff] }
  0x87   :  { %409 = vxpose.xlu1.b32.start [1/16] (narrow) %v89_v55, 16  ;;  %v136_v55 = vld [vmem:[%s2719_s0 + $0x378] sm:$0xff] }
  0x8a   :  { %378 = vxpose.xlu0.b32.cont [2/16] (narrow) %v74_v29, 16  ;;  %441 = vxpose.xlu2.b32.start [1/16] (narrow) %v105_v2, 16  ;;  %v114_v29 = vld [vmem:[%s2719_s0 + $0x2c8] sm:$0xff] }
  0x8b   :  { %v146_v2 = vld [vmem:[%s2719_s0 + $0x3c8] sm:$0xff] }
  0x8f   :  { %410 = vxpose.xlu1.b32.cont [2/16] (narrow) %v90_v58, 16  ;;  %v169_v58 = vld [vmem:[%s2719_s0 + $0x480] sm:$0xff] }
  0x92   :  { %379 = vxpose.xlu0.b32.cont [3/16] (narrow) %v75_v32, 16  ;;  %442 = vxpose.xlu2.b32.cont [2/16] (narrow) %v106_v5, 16  ;;  %v115_v32 = vld [vmem:[%s2719_s0 + $0x2d0] sm:$0xff] }
  0x93   :  { %v147_v5 = vld [vmem:[%s2719_s0 + $0x3d0] sm:$0xff] }
  0x97   :  { %411 = vxpose.xlu1.b32.cont [3/16] (narrow) %v91_v61, 16  ;;  %v170_v61 = vld [vmem:[%s2719_s0 + $0x488] sm:$0xff] }
  0x9a   :  { %380 = vxpose.xlu0.b32.cont [4/16] (narrow) %v76_v35, 16  ;;  %443 = vxpose.xlu2.b32.cont [3/16] (narrow) %v107_v8, 16  ;;  %v116_v35 = vld [vmem:[%s2719_s0 + $0x2d8] sm:$0xff] }
  0x9b   :  { %v148_v8 = vld [vmem:[%s2719_s0 + $0x3d8] sm:$0xff] }
  0x9f   :  { %412 = vxpose.xlu1.b32.cont [4/16] (narrow) %v92_v0, 16  ;;  %v171_v0 = vld [vmem:[%s2719_s0 + $0x490] sm:$0xff] }
  0xa2   :  { %381 = vxpose.xlu0.b32.cont [5/16] (narrow) %v77_v38, 16  ;;  %444 = vxpose.xlu2.b32.cont [4/16] (narrow) %v108_v11, 16  ;;  %v117_v38 = vld [vmem:[%s2719_s0 + $0x2e0] sm:$0xff] }
  0xa3   :  { %v149_v11 = vld [vmem:[%s2719_s0 + $0x3e0] sm:$0xff] }
  0xa7   :  { %413 = vxpose.xlu1.b32.cont [5/16] (narrow) %v93_v3, 16  ;;  %v172_v3 = vld [vmem:[%s2719_s0 + $0x498] sm:$0xff] }
  0xaa   :  { %382 = vxpose.xlu0.b32.cont [6/16] (narrow) %v78_v41, 16  ;;  %445 = vxpose.xlu2.b32.cont [5/16] (narrow) %v109_v14, 16  ;;  %v118_v41 = vld [vmem:[%s2719_s0 + $0x2e8] sm:$0xff] }
  0xab   :  { %v150_v14 = vld [vmem:[%s2719_s0 + $0x3e8] sm:$0xff] }
  0xaf   :  { %414 = vxpose.xlu1.b32.cont [6/16] (narrow) %v94_v6, 16  ;;  %v173_v6 = vld [vmem:[%s2719_s0 + $0x4a0] sm:$0xff] }
  0xb2   :  { %383 = vxpose.xlu0.b32.cont [7/16] (narrow) %v79_v44, 16  ;;  %446 = vxpose.xlu2.b32.cont [6/16] (narrow) %v110_v17, 16  ;;  %v119_v44 = vld [vmem:[%s2719_s0 + $0x2f0] sm:$0xff] }
  0xb3   :  { %v151_v17 = vld [vmem:[%s2719_s0 + $0x3f0] sm:$0xff] }
  0xb7   :  { %415 = vxpose.xlu1.b32.cont [7/16] (narrow) %v95_v9, 16  ;;  %v174_v9 = vld [vmem:[%s2719_s0 + $0x4a8] sm:$0xff] }
  0xba   :  { %384 = vxpose.xlu0.b32.cont [8/16] (narrow) %v80_v47, 16  ;;  %447 = vxpose.xlu2.b32.cont [7/16] (narrow) %v111_v20, 16  ;;  %v120_v47 = vld [vmem:[%s2719_s0 + $0x2f8] sm:$0xff] }
  0xbb   :  { %v152_v20 = vld [vmem:[%s2719_s0 + $0x3f8] sm:$0xff] }
  0xbf   :  { %416 = vxpose.xlu1.b32.cont [8/16] (narrow) %v96_v12, 16  ;;  %v175_v12 = vld [vmem:[%s2719_s0 + $0x4b0] sm:$0xff] }
  0xc2   :  { %385 = vxpose.xlu0.b32.cont [9/16] (narrow) %v81_v50, 16  ;;  %448 = vxpose.xlu2.b32.cont [8/16] (narrow) %v112_v23, 16  ;;  %v153_v50 = vld [vmem:[%s2719_s0 + $0x400] sm:$0xff] }
  0xc3   :  { %v185_v23 = vld [vmem:[%s2719_s0 + $0x500] sm:$0xff] }
  0xc7   :  { %417 = vxpose.xlu1.b32.cont [9/16] (narrow) %v97_v15, 16  ;;  %v176_v15 = vld [vmem:[%s2719_s0 + $0x4b8] sm:$0xff] }
  0xca   :  { %386 = vxpose.xlu0.b32.cont [10/16] (narrow) %v82_v53, 16  ;;  %449 = vxpose.xlu2.b32.cont [9/16] (narrow) %v113_v26, 16  ;;  %v154_v53 = vld [vmem:[%s2719_s0 + $0x408] sm:$0xff] }
  0xcb   :  { %v186_v26 = vld [vmem:[%s2719_s0 + $0x508] sm:$0xff] }
  0xcf   :  { %418 = vxpose.xlu1.b32.cont [10/16] (narrow) %v98_v18, 16  ;;  %v177_v18 = vld [vmem:[%s2719_s0 + $0x4c0] sm:$0xff] }
  0xd2   :  { %387 = vxpose.xlu0.b32.cont [11/16] (narrow) %v83_v56, 16  ;;  %450 = vxpose.xlu2.b32.cont [10/16] (narrow) %v114_v29, 16  ;;  %v155_v56 = vld [vmem:[%s2719_s0 + $0x410] sm:$0xff] }
  0xd3   :  { %v187_v29 = vld [vmem:[%s2719_s0 + $0x510] sm:$0xff] }
  0xd7   :  { %419 = vxpose.xlu1.b32.cont [11/16] (narrow) %v99_v21, 16  ;;  %v178_v21 = vld [vmem:[%s2719_s0 + $0x4c8] sm:$0xff] }
  0xda   :  { %388 = vxpose.xlu0.b32.cont [12/16] (narrow) %v84_v59, 16  ;;  %451 = vxpose.xlu2.b32.cont [11/16] (narrow) %v115_v32, 16  ;;  %v156_v59 = vld [vmem:[%s2719_s0 + $0x418] sm:$0xff]  ;;  %v329_v32 = vpop.trf.xlu1 }
  0xdf   :  { %420 = vxpose.xlu1.b32.cont [12/16] (narrow) %v100_v24, 16  ;;  %v179_v24 = vld [vmem:[%s2719_s0 + $0x4d0] sm:$0xff] }
  0xe2   :  { %389 = vxpose.xlu0.b32.cont [13/16] (narrow) %v85_v62, 16  ;;  %452 = vxpose.xlu2.b32.cont [12/16] (narrow) %v116_v35, 16  ;;  %v157_v62 = vld [vmem:[%s2719_s0 + $0x420] sm:$0xff]  ;;  %v182_v35 = vld [vmem:[%s2719_s0 + $0x4e8] sm:$0xff] }
  0xe7   :  { %421 = vxpose.xlu1.b32.cont [13/16] (narrow) %v101_v27, 16  ;;  %v180_v27 = vld [vmem:[%s2719_s0 + $0x4d8] sm:$0xff] }
  0xea   :  { %390 = vxpose.xlu0.b32.cont [14/16] (narrow) %v86_v1, 16  ;;  %453 = vxpose.xlu2.b32.cont [13/16] (narrow) %v117_v38, 16  ;;  %v158_v1 = vld [vmem:[%s2719_s0 + $0x428] sm:$0xff] }
  0xef   :  { %422 = vxpose.xlu1.b32.cont [14/16] (narrow) %v102_v30, 16  ;;  %v181_v30 = vld [vmem:[%s2719_s0 + $0x4e0] sm:$0xff] }
  0xf2   :  { %391 = vxpose.xlu0.b32.cont [15/16] (narrow) %v87_v4, 16  ;;  %454 = vxpose.xlu2.b32.cont [14/16] (narrow) %v118_v41, 16  ;;  %v159_v4 = vld [vmem:[%s2719_s0 + $0x430] sm:$0xff]  ;;  %v202_v41 = vld [vmem:[%s2719_s0 + $0x588] sm:$0xff] }
  0xf7   :  { %423 = vxpose.xlu1.b32.cont [15/16] (narrow) %v103_v33, 16  ;;  %v297_v33 = vpop.trf.xlu0 }
  0xfa   :  { %392 = vxpose.xlu0.b32.end [16/16] (narrow) %v88_v7, 16  ;;  %455 = vxpose.xlu2.b32.cont [15/16] (narrow) %v119_v44, 16  ;;  %v160_v7 = vld [vmem:[%s2719_s0 + $0x438] sm:$0xff]  ;;  %v190_v44 = vld [vmem:[%s2719_s0 + $0x528] sm:$0xff] }
  0xff   :  { %424 = vxpose.xlu1.b32.end [16/16] (narrow) %v104_v36, 16  ;;  %v201_v36 = vld [vmem:[%s2719_s0 + $0x580] sm:$0xff]  ;;  %v2073_v38 = vpop.trf.xlu0 }
 0x102   :  { %473 = vxpose.xlu0.b32.start [1/16] (narrow) %v121_v10, 16  ;;  %456 = vxpose.xlu2.b32.end [16/16] (narrow) %v120_v47, 16  ;;  %v161_v10 = vld [vmem:[%s2719_s0 + $0x440] sm:$0xff] }
 0x107   :  { %505 = vxpose.xlu1.b32.start [1/16] (narrow) %v137_v39, 16  ;;  %v189_v39 = vld [vmem:[%s2719_s0 + $0x520] sm:$0xff] }
 0x10a   :  { %474 = vxpose.xlu0.b32.cont [2/16] (narrow) %v122_v13, 16  ;;  %537 = vxpose.xlu2.b32.start [1/16] (narrow) %v153_v50, 16  ;;  %v162_v13 = vld [vmem:[%s2719_s0 + $0x448] sm:$0xff]  ;;  %v184_v50 = vld [vmem:[%s2719_s0 + $0x4f8] sm:$0xff] }
 0x10f   :  { %506 = vxpose.xlu1.b32.cont [2/16] (narrow) %v138_v42, 16 }
 0x112   :  { %475 = vxpose.xlu0.b32.cont [3/16] (narrow) %v123_v16, 16  ;;  %538 = vxpose.xlu2.b32.cont [2/16] (narrow) %v154_v53, 16  ;;  %v163_v16 = vld [vmem:[%s2719_s0 + $0x450] sm:$0xff]  ;;  %v808_v53 = vrot.slane %v329_v32, 4 }
 0x117   :  { %507 = vxpose.xlu1.b32.cont [3/16] (narrow) %v139_v45, 16  ;;  %v1562_v45 = vmov 1983009808  }
 0x11a   :  { %476 = vxpose.xlu0.b32.cont [4/16] (narrow) %v124_v19, 16  ;;  %539 = vxpose.xlu2.b32.cont [3/16] (narrow) %v155_v56, 16  ;;  %v164_v19 = vld [vmem:[%s2719_s0 + $0x458] sm:$0xff] }
 0x11f   :  { %508 = vxpose.xlu1.b32.cont [4/16] (narrow) %v140_v48, 16 }
 0x122   :  { %477 = vxpose.xlu0.b32.cont [5/16] (narrow) %v125_v22, 16  ;;  %540 = vxpose.xlu2.b32.cont [4/16] (narrow) %v156_v59, 16  ;;  %v165_v22 = vld [vmem:[%s2719_s0 + $0x460] sm:$0xff] }
 0x126   :  { %v393_v47 = vpop.trf.xlu0 }
 0x127   :  { %509 = vxpose.xlu1.b32.cont [5/16] (narrow) %v141_v51, 16  ;;  %v806_v48 = vrot.slane %v393_v47, 4 }
 0x12a   :  { %478 = vxpose.xlu0.b32.cont [6/16] (narrow) %v126_v25, 16  ;;  %541 = vxpose.xlu2.b32.cont [5/16] (narrow) %v157_v62, 16  ;;  %v166_v25 = vld [vmem:[%s2719_s0 + $0x468] sm:$0xff]  ;;  %v1563_v62 = vmov 1934713408  }
 0x12f   :  { %510 = vxpose.xlu1.b32.cont [6/16] (narrow) %v142_v54, 16 }
 0x132   :  { %479 = vxpose.xlu0.b32.cont [7/16] (narrow) %v127_v28, 16  ;;  %542 = vxpose.xlu2.b32.cont [6/16] (narrow) %v158_v1, 16  ;;  %v167_v28 = vld [vmem:[%s2719_s0 + $0x470] sm:$0xff] }
 0x137   :  { %511 = vxpose.xlu1.b32.cont [7/16] (narrow) %v143_v57, 16 }
 0x13a   :  { %480 = vxpose.xlu0.b32.cont [8/16] (narrow) %v128_v31, 16  ;;  %543 = vxpose.xlu2.b32.cont [7/16] (narrow) %v159_v4, 16  ;;  %v168_v31 = vld [vmem:[%s2719_s0 + $0x478] sm:$0xff] }
 0x13f   :  { %512 = vxpose.xlu1.b32.cont [8/16] (narrow) %v144_v60, 16  ;;  %v2105_v60 = vpop.trf.xlu0 }
 0x142   :  { %481 = vxpose.xlu0.b32.cont [9/16] (narrow) %v129_v34, 16  ;;  %544 = vxpose.xlu2.b32.cont [8/16] (narrow) %v160_v7, 16  ;;  %v188_v34 = vld [vmem:[%s2719_s0 + $0x518] sm:$0xff] }
 0x147   :  { %513 = vxpose.xlu1.b32.cont [9/16] (narrow) %v145_v63, 16  ;;  %v847_v63 = vunpack.c.l.s4 %v1563_v62 }
 0x14a   :  { %482 = vxpose.xlu0.b32.cont [10/16] (narrow) %v130_v37, 16  ;;  %545 = vxpose.xlu2.b32.cont [9/16] (narrow) %v161_v10, 16  ;;  %v2071_v37 = vpop.trf.xlu1  ;;  %v204_v10 = vld [vmem:[%s2719_s0 + $0x598] sm:$0xff] }
 0x14f   :  { %514 = vxpose.xlu1.b32.cont [10/16] (narrow) %v146_v2, 16 }
 0x152   :  { %483 = vxpose.xlu0.b32.cont [11/16] (narrow) %v131_v40, 16  ;;  %546 = vxpose.xlu2.b32.cont [10/16] (narrow) %v162_v13, 16  ;;  %v183_v40 = vld [vmem:[%s2719_s0 + $0x4f0] sm:$0xff]  ;;  %v425_v42 = vpop.trf.xlu1  ;;  %v192_v13 = vld [vmem:[%s2719_s0 + $0x538] sm:$0xff] }
 0x153   :  { %v820_v4 = vrot.slane %v425_v42, 4 }
 0x157   :  { %515 = vxpose.xlu1.b32.cont [11/16] (narrow) %v147_v5, 16 }
 0x15a   :  { %484 = vxpose.xlu0.b32.cont [12/16] (narrow) %v132_v43, 16  ;;  %547 = vxpose.xlu2.b32.cont [11/16] (narrow) %v163_v16, 16  ;;  %v361_v43 = vpop.trf.xlu2  ;;  %v2097_v56 = vpop.trf.xlu1 }
 0x15b   :  { %v793_v51 = vrot.slane %v361_v43, 4 }
 0x15d   :  { %v795_v59 = vsel %vm794_vm0, %v793_v51, %v297_v33 }
 0x15f   :  { %516 = vxpose.xlu1.b32.cont [12/16] (narrow) %v148_v8, 16  ;;  %v2116_v8 = vunpack.c.0.s8 %v847_v63 }
 0x162   :  { %485 = vxpose.xlu0.b32.cont [13/16] (narrow) %v133_v46, 16  ;;  %548 = vxpose.xlu2.b32.cont [12/16] (narrow) %v164_v19, 16  ;;  %v799_v46 = vunpack.c.l.s4 %v1562_v45  ;;  %v2099_v57 = vpop.trf.xlu2 }
 0x167   :  { %517 = vxpose.xlu1.b32.cont [13/16] (narrow) %v149_v11, 16 }
 0x16a   :  { %486 = vxpose.xlu0.b32.cont [14/16] (narrow) %v134_v49, 16  ;;  %549 = vxpose.xlu2.b32.cont [13/16] (narrow) %v165_v22, 16  ;;  %v2087_v49 = vunpack.c.0.s8 %v799_v46 }
 0x16c   :  { %v801_v1 = vperm.slane %v795_v59, %v2087_v49 }
 0x16e   :  { %v844_v7 = vrot.slane %v801_v1, 4 }
 0x16f   :  { %518 = vxpose.xlu1.b32.cont [14/16] (narrow) %v150_v14, 16 }
 0x172   :  { %487 = vxpose.xlu0.b32.cont [15/16] (narrow) %v135_v52, 16  ;;  %550 = vxpose.xlu2.b32.cont [14/16] (narrow) %v166_v25, 16  ;;  %v807_v52 = vsel %vm794_vm0, %v806_v48, %v329_v32 }
 0x173   :  { %v813_v54 = vperm.slane %v807_v52, %v2087_v49 }
 0x175   :  { %v842_v2 = vrot.slane %v813_v54, 4 }
 0x177   :  { %519 = vxpose.xlu1.b32.cont [15/16] (narrow) %v151_v17, 16 }
 0x17a   :  { %488 = vxpose.xlu0.b32.end [16/16] (narrow) %v136_v55, 16  ;;  %551 = vxpose.xlu2.b32.cont [15/16] (narrow) %v167_v28, 16  ;;  %v203_v55 = vld [vmem:[%s2719_s0 + $0x590] sm:$0xff] }
 0x17f   :  { %520 = vxpose.xlu1.b32.end [16/16] (narrow) %v152_v20, 16 }
 0x182   :  { %569 = vxpose.xlu0.b32.start [1/16] (narrow) %v169_v58, 16  ;;  %552 = vxpose.xlu2.b32.end [16/16] (narrow) %v168_v31, 16  ;;  %v191_v58 = vld [vmem:[%s2719_s0 + $0x530] sm:$0xff] }
 0x187   :  { %601 = vxpose.xlu1.b32.start [1/16] (narrow) %v185_v23, 16 }
 0x18a   :  { %570 = vxpose.xlu0.b32.cont [2/16] (narrow) %v170_v61, 16  ;;  %633 = vxpose.xlu2.b32.start [1/16] (narrow) %v201_v36, 16  ;;  %v796_v61 = vrot.slane %v297_v33, 4 }
 0x18f   :  { %602 = vxpose.xlu1.b32.cont [2/16] (narrow) %v186_v26, 16 }
 0x192   :  { %571 = vxpose.xlu0.b32.cont [3/16] (narrow) %v171_v0, 16  ;;  %634 = vxpose.xlu2.b32.cont [2/16] (narrow) %v202_v41, 16  ;;  %v809_v0 = vsel %vm794_vm0, %v393_v47, %v808_v53 }
 0x193   :  { %v2113_v5 = vperm.slane %v809_v0, %v2087_v49 }
 0x197   :  { %603 = vxpose.xlu1.b32.cont [3/16] (narrow) %v187_v29, 16  ;;  %v266_v29 = vld [vmem:[%s2719_s0 + $0x788] sm:$0xff] }
 0x19a   :  { %572 = vxpose.xlu0.b32.cont [4/16] (narrow) %v172_v3, 16  ;;  %635 = vxpose.xlu2.b32.cont [3/16] (narrow) %v203_v55, 16  ;;  %v265_v3 = vld [vmem:[%s2719_s0 + $0x780] sm:$0xff] }
 0x19f   :  { %604 = vxpose.xlu1.b32.cont [4/16] (narrow) %v188_v34, 16 }
 0x1a2   :  { %573 = vxpose.xlu0.b32.cont [5/16] (narrow) %v173_v6, 16  ;;  %v797_v6 = vsel %vm794_vm0, %v361_v43, %v796_v61  ;;  %636 = vxpose.xlu2.b32.cont [4/16] (narrow) %v204_v10, 16  ;;  %v193_v43 = vld [vmem:[%s2719_s0 + $0x540] sm:$0xff]  ;;  %v267_v61 = vld [vmem:[%s2719_s0 + $0x790] sm:$0xff] }
 0x1a3   :  { %v805_v17 = vperm.slane %v797_v6, %v2087_v49 }
 0x1a5   :  { %v856_v48 = vrot.slane %v805_v17, 4 }
 0x1a6   :  { %v489_v16 = vpop.trf.xlu0 }
 0x1a7   :  { %605 = vxpose.xlu1.b32.cont [5/16] (narrow) %v189_v39, 16  ;;  %v818_v19 = vrot.slane %v489_v16, 4  ;;  %v821_v20 = vsel %vm794_vm0, %v489_v16, %v820_v4 }
 0x1a8   :  { %v829_v28 = vperm.slane %v821_v20, %v2087_v49 }
 0x1aa   :  { %574 = vxpose.xlu0.b32.cont [6/16] (narrow) %v174_v9, 16  ;;  %v843_v9 = vsel %vm794_vm0, %v842_v2, %v801_v1  ;;  %v880_v41 = vrot.slane %v829_v28, 4 }
 0x1ab   :  { %v521_v11 = vpop.trf.xlu1  ;;  %v849_v22 = vperm.slane %v843_v9, %v2116_v8 }
 0x1ac   :  { %v830_v14 = vrot.slane %v521_v11, 4 }
 0x1ad   :  { %v892_v34 = vrot.slane %v849_v22, 4 }
 0x1af   :  { %606 = vxpose.xlu1.b32.cont [6/16] (narrow) %v190_v44, 16  ;;  %v1024_v44 = vrot.slane %v2105_v60, 4 }
 0x1b1   :  { %v1025_v62 = vsel %vm794_vm0, %v1024_v44, %v2071_v37 }
 0x1b2   :  { %575 = vxpose.xlu0.b32.cont [7/16] (narrow) %v175_v12, 16  ;;  %v457_v12 = vpop.trf.xlu2  ;;  %v1029_v9 = vperm.slane %v1025_v62, %v2087_v49  ;;  %v271_v62 = vld [vmem:[%s2719_s0 + $0x7b0] sm:$0xff] }
 0x1b3   :  { %v831_v23 = vsel %vm794_vm0, %v830_v14, %v457_v12  ;;  %v522_v51 = vpop.trf.xlu1 }
 0x1b4   :  { %v837_v25 = vperm.slane %v831_v23, %v2087_v49  ;;  %v1036_v1 = vrot.slane %v522_v51, 4  ;;  %v1042_v23 = vrot.slane %v1029_v9, 4 }
 0x1b6   :  { %v866_v31 = vrot.slane %v837_v25, 4 }
 0x1b7   :  { %607 = vxpose.xlu1.b32.cont [7/16] (narrow) %v191_v58, 16  ;;  %v1018_v58 = vrot.slane %v2099_v57, 4 }
 0x1b9   :  { %v1019_v37 = vsel %vm794_vm0, %v1018_v58, %v2073_v38 }
 0x1ba   :  { %576 = vxpose.xlu0.b32.cont [8/16] (narrow) %v176_v15, 16  ;;  %v832_v15 = vrot.slane %v457_v12, 4  ;;  %v458_v12 = vpop.trf.xlu2 }
 0x1bb   :  { %v1037_v38 = vsel %vm794_vm0, %v1036_v1, %v458_v12 }
 0x1bf   :  { %608 = vxpose.xlu1.b32.cont [8/16] (narrow) %v192_v13, 16  ;;  %v194_v13 = vld [vmem:[%s2719_s0 + $0x548] sm:$0xff] }
 0x1c2   :  { %577 = vxpose.xlu0.b32.cont [9/16] (narrow) %v177_v18, 16  ;;  %v854_v18 = vrot.slane %v2113_v5, 4 }
 0x1c4   :  { %v855_v36 = vsel %vm794_vm0, %v854_v18, %v805_v17  ;;  %v1041_v18 = vperm.slane %v1037_v38, %v2087_v49 }
 0x1c5   :  { %v861_v52 = vperm.slane %v855_v36, %v2116_v8 }
 0x1c7   :  { %609 = vxpose.xlu1.b32.cont [9/16] (narrow) %v193_v43, 16  ;;  %v900_v4 = vrot.slane %v861_v52, 4 }
 0x1ca   :  { %578 = vxpose.xlu0.b32.cont [10/16] (narrow) %v178_v21, 16  ;;  %v845_v21 = vsel %vm794_vm0, %v813_v54, %v844_v7 }
 0x1cb   :  { %v853_v33 = vperm.slane %v845_v21, %v2116_v8 }
 0x1cd   :  { %v896_v53 = vrot.slane %v853_v33, 4 }
 0x1cf   :  { %610 = vxpose.xlu1.b32.cont [10/16] (narrow) %v194_v13, 16 }
 0x1d2   :  { %579 = vxpose.xlu0.b32.cont [11/16] (narrow) %v179_v24, 16  ;;  %v833_v24 = vsel %vm794_vm0, %v521_v11, %v832_v15  ;;  %v206_v11 = vld [vmem:[%s2719_s0 + $0x5a8] sm:$0xff] }
 0x1d3   :  { %v841_v26 = vperm.slane %v833_v24, %v2087_v49 }
 0x1d5   :  { %v878_v32 = vrot.slane %v841_v26, 4  ;;  %v881_v59 = vsel %vm794_vm0, %v841_v26, %v880_v41  ;;  %v269_v41 = vld [vmem:[%s2719_s0 + $0x7a0] sm:$0xff] }
 0x1d6   :  { %v889_v6 = vperm.slane %v881_v59, %v2116_v8 }
 0x1d8   :  { %v902_v21 = vrot.slane %v889_v6, 4 }
 0x1da   :  { %580 = vxpose.xlu0.b32.cont [12/16] (narrow) %v180_v27, 16  ;;  %v819_v27 = vsel %vm794_vm0, %v818_v19, %v425_v42  ;;  %v205_v42 = vld [vmem:[%s2719_s0 + $0x5a0] sm:$0xff]  ;;  %v1023_v19 = vperm.slane %v1019_v37, %v2087_v49 }
 0x1db   :  { %637 = vxpose.xlu2.b32.cont [5/16] (narrow) %v205_v42, 16 }
 0x1e2   :  { %581 = vxpose.xlu0.b32.cont [13/16] (narrow) %v181_v30, 16  ;;  %v825_v30 = vperm.slane %v819_v27, %v2087_v49  ;;  %v268_v27 = vld [vmem:[%s2719_s0 + $0x798] sm:$0xff] }
 0x1e3   :  { %638 = vxpose.xlu2.b32.cont [6/16] (narrow) %v206_v11, 16 }
 0x1e4   :  { %v867_v39 = vsel %vm794_vm0, %v866_v31, %v825_v30 }
 0x1e5   :  { %v873_v46 = vperm.slane %v867_v39, %v2116_v8 }
 0x1e7   :  { %v890_v54 = vrot.slane %v873_v46, 4  ;;  %v2157_v55 = vsel %vm794_vm0, %v873_v46, %v892_v34  ;;  %v195_v34 = vld [vmem:[%s2719_s0 + $0x550] sm:$0xff]  ;;  %v196_v46 = vld [vmem:[%s2719_s0 + $0x558] sm:$0xff] }
 0x1e8   :  { %611 = vxpose.xlu1.b32.cont [11/16] (narrow) %v195_v34, 16  ;;  %v273_v34 = vld [vmem:[%s2719_s0 + $0x7c0] sm:$0xff] }
 0x1e9   :  { %v2167_v63 = vsel %vm794_vm0, %v890_v54, %v849_v22 }
 0x1ea   :  { %582 = vxpose.xlu0.b32.cont [14/16] (narrow) %v182_v35, 16  ;;  %v868_v35 = vrot.slane %v825_v30, 4  ;;  %v1098_v57 = vmax.f32 %v2167_v63, %v2157_v55 }
 0x1ec   :  { %v869_v45 = vsel %vm794_vm0, %v837_v25, %v868_v35  ;;  %v1048_v25 = vrot.slane %v1041_v18, 4 }
 0x1f0   :  { %612 = vxpose.xlu1.b32.cont [12/16] (narrow) %v196_v46, 16 }
 0x1f2   :  { %583 = vxpose.xlu0.b32.cont [15/16] (narrow) %v183_v40, 16  ;;  %v879_v40 = vsel %vm794_vm0, %v878_v32, %v829_v28  ;;  %v1043_v32 = vsel %vm794_vm0, %v1042_v23, %v1023_v19 }
 0x1f3   :  { %v885_v47 = vperm.slane %v879_v40, %v2116_v8  ;;  %v1047_v36 = vperm.slane %v1043_v32, %v2116_v8 }
 0x1f5   :  { %v898_v0 = vrot.slane %v885_v47, 4  ;;  %v2199_v20 = vsel %vm794_vm0, %v885_v47, %v900_v4  ;;  %v1056_v43 = vrot.slane %v1047_v36, 4  ;;  %v198_v4 = vld [vmem:[%s2719_s0 + $0x568] sm:$0xff] }
 0x1f7   :  { %v2191_v14 = vsel %vm794_vm0, %v898_v0, %v861_v52  ;;  %v209_v52 = vld [vmem:[%s2719_s0 + $0x5c0] sm:$0xff] }
 0x1fa   :  { %584 = vxpose.xlu0.b32.end [16/16] (narrow) %v184_v50, 16  ;;  %v877_v50 = vperm.slane %v869_v45, %v2116_v8  ;;  %v208_v45 = vld [vmem:[%s2719_s0 + $0x5b8] sm:$0xff] }
 0x1fc   :  { %v894_v60 = vrot.slane %v877_v50, 4  ;;  %v2178_v7 = vsel %vm794_vm0, %v877_v50, %v896_v53  ;;  %v270_v50 = vld [vmem:[%s2719_s0 + $0x7a8] sm:$0xff]  ;;  %v197_v53 = vld [vmem:[%s2719_s0 + $0x560] sm:$0xff] }
 0x1fd   :  { %613 = vxpose.xlu1.b32.cont [13/16] (narrow) %v197_v53, 16  ;;  %v274_v53 = vld [vmem:[%s2719_s0 + $0x7c8] sm:$0xff] }
 0x1fe   :  { %v2170_v2 = vsel %vm794_vm0, %v894_v60, %v853_v33  ;;  %v207_v33 = vld [vmem:[%s2719_s0 + $0x5b0] sm:$0xff] }
 0x1ff   :  { %v1100_v10 = vmax.f32 %v1098_v57, %v2170_v2  ;;  %639 = vxpose.xlu2.b32.cont [7/16] (narrow) %v207_v33, 16  ;;  %v2269_v57 = vld [vmem:[%s2720_s1] sm:$0xff] }
 0x200   :  { %vm1124_vm1 = vcmp.eq.s32.totalorder %v2269_v57, 0  ;;  %vm1136_vm2 = vcmp.eq.s32.totalorder %v2269_v57, 1  ;;  %vm1148_vm3 = vcmp.eq.s32.totalorder %v2269_v57, 2  ;;  %vm1160_vm4 = vcmp.eq.s32.totalorder %v2269_v57, 3 }
 0x201   :  { %v1102_v17 = vmax.f32 %v1100_v10, %v2178_v7  ;;  %vm1172_vm5 = vcmp.eq.s32.totalorder %v2269_v57, 4  ;;  %vm1184_vm6 = vcmp.eq.s32.totalorder %v2269_v57, 5  ;;  %vm1196_vm7 = vcmp.eq.s32.totalorder %v2269_v57, 6 }
 0x202   :  { %761 = vxpose.xlu0.b32.start [1/16] (narrow) %v265_v3, 16  ;;  %v857_v3 = vsel %vm794_vm0, %v2113_v5, %v856_v48  ;;  %v490_v5 = vpop.trf.xlu0  ;;  %vm1208_vm8 = vcmp.eq.s32.totalorder %v2269_v57, 7  ;;  %vm1220_vm9 = vcmp.eq.s32.totalorder %v2269_v57, 8  ;;  %vm1232_vm10 = vcmp.eq.s32.totalorder %v2269_v57, 9 }
 0x203   :  { %v1030_v15 = vrot.slane %v490_v5, 4  ;;  %v865_v16 = vperm.slane %v857_v3, %v2116_v8  ;;  %v1104_v24 = vmax.f32 %v1102_v17, %v2191_v14  ;;  %v210_v3 = vld [vmem:[%s2719_s0 + $0x5c8] sm:$0xff]  ;;  %v272_v17 = vld [vmem:[%s2719_s0 + $0x7b8] sm:$0xff] }
 0x205   :  { %v1031_v22 = vsel %vm794_vm0, %v1030_v15, %v2097_v56  ;;  %v1106_v28 = vmax.f32 %v1104_v24, %v2199_v20  ;;  %v904_v30 = vrot.slane %v865_v16, 4  ;;  %v2211_v31 = vsel %vm794_vm0, %v902_v21, %v865_v16  ;;  %614 = vxpose.xlu1.b32.cont [14/16] (narrow) %v198_v4, 16 }
 0x206   :  { %v1035_v26 = vperm.slane %v1031_v22, %v2087_v49  ;;  %v1126_v15 = vsel %vm1124_vm1, %v2167_v63, 0.0 }
 0x207   :  { %v1108_v35 = vmax.f32 %v1106_v28, %v2211_v31  ;;  %v2224_v39 = vsel %vm794_vm0, %v889_v6, %v904_v30  ;;  %640 = vxpose.xlu2.b32.cont [8/16] (narrow) %v208_v45, 16  ;;  %v1138_v24 = vsel %vm1136_vm2, %v2157_v55, %v1126_v15  ;;  %v278_v15 = vld [vmem:[%s2719_s0 + $0x7e8] sm:$0xff] }
 0x209   :  { %v1110_v42 = vmax.f32 %v1108_v35, %v2224_v39 }
 0x20a   :  { %762 = vxpose.xlu0.b32.cont [2/16] (narrow) %v266_v29, 16  ;;  %v1049_v29 = vsel %vm794_vm0, %v1048_v25, %v1035_v26  ;;  %v211_v25 = vld [vmem:[%s2719_s0 + $0x5d0] sm:$0xff] }
 0x20b   :  { %v1053_v56 = vperm.slane %v1049_v29, %v2116_v8  ;;  %v199_v26 = vld [vmem:[%s2719_s0 + $0x570] sm:$0xff] }
 0x20d   :  { %v1054_v40 = vrot.slane %v1053_v56, 4  ;;  %v2241_v48 = vsel %vm794_vm0, %v1053_v56, %v1056_v43  ;;  %615 = vxpose.xlu1.b32.cont [15/16] (narrow) %v199_v26, 16 }
 0x20f   :  { %v2231_v44 = vsel %vm794_vm0, %v1054_v40, %v1047_v36  ;;  %641 = vxpose.xlu2.b32.cont [9/16] (narrow) %v209_v52, 16 }
 0x210   :  { %v1112_v47 = vmax.f32 %v1110_v42, %v2231_v44  ;;  %v200_v42 = vld [vmem:[%s2719_s0 + $0x578] sm:$0xff] }
 0x212   :  { %763 = vxpose.xlu0.b32.cont [3/16] (narrow) %v267_v61, 16  ;;  %v2247_v51 = vmax.f32 %v1112_v47, %v2241_v48 }
 0x214   :  { %v1116_v54 = vsub.f32 %v2167_v63, %v2247_v51  ;;  %v1128_v58 = vsub.f32 %v2157_v55, %v2247_v51  ;;  %v1140_v61 = vsub.f32 %v2170_v2, %v2247_v51  ;;  %v1152_v1 = vsub.f32 %v2178_v7, %v2247_v51 }
 0x215   :  { %v1164_v37 = vsub.f32 %v2191_v14, %v2247_v51  ;;  %v1176_v10 = vsub.f32 %v2199_v20, %v2247_v51  ;;  %v1212_v11 = vsub.f32 %v2231_v44, %v2247_v51  ;;  %v1188_v13 = vsub.f32 %v2211_v31, %v2247_v51  ;;  %616 = vxpose.xlu1.b32.end [16/16] (narrow) %v200_v42, 16 }
 0x216   :  { %v1118_v59 = vmul.f32 1.442695, %v1116_v54  ;;  %v1130_v60 = vmul.f32 1.442695, %v1128_v58  ;;  %v1142_v0 = vmul.f32 1.442695, %v1140_v61  ;;  %v1224_v16 = vsub.f32 %v2241_v48, %v2247_v51 }
 0x217   :  { %v1154_v6 = vmul.f32 1.442695, %v1152_v1  ;;  %642 = vxpose.xlu2.b32.cont [10/16] (narrow) %v210_v3, 16  ;;  %v1166_v9 = vmul.f32 1.442695, %v1164_v37  ;;  %v1200_v22 = vsub.f32 %v2224_v39, %v2247_v51  ;;  %v1150_v55 = vsel %vm1148_vm3, %v2170_v2, %v1138_v24  ;;  %v212_v2 = vld [vmem:[%s2719_s0 + $0x5d8] sm:$0xff] }
 0x218   :  { %1460 = vpow2.f32 %v1118_v59  ;;  %v1178_v5 = vmul.f32 1.442695, %v1176_v10  ;;  %v1190_v21 = vmul.f32 1.442695, %v1188_v13  ;;  %v1214_v23 = vmul.f32 1.442695, %v1212_v11 }
 0x219   :  { %1462 = vpow2.f32 %v1130_v60  ;;  %v1202_v28 = vmul.f32 1.442695, %v1200_v22  ;;  %v1226_v29 = vmul.f32 1.442695, %v1224_v16  ;;  %v1162_v36 = vsel %vm1160_vm4, %v2178_v7, %v1150_v55  ;;  %v275_v60 = vld [vmem:[%s2719_s0 + $0x7d0] sm:$0xff]  ;;  %v214_v1 = vld [vmem:[%s2719_s0 + $0x5e8] sm:$0xff] }
 0x21a   :  { %764 = vxpose.xlu0.b32.cont [4/16] (narrow) %v268_v27, 16  ;;  %1464 = vpow2.f32 %v1142_v0  ;;  %v1174_v46 = vsel %vm1172_vm5, %v2191_v14, %v1162_v36  ;;  %v213_v14 = vld [vmem:[%s2719_s0 + $0x5e0] sm:$0xff]  ;;  %v276_v3 = vld [vmem:[%s2719_s0 + $0x7d8] sm:$0xff]  ;;  %v235_v37 = vld [vmem:[%s2719_s0 + $0x690] sm:$0xff] }
 0x21b   :  { %1466 = vpow2.f32 %v1154_v6  ;;  %v215_v6 = vld [vmem:[%s2719_s0 + $0x5f0] sm:$0xff]  ;;  %v277_v10 = vld [vmem:[%s2719_s0 + $0x7e0] sm:$0xff]  ;;  %v236_v13 = vld [vmem:[%s2719_s0 + $0x698] sm:$0xff] }
 0x21c   :  { %1468 = vpow2.f32 %v1166_v9 }
 0x21d   :  { %1470 = vpow2.f32 %v1178_v5  ;;  %v216_v5 = vld [vmem:[%s2719_s0 + $0x5f8] sm:$0xff] }
 0x21e   :  { %v1461_v12 = vpop.eup %1460  ;;  %1472 = vpow2.f32 %v1190_v21 }
 0x21f   :  { %v1463_v38 = vpop.eup %1462  ;;  %643 = vxpose.xlu2.b32.cont [11/16] (narrow) %v211_v25, 16  ;;  %1474 = vpow2.f32 %v1202_v28  ;;  %v279_v25 = vld [vmem:[%s2719_s0 + $0x7f0] sm:$0xff]  ;;  %v238_v28 = vld [vmem:[%s2719_s0 + $0x6a8] sm:$0xff] }
 0x220   :  { %v1465_v18 = vpop.eup %1464  ;;  %v1134_v19 = vadd.f32 %v1463_v38, %v1461_v12  ;;  %1476 = vpow2.f32 %v1214_v23 }
 0x221   :  { %v1467_v63 = vpop.eup %1466  ;;  %1478 = vpow2.f32 %v1226_v29 }
 0x222   :  { %765 = vxpose.xlu0.b32.cont [5/16] (narrow) %v269_v41, 16  ;;  %v1146_v27 = vadd.f32 %v1465_v18, %v1134_v19  ;;  %v1469_v30 = vpop.eup %1468  ;;  %v237_v18 = vld [vmem:[%s2719_s0 + $0x6a0] sm:$0xff] }
 0x223   :  { %v1471_v32 = vpop.eup %1470 }
 0x224   :  { %v1158_v56 = vadd.f32 %v1467_v63, %v1146_v27  ;;  %v1473_v35 = vpop.eup %1472  ;;  %v250_v27 = vld [vmem:[%s2719_s0 + $0x708] sm:$0xff] }
 0x225   :  { %v1475_v41 = vpop.eup %1474 }
 0x226   :  { %v1170_v33 = vadd.f32 %v1469_v30, %v1158_v56  ;;  %v1477_v45 = vpop.eup %1476 }
 0x227   :  { %644 = vxpose.xlu2.b32.cont [12/16] (narrow) %v212_v2, 16  ;;  %v1479_v47 = vpop.eup %1478  ;;  %v239_v2 = vld [vmem:[%s2719_s0 + $0x6b0] sm:$0xff] }
 0x228   :  { %v1182_v40 = vadd.f32 %v1471_v32, %v1170_v33 }
 0x22a   :  { %766 = vxpose.xlu0.b32.cont [6/16] (narrow) %v270_v50, 16  ;;  %v1194_v43 = vadd.f32 %v1473_v35, %v1182_v40  ;;  %v1186_v50 = vsel %vm1184_vm6, %v2199_v20, %v1174_v46  ;;  %v233_v20 = vld [vmem:[%s2719_s0 + $0x680] sm:$0xff] }
 0x22b   :  { %v1198_v58 = vsel %vm1196_vm7, %v2211_v31, %v1186_v50  ;;  %697 = vxpose.xlu1.b32.start [1/16] (narrow) %v233_v20, 16 }
 0x22c   :  { %v1206_v7 = vadd.f32 %v1475_v41, %v1194_v43  ;;  %v1210_v59 = vsel %vm1208_vm8, %v2224_v39, %v1198_v58  ;;  %v234_v39 = vld [vmem:[%s2719_s0 + $0x688] sm:$0xff]  ;;  %v251_v41 = vld [vmem:[%s2719_s0 + $0x710] sm:$0xff] }
 0x22d   :  { %v1222_v31 = vsel %vm1220_vm9, %v2231_v44, %v1210_v59 }
 0x22e   :  { %v1218_v52 = vadd.f32 %v1477_v45, %v1206_v7  ;;  %v1234_v0 = vsel %vm1232_vm10, %v2241_v48, %v1222_v31  ;;  %v217_v7 = vld [vmem:[%s2719_s0 + $0x600] sm:$0xff]  ;;  %v218_v31 = vld [vmem:[%s2719_s0 + $0x608] sm:$0xff] }
 0x22f   :  { %645 = vxpose.xlu2.b32.cont [13/16] (narrow) %v213_v14, 16 }
 0x230   :  { %v1230_v54 = vadd.f32 %v1479_v47, %v1218_v52  ;;  %v252_v52 = vld [vmem:[%s2719_s0 + $0x718] sm:$0xff] }
 0x232   :  { %767 = vxpose.xlu0.b32.cont [7/16] (narrow) %v271_v62, 16  ;;  %1480 = vlog2.f32 %v1230_v54 }
 0x233   :  { %698 = vxpose.xlu1.b32.cont [2/16] (narrow) %v234_v39, 16 }
 0x237   :  { %646 = vxpose.xlu2.b32.cont [14/16] (narrow) %v214_v1, 16 }
 0x238   :  { %v1481_v61 = vpop.eup %1480 }
 0x239   :  { %v1237_v62 = vmul.f32 0.6931472, %v1481_v61  ;;  %v253_v61 = vld [vmem:[%s2719_s0 + $0x720] sm:$0xff] }
 0x23a   :  { %768 = vxpose.xlu0.b32.cont [8/16] (narrow) %v272_v17, 16  ;;  %v249_v17 = vld [vmem:[%s2719_s0 + $0x700] sm:$0xff] }
 0x23b   :  { %v1240_v44 = vadd.f32 %v1237_v62, %v2247_v51  ;;  %699 = vxpose.xlu1.b32.cont [3/16] (narrow) %v235_v37, 16  ;;  %v241_v62 = vld [vmem:[%s2719_s0 + $0x6c0] sm:$0xff] }
 0x23d   :  { %v1242_v57 = vsub.f32 %v1240_v44, %v1234_v0  ;;  %v219_v44 = vld [vmem:[%s2719_s0 + $0x610] sm:$0xff] }
 0x23f   :  { %v2351_v4 = vadd.f32 -2.3025851, %v1242_v57  ;;  %647 = vxpose.xlu2.b32.cont [15/16] (narrow) %v215_v6, 16 }
 0x241   :  { %v1246_v48 = vmax.f32 %v2351_v4, -0.7357589 }
 0x242   :  { %769 = vxpose.xlu0.b32.cont [9/16] (narrow) %v273_v34, 16  ;;  %v280_v34 = vld [vmem:[%s2719_s0 + $0x7f8] sm:$0xff] }
 0x243   :  { %v2360_v51 = vmul.f32 0.5, %v1246_v48  ;;  %700 = vxpose.xlu1.b32.cont [4/16] (narrow) %v236_v13, 16 }
 0x245   :  { %v1250_v9 = vmul.f32 2.7182817, %v2360_v51  ;;  %v1298_v16 = vmax.f32 %v2360_v51, -0.999  ;;  %v1296_v21 = vmax.f32 %v2360_v51, 1e-30 }
 0x246   :  { %vm1294_vm11 = vcmp.ge.f32.partialorder %v2360_v51, 3.0  ;;  %vm1318_vm14 = vcmp.lt.f32.partialorder %v2360_v51, -0.25 }
 0x247   :  { %v1252_v11 = vadd.f32 1.0, %v1250_v9  ;;  %648 = vxpose.xlu2.b32.end [16/16] (narrow) %v216_v5, 16  ;;  %v1300_v22 = vadd.f32 1.0, %v1298_v16  ;;  %v254_v9 = vld [vmem:[%s2719_s0 + $0x728] sm:$0xff] }
 0x249   :  { %v1254_v12 = vmul.f32 2.0, %v1252_v11  ;;  %v1302_v63 = vsel %vm1294_vm11, %v1296_v21, %v1300_v22  ;;  %v221_v22 = vld [vmem:[%s2719_s0 + $0x620] sm:$0xff] }
 0x24a   :  { %770 = vxpose.xlu0.b32.cont [10/16] (narrow) %v274_v53, 16  ;;  %v240_v53 = vld [vmem:[%s2719_s0 + $0x6b8] sm:$0xff] }
 0x24b   :  { %v1256_v38 = vmax.f32 %v1254_v12, 0.0  ;;  %701 = vxpose.xlu1.b32.cont [5/16] (narrow) %v237_v18, 16  ;;  %v243_v18 = vld [vmem:[%s2719_s0 + $0x6d0] sm:$0xff] }
 0x24d   :  { %1482 = vrsqrt.f32 %v1256_v38  ;;  %vm1265_vm12 = vcmp.eq.f32.partialorder %v1256_v38, inf  ;;  %v1268_v33 = vand.u32 2147483648, %v1256_v38  ;;  %vm1267_vm13 = vcmp.eq.f32.partialorder %v1256_v38, 0.0 }
 0x24e   :  { %1484 = vlog2.f32 %v1302_v63 }
 0x24f   :  { %729 = vxpose.xlu2.b32.start [1/16] (narrow) %v249_v17, 16  ;;  %v255_v17 = vld [vmem:[%s2719_s0 + $0x730] sm:$0xff] }
 0x252   :  { %771 = vxpose.xlu0.b32.cont [11/16] (narrow) %v275_v60, 16 }
 0x253   :  { %v1483_v19 = vpop.eup %1482  ;;  %702 = vxpose.xlu1.b32.cont [6/16] (narrow) %v238_v28, 16 }
 0x254   :  { %v1259_v23 = vmul.f32 %v1483_v19, %v1256_v38  ;;  %v1485_v30 = vpop.eup %1484 }
 0x255   :  { %v1305_v55 = vmul.f32 0.6931472, %v1485_v30 }
 0x256   :  { %v1260_v24 = vmul.f32 %v1483_v19, %v1259_v23 }
 0x257   :  { %730 = vxpose.xlu2.b32.cont [2/16] (narrow) %v250_v27, 16  ;;  %v1308_v35 = vmax.f32 %v1305_v55, 1e-30 }
 0x258   :  { %v1261_v26 = vmul.f32 0.5, %v1260_v24  ;;  %v256_v24 = vld [vmem:[%s2719_s0 + $0x738] sm:$0xff] }
 0x259   :  { %1486 = vlog2.f32 %v1308_v35 }
 0x25a   :  { %772 = vxpose.xlu0.b32.cont [12/16] (narrow) %v276_v3, 16  ;;  %v1262_v29 = vsub.f32 1.5, %v1261_v26 }
 0x25b   :  { %703 = vxpose.xlu1.b32.cont [7/16] (narrow) %v239_v2, 16 }
 0x25c   :  { %v1263_v56 = vmul.f32 %v1483_v19, %v1262_v29  ;;  %v222_v29 = vld [vmem:[%s2719_s0 + $0x628] sm:$0xff] }
 0x25e   :  { %v1264_v32 = vmul.f32 %v1263_v56, %v1256_v38  ;;  %v257_v56 = vld [vmem:[%s2719_s0 + $0x740] sm:$0xff] }
 0x25f   :  { %731 = vxpose.xlu2.b32.cont [3/16] (narrow) %v251_v41, 16  ;;  %v1487_v46 = vpop.eup %1486 }
 0x260   :  { %v1266_v36 = vsel %vm1265_vm12, %v1256_v38, %v1264_v32  ;;  %v1311_v50 = vmul.f32 0.6931472, %v1487_v46 }
 0x261   :  { %v1269_v40 = vsel %vm1267_vm13, %v1268_v33, %v1266_v36 }
 0x262   :  { %773 = vxpose.xlu0.b32.cont [13/16] (narrow) %v277_v10, 16  ;;  %v1282_v42 = vmul.f32 0.15277778, %v1269_v40  ;;  %v1314_v58 = vsub.f32 %v1305_v55, %v1311_v50  ;;  %v242_v10 = vld [vmem:[%s2719_s0 + $0x6c8] sm:$0xff] }
 0x263   :  { %704 = vxpose.xlu1.b32.cont [8/16] (narrow) %v240_v53, 16 }
 0x264   :  { %v1284_v43 = vadd.f32 -0.33333334, %v1282_v42  ;;  %v1316_v20 = vsel %vm1294_vm11, %v1314_v58, %v1305_v55  ;;  %v245_v55 = vld [vmem:[%s2719_s0 + $0x6e0] sm:$0xff]  ;;  %v258_v42 = vld [vmem:[%s2719_s0 + $0x748] sm:$0xff]  ;;  %v259_v58 = vld [vmem:[%s2719_s0 + $0x750] sm:$0xff] }
 0x266   :  { %v1286_v45 = vmul.f32 %v1284_v43, %v1269_v40  ;;  %v246_v43 = vld [vmem:[%s2719_s0 + $0x6e8] sm:$0xff] }
 0x267   :  { %732 = vxpose.xlu2.b32.cont [4/16] (narrow) %v252_v52, 16  ;;  %v224_v52 = vld [vmem:[%s2719_s0 + $0x638] sm:$0xff] }
 0x268   :  { %v1288_v47 = vadd.f32 1.0, %v1286_v45 }
 0x26a   :  { %774 = vxpose.xlu0.b32.cont [14/16] (narrow) %v278_v15, 16  ;;  %v1290_v54 = vmul.f32 %v1288_v47, %v1269_v40  ;;  %v220_v15 = vld [vmem:[%s2719_s0 + $0x618] sm:$0xff] }
 0x26b   :  { %705 = vxpose.xlu1.b32.cont [9/16] (narrow) %v241_v62, 16 }
 0x26c   :  { %v1292_v14 = vadd.f32 -1.0, %v1290_v54 }
 0x26e   :  { %v1320_v59 = vsel %vm1318_vm14, %v1292_v14, %v1316_v20  ;;  %v247_v14 = vld [vmem:[%s2719_s0 + $0x6f0] sm:$0xff]  ;;  %v225_v20 = vld [vmem:[%s2719_s0 + $0x640] sm:$0xff] }
 0x26f   :  { %v1322_v60 = vmul.f32 1.442695, %v1320_v59  ;;  %733 = vxpose.xlu2.b32.cont [5/16] (narrow) %v253_v61, 16  ;;  %v1330_v0 = vadd.f32 1.0, %v1320_v59  ;;  %v1348_v37 = vadd.f32 2.0, %v1320_v59  ;;  %v248_v61 = vld [vmem:[%s2719_s0 + $0x6f8] sm:$0xff] }
 0x271   :  { %1488 = vpow2.f32 %v1322_v60  ;;  %v1332_v1 = vand.u32 2147483647, %v1330_v0  ;;  %v260_v60 = vld [vmem:[%s2719_s0 + $0x758] sm:$0xff] }
 0x272   :  { %775 = vxpose.xlu0.b32.cont [15/16] (narrow) %v279_v25, 16  ;;  %v244_v25 = vld [vmem:[%s2719_s0 + $0x6d8] sm:$0xff] }
 0x273   :  { %vm2428_vm15 = vcmp.lt.f32.partialorder %v1332_v1, 1e-06  ;;  %706 = vxpose.xlu1.b32.cont [10/16] (narrow) %v242_v10, 16  ;;  %v262_v10 = vld [vmem:[%s2719_s0 + $0x768] sm:$0xff] }
 0x274   :  { %v1336_v48 = vsel %vm2428_vm15, 1.0, %v1330_v0 }
 0x275   :  { %v1338_v21 = vmul.f32 2.0, %v1336_v48 }
 0x277   :  { %v1489_v39 = vpop.eup %1488  ;;  %734 = vxpose.xlu2.b32.cont [6/16] (narrow) %v254_v9, 16 }
 0x278   :  { %v1326_v3 = vmul.f32 %v1489_v39, %v1320_v59  ;;  %v1342_v6 = vmul.f32 2.0, %v1489_v39  ;;  %v226_v39 = vld [vmem:[%s2719_s0 + $0x648] sm:$0xff] }
 0x27a   :  { %776 = vxpose.xlu0.b32.end [16/16] (narrow) %v280_v34, 16  ;;  %v1328_v11 = vsub.f32 %v1326_v3, %v2360_v51  ;;  %v1344_v12 = vmul.f32 %v1342_v6, %v1336_v48  ;;  %v223_v34 = vld [vmem:[%s2719_s0 + $0x630] sm:$0xff]  ;;  %v261_v3 = vld [vmem:[%s2719_s0 + $0x760] sm:$0xff]  ;;  %v12_v6 = vlaneseq }
 0x27b   :  { %707 = vxpose.xlu1.b32.cont [11/16] (narrow) %v243_v18, 16 }
 0x27c   :  { %v1346_v5 = vmul.f32 %v1344_v12, %v1336_v48  ;;  %v1350_v13 = vmul.f32 %v1348_v37, %v1328_v11  ;;  %v1340_v23 = vmul.f32 %v1338_v21, %v1328_v11  ;;  %v227_v37 = vld [vmem:[%s2719_s0 + $0x650] sm:$0xff]  ;;  %v2515_v9 = vshrl.u32 %v12_v6, 7  ;;  %v229_v21 = vld [vmem:[%s2719_s0 + $0x660] sm:$0xff] }
 0x27d   :  { %v2521_v12 = vand.u32 127, %v12_v6 }
 0x27e   :  { %v1352_v38 = vsub.f32 %v1346_v5, %v1350_v13  ;;  %v15_v11 = vmul.u32 128, %v2515_v9 }
 0x27f   :  { %735 = vxpose.xlu2.b32.cont [7/16] (narrow) %v255_v17, 16  ;;  %v228_v17 = vld [vmem:[%s2719_s0 + $0x658] sm:$0xff] }
 0x280   :  { %v1354_v16 = vand.u32 2147483647, %v1352_v38 }
 0x282   :  { %665 = vxpose.xlu0.b32.start [1/16] (narrow) %v217_v7, 16  ;;  %vm1356_vm1 = vcmp.lt.f32.partialorder %v1354_v16, 1e-30 }
 0x283   :  { %v1358_v19 = vsel %vm1356_vm1, 1e-30, %v1352_v38  ;;  %708 = vxpose.xlu1.b32.cont [12/16] (narrow) %v244_v25, 16  ;;  %v19_v38 = vadd.s32 %v2521_v12, %v15_v11  ;;  %v585_v25 = vpop.trf.xlu0 }
 0x284   :  { %1490 = vrcp.f32 %v1358_v19  ;;  %v263_v19 = vld [vmem:[%s2719_s0 + $0x770] sm:$0xff] }
 0x285   :  { %vm1427_vm4 = vcmp.lt.s32.totalorder %v19_v38, 8 }
 0x287   :  { %736 = vxpose.xlu2.b32.cont [8/16] (narrow) %v256_v24, 16  ;;  %v553_v24 = vpop.trf.xlu2 }
 0x28a   :  { %666 = vxpose.xlu0.b32.cont [2/16] (narrow) %v218_v31, 16  ;;  %v1491_v63 = vpop.eup %1490 }
 0x28b   :  { %v1362_v26 = vmul.f32 %v1491_v63, %v1340_v23  ;;  %709 = vxpose.xlu1.b32.cont [13/16] (narrow) %v245_v55, 16  ;;  %v231_v23 = vld [vmem:[%s2719_s0 + $0x670] sm:$0xff]  ;;  %v232_v63 = vld [vmem:[%s2719_s0 + $0x678] sm:$0xff] }
 0x28d   :  { %v1364_v27 = vsel %vm2428_vm15, 0.0, %v1362_v26 }
 0x28e   :  { %v1366_v28 = vsub.f32 %v1320_v59, %v1364_v27  ;;  %v617_v27 = vpop.trf.xlu1 }
 0x28f   :  { %737 = vxpose.xlu2.b32.cont [9/16] (narrow) %v257_v56, 16  ;;  %v2546_v26 = vpop.trf.xlu2 }
 0x290   :  { %v1368_v30 = vmul.f32 1.442695, %v1366_v28  ;;  %v1376_v32 = vadd.f32 1.0, %v1366_v28  ;;  %v1394_v45 = vadd.f32 2.0, %v1366_v28 }
 0x292   :  { %667 = vxpose.xlu0.b32.cont [3/16] (narrow) %v219_v44, 16  ;;  %1492 = vpow2.f32 %v1368_v30  ;;  %v1378_v33 = vand.u32 2147483647, %v1376_v32 }
 0x293   :  { %710 = vxpose.xlu1.b32.cont [14/16] (narrow) %v246_v43, 16 }
 0x294   :  { %vm2473_vm2 = vcmp.lt.f32.partialorder %v1378_v33, 1e-06  ;;  %v906_v33 = vrot.slane %v617_v27, 4 }
 0x295   :  { %v1382_v41 = vsel %vm2473_vm2, 1.0, %v1376_v32 }
 0x296   :  { %v1384_v59 = vmul.f32 2.0, %v1382_v41  ;;  %v618_v56 = vpop.trf.xlu1 }
 0x297   :  { %738 = vxpose.xlu2.b32.cont [10/16] (narrow) %v258_v42, 16  ;;  %v908_v42 = vrot.slane %v553_v24, 4 }
 0x298   :  { %v1493_v35 = vpop.eup %1492 }
 0x299   :  { %v1372_v40 = vmul.f32 %v1493_v35, %v1366_v28  ;;  %v1388_v2 = vmul.f32 2.0, %v1493_v35  ;;  %v920_v35 = vrot.slane %v585_v25, 4 }
 0x29a   :  { %668 = vxpose.xlu0.b32.cont [4/16] (narrow) %v220_v15, 16 }
 0x29b   :  { %v1374_v46 = vsub.f32 %v1372_v40, %v2360_v51  ;;  %v1390_v7 = vmul.f32 %v1388_v2, %v1382_v41  ;;  %711 = vxpose.xlu1.b32.cont [15/16] (narrow) %v247_v14, 16 }
 0x29d   :  { %v1392_v47 = vmul.f32 %v1390_v7, %v1382_v41  ;;  %v1396_v50 = vmul.f32 %v1394_v45, %v1374_v46  ;;  %v1386_v31 = vmul.f32 %v1384_v59, %v1374_v46  ;;  %v907_v41 = vsel %vm794_vm0, %v906_v33, %v553_v24 }
 0x29e   :  { %v913_v46 = vperm.slane %v907_v41, %v2087_v49 }
 0x29f   :  { %v1398_v53 = vsub.f32 %v1392_v47, %v1396_v50  ;;  %739 = vxpose.xlu2.b32.cont [11/16] (narrow) %v259_v58, 16 }
 0x2a1   :  { %v1400_v54 = vand.u32 2147483647, %v1398_v53 }
 0x2a2   :  { %669 = vxpose.xlu0.b32.cont [5/16] (narrow) %v221_v22, 16  ;;  %v230_v22 = vld [vmem:[%s2719_s0 + $0x668] sm:$0xff] }
 0x2a3   :  { %vm1402_vm3 = vcmp.lt.f32.partialorder %v1400_v54, 1e-30  ;;  %712 = vxpose.xlu1.b32.end [16/16] (narrow) %v248_v61, 16 }
 0x2a4   :  { %v1404_v51 = vsel %vm1402_vm3, 1e-30, %v1398_v53 }
 0x2a5   :  { %1494 = vrcp.f32 %v1404_v51  ;;  %v956_v51 = vrot.slane %v913_v46, 4 }
 0x2a7   :  { %740 = vxpose.xlu2.b32.cont [12/16] (narrow) %v260_v60, 16 }
 0x2aa   :  { %670 = vxpose.xlu0.b32.cont [6/16] (narrow) %v222_v29, 16  ;;  %v649_v29 = vpop.trf.xlu2 }
 0x2ab   :  { %v1495_v62 = vpop.eup %1494  ;;  %v918_v55 = vrot.slane %v649_v29, 4  ;;  %v921_v7 = vsel %vm794_vm0, %v649_v29, %v920_v35 }
 0x2ac   :  { %v1408_v0 = vmul.f32 %v1495_v62, %v1386_v31  ;;  %v929_v54 = vperm.slane %v921_v7, %v2087_v49 }
 0x2ae   :  { %v1410_v1 = vsel %vm2473_vm2, 0.0, %v1408_v0  ;;  %v966_v62 = vrot.slane %v929_v54, 4 }
 0x2af   :  { %v1412_v44 = vsub.f32 %v1366_v28, %v1410_v1  ;;  %741 = vxpose.xlu2.b32.cont [13/16] (narrow) %v261_v3, 16  ;;  %v586_v28 = vpop.trf.xlu0 }
 0x2b1   :  { %v1414_v57 = vsub.f32 0.0, %v1412_v44 }
 0x2b2   :  { %671 = vxpose.xlu0.b32.cont [7/16] (narrow) %v223_v34, 16  ;;  %v650_v32 = vpop.trf.xlu2  ;;  %v919_v34 = vsel %vm794_vm0, %v918_v55, %v585_v25 }
 0x2b3   :  { %v1416_v48 = vmul.f32 1.442695, %v1414_v57  ;;  %v1422_v13 = vmul.f32 %v1414_v57, %v1414_v57  ;;  %v925_v43 = vperm.slane %v919_v34, %v2087_v49  ;;  %v1064_v0 = vrot.slane %v650_v32, 4 }
 0x2b5   :  { %1496 = vpow2.f32 %v1416_v48  ;;  %v954_v53 = vrot.slane %v925_v43, 4  ;;  %v957_v44 = vsel %vm794_vm0, %v925_v43, %v956_v51 }
 0x2b7   :  { %742 = vxpose.xlu2.b32.cont [14/16] (narrow) %v262_v10, 16  ;;  %v777_v30 = vpop.trf.xlu0  ;;  %v955_v31 = vsel %vm794_vm0, %v954_v53, %v913_v46  ;;  %v1058_v10 = vrot.slane %v618_v56, 4 }
 0x2b8   :  { %v942_v2 = vrot.slane %v777_v30, 4 }
 0x2b9   :  { %v1059_v56 = vsel %vm794_vm0, %v1058_v10, %v2546_v26 }
 0x2ba   :  { %672 = vxpose.xlu0.b32.cont [8/16] (narrow) %v224_v52, 16  ;;  %v909_v52 = vsel %vm794_vm0, %v617_v27, %v908_v42  ;;  %v1063_v7 = vperm.slane %v1059_v56, %v2087_v49 }
 0x2bb   :  { %v1497_v5 = vpop.eup %1496  ;;  %v917_v59 = vperm.slane %v909_v52, %v2087_v49 }
 0x2bc   :  { %v1420_v15 = vmul.f32 %v1497_v5, %v2351_v4  ;;  %v264_v4 = vld [vmem:[%s2719_s0 + $0x778] sm:$0xff] }
 0x2bd   :  { %v968_v6 = vrot.slane %v917_v59, 4 }
 0x2be   :  { %v1424_v16 = vadd.f32 %v1422_v13, %v1420_v15 }
 0x2bf   :  { %743 = vxpose.xlu2.b32.cont [15/16] (narrow) %v263_v19, 16  ;;  %v778_v40 = vpop.trf.xlu0  ;;  %v1065_v19 = vsel %vm794_vm0, %v1064_v0, %v586_v28  ;;  %v969_v41 = vsel %vm794_vm0, %v929_v54, %v968_v6 }
 0x2c0   :  { %v1429_v18 = vsel %vm1427_vm4, %v1424_v16, 0.0  ;;  %v1076_v3 = vrot.slane %v778_v40, 4  ;;  %v1069_v28 = vperm.slane %v1065_v19, %v2087_v49 }
 0x2c1   :  { %1433 = vst [vmem:[#allocation2] sm:$0xff] %v1429_v18  ;;  %v967_v18 = vsel %vm794_vm0, %v966_v62, %v917_v59 }
 0x2c2   :  { %673 = vxpose.xlu0.b32.cont [9/16] (narrow) %v225_v20, 16 }
 0x2c7   :  { %744 = vxpose.xlu2.b32.end [16/16] (narrow) %v264_v4, 16 }
 0x2ca   :  { %674 = vxpose.xlu0.b32.cont [10/16] (narrow) %v226_v39, 16 }
 0x2cf   :  { %v713_v36 = vpop.trf.xlu1 }
 0x2d0   :  { %v944_v45 = vrot.slane %v713_v36, 4  ;;  %v943_v50 = vsel %vm794_vm0, %v942_v2, %v713_v36  ;;  %v973_v2 = vperm.slane %v967_v18, %v2116_v8 }
 0x2d1   :  { %v949_v20 = vperm.slane %v943_v50, %v2087_v49 }
 0x2d2   :  { %675 = vxpose.xlu0.b32.cont [11/16] (narrow) %v227_v37, 16  ;;  %v945_v58 = vsel %vm794_vm0, %v777_v30, %v944_v45  ;;  %v961_v37 = vperm.slane %v955_v31, %v2116_v8 }
 0x2d3   :  { %v953_v60 = vperm.slane %v945_v58, %v2087_v49  ;;  %v978_v57 = vrot.slane %v949_v20, 4 }
 0x2d4   :  { %v1004_v25 = vrot.slane %v961_v37, 4 }
 0x2d5   :  { %v990_v13 = vrot.slane %v953_v60, 4 }
 0x2d7   :  { %v714_v11 = vpop.trf.xlu1 }
 0x2da   :  { %676 = vxpose.xlu0.b32.cont [12/16] (narrow) %v228_v17, 16  ;;  %v965_v17 = vperm.slane %v957_v44, %v2116_v8 }
 0x2dc   :  { %v1008_v42 = vrot.slane %v965_v17, 4 }
 0x2e2   :  { %677 = vxpose.xlu0.b32.cont [13/16] (narrow) %v229_v21, 16 }
 0x2e8   :  { %v745_v47 = vpop.trf.xlu2 }
 0x2e9   :  { %v930_v14 = vrot.slane %v745_v47, 4 }
 0x2ea   :  { %678 = vxpose.xlu0.b32.cont [14/16] (narrow) %v230_v22, 16  ;;  %v1077_v22 = vsel %vm794_vm0, %v1076_v3, %v714_v11 }
 0x2eb   :  { %v1081_v33 = vperm.slane %v1077_v22, %v2087_v49 }
 0x2ed   :  { %v1088_v53 = vrot.slane %v1081_v33, 4 }
 0x2f0   :  { %v746_v4 = vpop.trf.xlu2 }
 0x2f1   :  { %v1070_v32 = vrot.slane %v746_v4, 4 }
 0x2f2   :  { %679 = vxpose.xlu0.b32.cont [15/16] (narrow) %v231_v23, 16 }
 0x2fa   :  { %680 = vxpose.xlu0.b32.end [16/16] (narrow) %v232_v63, 16 }
 0x326   :  { %v681_v61 = vpop.trf.xlu0 }
 0x327   :  { %v931_v1 = vsel %vm794_vm0, %v930_v14, %v681_v61  ;;  %v932_v39 = vrot.slane %v681_v61, 4  ;;  %v977_v14 = vperm.slane %v969_v41, %v2116_v8 }
 0x328   :  { %v937_v48 = vperm.slane %v931_v1, %v2087_v49 }
 0x329   :  { %v933_v5 = vsel %vm794_vm0, %v745_v47, %v932_v39  ;;  %v1082_v47 = vrot.slane %v1069_v28, 4  ;;  %v1016_v39 = vrot.slane %v977_v14, 4 }
 0x32a   :  { %v941_v38 = vperm.slane %v933_v5, %v2087_v49  ;;  %v979_v15 = vsel %vm794_vm0, %v978_v57, %v937_v48  ;;  %v980_v16 = vrot.slane %v937_v48, 4 }
 0x32b   :  { %v985_v21 = vperm.slane %v979_v15, %v2116_v8  ;;  %v1083_v61 = vsel %vm794_vm0, %v1082_v47, %v1063_v7 }
 0x32c   :  { %v981_v23 = vsel %vm794_vm0, %v949_v20, %v980_v16  ;;  %v991_v63 = vsel %vm794_vm0, %v990_v13, %v941_v38  ;;  %v992_v24 = vrot.slane %v941_v38, 4  ;;  %v1012_v20 = vrot.slane %v973_v2, 4 }
 0x32d   :  { %v989_v27 = vperm.slane %v981_v23, %v2116_v8  ;;  %v997_v29 = vperm.slane %v991_v63, %v2116_v8  ;;  %v1002_v30 = vrot.slane %v985_v21, 4  ;;  %v2586_v35 = vsel %vm794_vm0, %v985_v21, %v1004_v25  ;;  %v2650_v63 = vld [vmem:[%s2720_s1 + $0x8] sm:$0xff]  ;;  %s1564_s1 = smov [#allocation2]  }
 0x32e   :  { %v993_v55 = vsel %vm794_vm0, %v953_v60, %v992_v24  ;;  %v682_v40 = vpop.trf.xlu0  ;;  %v1087_v44 = vperm.slane %v1083_v61, %v2116_v8  ;;  %vm1137_vm5 = vcmp.eq.s32.totalorder %v2650_v63, 1  ;;  %vm1149_vm6 = vcmp.eq.s32.totalorder %v2650_v63, 2  ;;  %s1439_s20 = sshll.u32 %s1564_s1, 4  ;;  %s1440_s20 = int_to_ptr.vmem [resolvable:$true] %s1439_s20 }
 0x32f   :  { %v2583_v34 = vsel %vm794_vm0, %v1002_v30, %v961_v37  ;;  %v1006_v36 = vrot.slane %v989_v27, 4  ;;  %v1001_v43 = vperm.slane %v993_v55, %v2116_v8  ;;  %v1010_v46 = vrot.slane %v997_v29, 4 }
 0x330   :  { %v1099_v26 = vmax.f32 %v2583_v34, %v2586_v35  ;;  %v1071_v52 = vsel %vm794_vm0, %v1070_v32, %v682_v40  ;;  %v2600_v54 = vsel %vm794_vm0, %v989_v27, %v1008_v42  ;;  %v2613_v1 = vsel %vm794_vm0, %v997_v29, %v1012_v20 }
 0x331   :  { %v2594_v45 = vsel %vm794_vm0, %v1006_v36, %v965_v17  ;;  %v1075_v58 = vperm.slane %v1071_v52, %v2087_v49  ;;  %v2606_v59 = vsel %vm794_vm0, %v1010_v46, %v973_v2  ;;  %v1014_v31 = vrot.slane %v1001_v43, 4 }
 0x332   :  { %v1101_v50 = vmax.f32 %v1099_v26, %v2594_v45  ;;  %v2622_v6 = vsel %vm794_vm0, %v1001_v43, %v1016_v39  ;;  %v1096_v10 = vrot.slane %v1087_v44, 4  ;;  %vm1161_vm7 = vcmp.eq.s32.totalorder %v2650_v63, 3 }
 0x333   :  { %v1089_v60 = vsel %vm794_vm0, %v1088_v53, %v1075_v58  ;;  %v2618_v57 = vsel %vm794_vm0, %v1014_v31, %v977_v14  ;;  %vm1173_vm8 = vcmp.eq.s32.totalorder %v2650_v63, 4  ;;  %vm1185_vm9 = vcmp.eq.s32.totalorder %v2650_v63, 5 }
 0x334   :  { %v1103_v51 = vmax.f32 %v1101_v50, %v2600_v54  ;;  %v1093_v0 = vperm.slane %v1089_v60, %v2116_v8  ;;  %vm1197_vm10 = vcmp.eq.s32.totalorder %v2650_v63, 6  ;;  %vm1209_vm11 = vcmp.eq.s32.totalorder %v2650_v63, 7 }
 0x335   :  { %vm1221_vm12 = vcmp.eq.s32.totalorder %v2650_v63, 8  ;;  %vm1233_vm13 = vcmp.eq.s32.totalorder %v2650_v63, 9 }
 0x336   :  { %v1105_v62 = vmax.f32 %v1103_v51, %v2606_v59  ;;  %v1094_v3 = vrot.slane %v1093_v0, 4  ;;  %v2630_v13 = vsel %vm794_vm0, %v1093_v0, %v1096_v10 }
 0x338   :  { %v1107_v49 = vmax.f32 %v1105_v62, %v2613_v1  ;;  %v2626_v11 = vsel %vm794_vm0, %v1094_v3, %v1087_v44  ;;  %vm1125_vm0 = vcmp.eq.s32.totalorder %v2650_v63, 0 }
 0x339   :  { %v1127_v36 = vsel %vm1125_vm0, %v2583_v34, 0.0 }
 0x33a   :  { %v1109_v48 = vmax.f32 %v1107_v49, %v2618_v57  ;;  %v1139_v43 = vsel %vm1137_vm5, %v2586_v35, %v1127_v36 }
 0x33c   :  { %v1111_v37 = vmax.f32 %v1109_v48, %v2622_v6 }
 0x33e   :  { %v1113_v5 = vmax.f32 %v1111_v37, %v2626_v11 }
 0x340   :  { %v2633_v8 = vmax.f32 %v1113_v5, %v2630_v13 }
 0x342   :  { %v1117_v38 = vsub.f32 %v2583_v34, %v2633_v8  ;;  %v1129_v15 = vsub.f32 %v2586_v35, %v2633_v8  ;;  %v1141_v16 = vsub.f32 %v2594_v45, %v2633_v8  ;;  %v1153_v17 = vsub.f32 %v2600_v54, %v2633_v8 }
 0x343   :  { %v1165_v4 = vsub.f32 %v2606_v59, %v2633_v8  ;;  %v1177_v23 = vsub.f32 %v2613_v1, %v2633_v8  ;;  %v1189_v25 = vsub.f32 %v2618_v57, %v2633_v8  ;;  %v1201_v29 = vsub.f32 %v2622_v6, %v2633_v8 }
 0x344   :  { %v1120_v18 = vmul.f32 1.442695, %v1117_v38  ;;  %v1132_v19 = vmul.f32 1.442695, %v1129_v15  ;;  %v1144_v21 = vmul.f32 1.442695, %v1141_v16  ;;  %v1213_v55 = vsub.f32 %v2626_v11, %v2633_v8 }
 0x345   :  { %v1156_v22 = vmul.f32 1.442695, %v1153_v17  ;;  %v1168_v24 = vmul.f32 1.442695, %v1165_v4  ;;  %v1180_v27 = vmul.f32 1.442695, %v1177_v23  ;;  %v1225_v41 = vsub.f32 %v2630_v13, %v2633_v8 }
 0x346   :  { %1498 = vpow2.f32 %v1120_v18  ;;  %v1192_v28 = vmul.f32 1.442695, %v1189_v25  ;;  %v1204_v40 = vmul.f32 1.442695, %v1201_v29  ;;  %v1216_v42 = vmul.f32 1.442695, %v1213_v55 }
 0x347   :  { %1500 = vpow2.f32 %v1132_v19  ;;  %v1228_v47 = vmul.f32 1.442695, %v1225_v41  ;;  %v1151_v34 = vsel %vm1149_vm6, %v2594_v45, %v1139_v43 }
 0x348   :  { %1502 = vpow2.f32 %v1144_v21  ;;  %v1163_v14 = vsel %vm1161_vm7, %v2600_v54, %v1151_v34 }
 0x349   :  { %1504 = vpow2.f32 %v1156_v22  ;;  %v1175_v60 = vsel %vm1173_vm8, %v2606_v59, %v1163_v14 }
 0x34a   :  { %1506 = vpow2.f32 %v1168_v24  ;;  %v1187_v62 = vsel %vm1185_vm9, %v2613_v1, %v1175_v60 }
 0x34b   :  { %1508 = vpow2.f32 %v1180_v27  ;;  %v1199_v54 = vsel %vm1197_vm10, %v2618_v57, %v1187_v62 }
 0x34c   :  { %v1499_v30 = vpop.eup %1498  ;;  %1510 = vpow2.f32 %v1192_v28  ;;  %v1211_v49 = vsel %vm1209_vm11, %v2622_v6, %v1199_v54 }
 0x34d   :  { %v1501_v56 = vpop.eup %1500  ;;  %1512 = vpow2.f32 %v1204_v40  ;;  %v1223_v59 = vsel %vm1221_vm12, %v2626_v11, %v1211_v49 }
 0x34e   :  { %v1135_v32 = vadd.f32 %v1501_v56, %v1499_v30  ;;  %v1503_v33 = vpop.eup %1502  ;;  %1514 = vpow2.f32 %v1216_v42  ;;  %v1235_v3 = vsel %vm1233_vm13, %v2630_v13, %v1223_v59 }
 0x34f   :  { %v1505_v26 = vpop.eup %1504  ;;  %1516 = vpow2.f32 %v1228_v47 }
 0x350   :  { %v1147_v2 = vadd.f32 %v1503_v33, %v1135_v32  ;;  %v1507_v7 = vpop.eup %1506 }
 0x351   :  { %v1509_v52 = vpop.eup %1508 }
 0x352   :  { %v1159_v46 = vadd.f32 %v1505_v26, %v1147_v2  ;;  %v1511_v58 = vpop.eup %1510 }
 0x353   :  { %v1513_v51 = vpop.eup %1512 }
 0x354   :  { %v1171_v50 = vadd.f32 %v1507_v7, %v1159_v46  ;;  %v1515_v31 = vpop.eup %1514 }
 0x355   :  { %v1517_v45 = vpop.eup %1516 }
 0x356   :  { %v1183_v53 = vadd.f32 %v1509_v52, %v1171_v50 }
 0x358   :  { %v1195_v35 = vadd.f32 %v1511_v58, %v1183_v53 }
 0x35a   :  { %v1207_v20 = vadd.f32 %v1513_v51, %v1195_v35 }
 0x35c   :  { %v1219_v61 = vadd.f32 %v1515_v31, %v1207_v20 }
 0x35e   :  { %v1231_v0 = vadd.f32 %v1517_v45, %v1219_v61 }
 0x360   :  { %1518 = vlog2.f32 %v1231_v0 }
 0x366   :  { %v1519_v39 = vpop.eup %1518 }
 0x367   :  { %v1239_v44 = vmul.f32 0.6931472, %v1519_v39 }
 0x369   :  { %v1241_v1 = vadd.f32 %v1239_v44, %v2633_v8 }
 0x36b   :  { %v1243_v48 = vsub.f32 %v1241_v1, %v1235_v3 }
 0x36d   :  { %v2681_v37 = vadd.f32 -2.3025851, %v1243_v48 }
 0x36f   :  { %v1247_v57 = vmax.f32 %v2681_v37, -0.7357589 }
 0x371   :  { %v2684_v10 = vmul.f32 0.5, %v1247_v57 }
 0x373   :  { %v1251_v6 = vmul.f32 2.7182817, %v2684_v10  ;;  %v1299_v5 = vmax.f32 %v2684_v10, -0.999  ;;  %v1297_v11 = vmax.f32 %v2684_v10, 1e-30 }
 0x374   :  { %vm1295_vm14 = vcmp.ge.f32.partialorder %v2684_v10, 3.0  ;;  %vm1319_vm2 = vcmp.lt.f32.partialorder %v2684_v10, -0.25 }
 0x375   :  { %v1253_v38 = vadd.f32 1.0, %v1251_v6  ;;  %v1301_v15 = vadd.f32 1.0, %v1299_v5 }
 0x377   :  { %v1255_v8 = vmul.f32 2.0, %v1253_v38  ;;  %v1303_v13 = vsel %vm1295_vm14, %v1297_v11, %v1301_v15 }
 0x378   :  { %1520 = vlog2.f32 %v1303_v13 }
 0x379   :  { %v1257_v16 = vmax.f32 %v1255_v8, 0.0 }
 0x37b   :  { %1522 = vrsqrt.f32 %v1257_v16  ;;  %vm1277_vm15 = vcmp.eq.f32.partialorder %v1257_v16, inf  ;;  %v1280_v27 = vand.u32 2147483648, %v1257_v16  ;;  %vm1279_vm1 = vcmp.eq.f32.partialorder %v1257_v16, 0.0 }
 0x37e   :  { %v1521_v17 = vpop.eup %1520 }
 0x37f   :  { %v1307_v21 = vmul.f32 0.6931472, %v1521_v17 }
 0x381   :  { %v1523_v18 = vpop.eup %1522  ;;  %v1309_v23 = vmax.f32 %v1307_v21, 1e-30 }
 0x382   :  { %v1271_v19 = vmul.f32 %v1523_v18, %v1257_v16 }
 0x383   :  { %1524 = vlog2.f32 %v1309_v23 }
 0x384   :  { %v1272_v4 = vmul.f32 %v1523_v18, %v1271_v19 }
 0x386   :  { %v1273_v22 = vmul.f32 0.5, %v1272_v4 }
 0x388   :  { %v1274_v63 = vsub.f32 1.5, %v1273_v22 }
 0x389   :  { %v1525_v56 = vpop.eup %1524 }
 0x38a   :  { %v1275_v24 = vmul.f32 %v1523_v18, %v1274_v63  ;;  %v1313_v32 = vmul.f32 0.6931472, %v1525_v56 }
 0x38c   :  { %v1276_v25 = vmul.f32 %v1275_v24, %v1257_v16  ;;  %v1315_v40 = vsub.f32 %v1307_v21, %v1313_v32  ;;  %v14_v24 = vadd.s32 8, %v2515_v9 }
 0x38e   :  { %v1278_v29 = vsel %vm1277_vm15, %v1257_v16, %v1276_v25  ;;  %v1317_v26 = vsel %vm1295_vm14, %v1315_v40, %v1307_v21 }
 0x38f   :  { %v1281_v30 = vsel %vm1279_vm1, %v1280_v27, %v1278_v29  ;;  %v16_v27 = vmul.u32 128, %v14_v24 }
 0x390   :  { %v1283_v28 = vmul.f32 0.15277778, %v1281_v30 }
 0x391   :  { %v20_v29 = vadd.s32 %v2521_v12, %v16_v27 }
 0x392   :  { %v1285_v55 = vadd.f32 -0.33333334, %v1283_v28 }
 0x393   :  { %vm1428_vm6 = vcmp.lt.s32.totalorder %v20_v29, 8 }
 0x394   :  { %v1287_v33 = vmul.f32 %v1285_v55, %v1281_v30 }
 0x396   :  { %v1289_v36 = vadd.f32 1.0, %v1287_v33 }
 0x398   :  { %v1291_v41 = vmul.f32 %v1289_v36, %v1281_v30 }
 0x39a   :  { %v1293_v2 = vadd.f32 -1.0, %v1291_v41 }
 0x39c   :  { %v1321_v42 = vsel %vm1319_vm2, %v1293_v2, %v1317_v26 }
 0x39d   :  { %v1324_v43 = vmul.f32 1.442695, %v1321_v42  ;;  %v1331_v46 = vadd.f32 1.0, %v1321_v42  ;;  %v1349_v35 = vadd.f32 2.0, %v1321_v42 }
 0x39f   :  { %1526 = vpow2.f32 %v1324_v43  ;;  %v1333_v7 = vand.u32 2147483647, %v1331_v46 }
 0x3a1   :  { %vm2695_vm3 = vcmp.lt.f32.partialorder %v1333_v7, 1e-06 }
 0x3a2   :  { %v1337_v53 = vsel %vm2695_vm3, 1.0, %v1331_v46 }
 0x3a3   :  { %v1339_v45 = vmul.f32 2.0, %v1337_v53 }
 0x3a5   :  { %v1527_v50 = vpop.eup %1526 }
 0x3a6   :  { %v1327_v52 = vmul.f32 %v1527_v50, %v1321_v42  ;;  %v1343_v34 = vmul.f32 2.0, %v1527_v50 }
 0x3a8   :  { %v1329_v58 = vsub.f32 %v1327_v52, %v2684_v10  ;;  %v1345_v14 = vmul.f32 %v1343_v34, %v1337_v53 }
 0x3aa   :  { %v1347_v51 = vmul.f32 %v1345_v14, %v1337_v53  ;;  %v1351_v20 = vmul.f32 %v1349_v35, %v1329_v58  ;;  %v1341_v62 = vmul.f32 %v1339_v45, %v1329_v58 }
 0x3ac   :  { %v1353_v31 = vsub.f32 %v1347_v51, %v1351_v20 }
 0x3ae   :  { %v1355_v60 = vand.u32 2147483647, %v1353_v31 }
 0x3b0   :  { %vm1357_vm4 = vcmp.lt.f32.partialorder %v1355_v60, 1e-30 }
 0x3b1   :  { %v1359_v61 = vsel %vm1357_vm4, 1e-30, %v1353_v31 }
 0x3b2   :  { %1528 = vrcp.f32 %v1359_v61 }
 0x3b8   :  { %v1529_v0 = vpop.eup %1528 }
 0x3b9   :  { %v1363_v54 = vmul.f32 %v1529_v0, %v1341_v62 }
 0x3bb   :  { %v1365_v49 = vsel %vm2695_vm3, 0.0, %v1363_v54 }
 0x3bc   :  { %v1367_v39 = vsub.f32 %v1321_v42, %v1365_v49 }
 0x3be   :  { %v1370_v59 = vmul.f32 1.442695, %v1367_v39  ;;  %v1377_v44 = vadd.f32 1.0, %v1367_v39  ;;  %v1395_v15 = vadd.f32 2.0, %v1367_v39 }
 0x3c0   :  { %1530 = vpow2.f32 %v1370_v59  ;;  %v1379_v1 = vand.u32 2147483647, %v1377_v44 }
 0x3c2   :  { %vm2704_vm0 = vcmp.lt.f32.partialorder %v1379_v1, 1e-06 }
 0x3c3   :  { %v1383_v5 = vsel %vm2704_vm0, 1.0, %v1377_v44 }
 0x3c4   :  { %v1385_v19 = vmul.f32 2.0, %v1383_v5 }
 0x3c6   :  { %v1531_v48 = vpop.eup %1530 }
 0x3c7   :  { %v1373_v57 = vmul.f32 %v1531_v48, %v1367_v39  ;;  %v1389_v6 = vmul.f32 2.0, %v1531_v48 }
 0x3c9   :  { %v1375_v38 = vsub.f32 %v1373_v57, %v2684_v10  ;;  %v1391_v11 = vmul.f32 %v1389_v6, %v1383_v5 }
 0x3cb   :  { %v1393_v8 = vmul.f32 %v1391_v11, %v1383_v5  ;;  %v1397_v13 = vmul.f32 %v1395_v15, %v1375_v38  ;;  %v1387_v21 = vmul.f32 %v1385_v19, %v1375_v38 }
 0x3cd   :  { %v1399_v16 = vsub.f32 %v1393_v8, %v1397_v13 }
 0x3cf   :  { %v1401_v17 = vand.u32 2147483647, %v1399_v16 }
 0x3d1   :  { %vm1403_vm5 = vcmp.lt.f32.partialorder %v1401_v17, 1e-30 }
 0x3d2   :  { %v1405_v18 = vsel %vm1403_vm5, 1e-30, %v1399_v16 }
 0x3d3   :  { %1532 = vrcp.f32 %v1405_v18 }
 0x3d9   :  { %v1533_v4 = vpop.eup %1532 }
 0x3da   :  { %v1409_v22 = vmul.f32 %v1533_v4, %v1387_v21 }
 0x3dc   :  { %v1411_v23 = vsel %vm2704_vm0, 0.0, %v1409_v22 }
 0x3dd   :  { %v1413_v63 = vsub.f32 %v1367_v39, %v1411_v23 }
 0x3df   :  { %v1415_v10 = vsub.f32 0.0, %v1413_v63 }
 0x3e1   :  { %v1418_v25 = vmul.f32 1.442695, %v1415_v10  ;;  %v1423_v28 = vmul.f32 %v1415_v10, %v1415_v10 }
 0x3e3   :  { %1534 = vpow2.f32 %v1418_v25 }
 0x3e9   :  { %v1535_v30 = vpop.eup %1534 }
 0x3ea   :  { %v1421_v56 = vmul.f32 %v1535_v30, %v2681_v37 }
 0x3ec   :  { %v1425_v55 = vadd.f32 %v1423_v28, %v1421_v56 }
 0x3ee   :  { %v1430_v9 = vsel %vm1428_vm6, %v1425_v55, 0.0 }
 0x3ef   :  { %1434 = vst [vmem:[#allocation2 + $0x8] sm:$0xff] %v1430_v9 }
 0x3f0   :  { %1447 = dma.vmem_to_hbm [thread:$0]  %s1440_s20, 256, %s1442_s23, [#allocation3], %s1565_s24, %s1565_s24, %s1566_s25  }
 0x3f1   :  { %1560 = dma.done.wait [#allocation3], 256  }
 0x3f2   :  { %1561 = vsyncadd [#allocation3], 4294967040 }
 0x3f3   :  { %1452 = vsyncpa [#allocation3], 1 }

// kernel: tpu_custom_call.1
= control target key start
LH: loop header
LB: loop body
LE: loop exit
PB: predicated region body
PF: predicated region fallthrough
CT: control target
= control target key end

     0   :  { %7 = vsyncpa [#allocation3], 0  ;;  %s870_s0 = inlined_call_operand.hbm [shape: f32[10,16,128], index: 0, kind: input, shape index: {}]   ;;  %s871_s1 = inlined_call_operand.hbm [shape: s32[16,128], index: 1, kind: input, shape index: {}]   ;;  %s872_s2 = inlined_call_operand.hbm [shape: f32[1,16,128], index: 2, kind: output, shape index: {}]  }
   0x1   :  { %8 = vsyncpa [#allocation6], 0 }
   0x2   :  { %9 = vsyncpa [#allocation4], 0  ;;  %s14_s11 = sshll.u32 %s870_s0, 4  ;;  %s622_s12 = smov [#allocation2]   ;;  %s15_s11 = int_to_ptr.hbm [resolvable:$true] %s14_s11 }
   0x3   :  { %s16_s13 = sshll.u32 %s622_s12, 4  ;;  %s27_s16 = sshll.u32 %s871_s1, 4  ;;  %s17_s13 = int_to_ptr.vmem [resolvable:$true] %s16_s13  ;;  %s28_s16 = int_to_ptr.hbm [resolvable:$true] %s27_s16 }
   0x4   :  { %s623_s17 = smov 128   ;;  %s624_s18 = smov 8  }
   0x5   :  { %22 = dma.hbm_to_vmem [thread:$0]  %s15_s11, 2560, %s17_s13, [#allocation3], %s623_s17, %s623_s17, %s624_s18  }
   0x6   :  { %s625_s19 = smov [#allocation5]  }
   0x7   :  { %s29_s20 = sshll.u32 %s625_s19, 4  ;;  %s30_s20 = int_to_ptr.vmem [resolvable:$true] %s29_s20 }
   0x8   :  { %35 = dma.hbm_to_vmem [thread:$0]  %s28_s16, 256, %s30_s20, [#allocation6], %s623_s17, %s623_s17, %s624_s18  }
   0x9   :  { %616 = dma.done.wait [#allocation3], 2560  }
   0xa   :  { %617 = vsyncadd [#allocation3], 4294964736 }
   0xb   :  { %618 = dma.done.wait [#allocation6], 256  }
   0xc   :  { %619 = vsyncadd [#allocation6], 4294967040  ;;  %v57_v0 = vld [vmem:[#allocation2] sm:$0xff]  ;;  %v58_v1 = vld [vmem:[#allocation2 + $0x8] sm:$0xff]  ;;  %s626_s0 = smov [#allocation7]   ;;  %s438_s23 = sshll.u32 %s872_s2, 4  ;;  %s439_s23 = int_to_ptr.hbm [resolvable:$true] %s438_s23 }
   0xd   :  { %v654_v2 = vld [vmem:[#allocation2 + $0x10] sm:$0xff]  ;;  %v656_v3 = vld [vmem:[#allocation2 + $0x18] sm:$0xff]  ;;  %v660_v6 = vld [vmem:[#allocation2 + $0x20] sm:$0xff]  ;;  %s436_s1 = sshll.u32 %s626_s0, 4  ;;  %s437_s1 = int_to_ptr.vmem [resolvable:$true] %s436_s1 }
   0xe   :  { %v63_v4 = vmax.f32 %v57_v0, %v654_v2  ;;  %v64_v5 = vmax.f32 %v58_v1, %v656_v3  ;;  %v662_v7 = vld [vmem:[#allocation2 + $0x28] sm:$0xff]  ;;  %v664_v8 = vld [vmem:[#allocation2 + $0x30] sm:$0xff]  ;;  %v666_v9 = vld [vmem:[#allocation2 + $0x38] sm:$0xff] }
   0xf   :  { %v670_v12 = vld [vmem:[#allocation2 + $0x40] sm:$0xff]  ;;  %v672_v13 = vld [vmem:[#allocation2 + $0x48] sm:$0xff]  ;;  %v676_v16 = vld [vmem:[#allocation2 + $0x50] sm:$0xff] }
  0x10   :  { %v69_v10 = vmax.f32 %v63_v4, %v660_v6  ;;  %v70_v11 = vmax.f32 %v64_v5, %v662_v7  ;;  %v678_v17 = vld [vmem:[#allocation2 + $0x58] sm:$0xff]  ;;  %v682_v20 = vld [vmem:[#allocation2 + $0x60] sm:$0xff]  ;;  %v684_v21 = vld [vmem:[#allocation2 + $0x68] sm:$0xff] }
  0x11   :  { %v688_v24 = vld [vmem:[#allocation2 + $0x70] sm:$0xff]  ;;  %v690_v25 = vld [vmem:[#allocation2 + $0x78] sm:$0xff]  ;;  %v694_v28 = vld [vmem:[#allocation2 + $0x80] sm:$0xff] }
  0x12   :  { %v75_v14 = vmax.f32 %v69_v10, %v664_v8  ;;  %v76_v15 = vmax.f32 %v70_v11, %v666_v9  ;;  %v696_v29 = vld [vmem:[#allocation2 + $0x88] sm:$0xff]  ;;  %v700_v32 = vld [vmem:[#allocation2 + $0x90] sm:$0xff]  ;;  %v702_v33 = vld [vmem:[#allocation2 + $0x98] sm:$0xff] }
  0x13   :  { %v706_v36 = vld [vmem:[#allocation5] sm:$0xff]  ;;  %v708_v37 = vld [vmem:[#allocation5 + $0x8] sm:$0xff] }
  0x14   :  { %v81_v18 = vmax.f32 %v75_v14, %v670_v12  ;;  %v82_v19 = vmax.f32 %v76_v15, %v672_v13  ;;  %vm121_vm0 = vcmp.eq.s32.totalorder %v706_v36, 0  ;;  %vm122_vm1 = vcmp.eq.s32.totalorder %v708_v37, 0 }
  0x15   :  { %v123_v52 = vsel %vm121_vm0, %v57_v0, 0.0  ;;  %v124_v55 = vsel %vm122_vm1, %v58_v1, 0.0  ;;  %vm133_vm2 = vcmp.eq.s32.totalorder %v706_v36, 1  ;;  %vm134_vm3 = vcmp.eq.s32.totalorder %v708_v37, 1 }
  0x16   :  { %v87_v22 = vmax.f32 %v81_v18, %v676_v16  ;;  %v88_v23 = vmax.f32 %v82_v19, %v678_v17  ;;  %v136_v10 = vsel %vm134_vm3, %v656_v3, %v124_v55  ;;  %vm145_vm4 = vcmp.eq.s32.totalorder %v706_v36, 2 }
  0x17   :  { %vm146_vm5 = vcmp.eq.s32.totalorder %v708_v37, 2  ;;  %vm157_vm6 = vcmp.eq.s32.totalorder %v706_v36, 3  ;;  %vm158_vm7 = vcmp.eq.s32.totalorder %v708_v37, 3  ;;  %vm169_vm8 = vcmp.eq.s32.totalorder %v706_v36, 4 }
  0x18   :  { %v93_v26 = vmax.f32 %v87_v22, %v682_v20  ;;  %v94_v27 = vmax.f32 %v88_v23, %v684_v21  ;;  %vm170_vm9 = vcmp.eq.s32.totalorder %v708_v37, 4  ;;  %vm181_vm10 = vcmp.eq.s32.totalorder %v706_v36, 5 }
  0x19   :  { %vm182_vm11 = vcmp.eq.s32.totalorder %v708_v37, 5  ;;  %vm193_vm12 = vcmp.eq.s32.totalorder %v706_v36, 6  ;;  %vm194_vm13 = vcmp.eq.s32.totalorder %v708_v37, 6  ;;  %vm205_vm14 = vcmp.eq.s32.totalorder %v706_v36, 7 }
  0x1a   :  { %v99_v30 = vmax.f32 %v93_v26, %v688_v24  ;;  %v100_v31 = vmax.f32 %v94_v27, %v690_v25  ;;  %vm206_vm15 = vcmp.eq.s32.totalorder %v708_v37, 7  ;;  %vm217_vm0 = vcmp.eq.s32.totalorder %v706_v36, 8 }
  0x1b   :  { %vm218_vm1 = vcmp.eq.s32.totalorder %v708_v37, 8  ;;  %vm230_vm3 = vcmp.eq.s32.totalorder %v708_v37, 9 }
  0x1c   :  { %v105_v34 = vmax.f32 %v99_v30, %v694_v28  ;;  %v106_v35 = vmax.f32 %v100_v31, %v696_v29 }
  0x1e   :  { %v711_v38 = vmax.f32 %v105_v34, %v700_v32  ;;  %v714_v39 = vmax.f32 %v106_v35, %v702_v33 }
  0x20   :  { %v113_v40 = vsub.f32 %v57_v0, %v711_v38  ;;  %v114_v41 = vsub.f32 %v58_v1, %v714_v39  ;;  %v125_v42 = vsub.f32 %v654_v2, %v711_v38  ;;  %v126_v43 = vsub.f32 %v656_v3, %v714_v39 }
  0x21   :  { %v137_v44 = vsub.f32 %v660_v6, %v711_v38  ;;  %v138_v45 = vsub.f32 %v662_v7, %v714_v39  ;;  %v149_v49 = vsub.f32 %v664_v8, %v711_v38  ;;  %v150_v51 = vsub.f32 %v666_v9, %v714_v39 }
  0x22   :  { %v115_v46 = vmul.f32 1.442695, %v113_v40  ;;  %v117_v47 = vmul.f32 1.442695, %v114_v41  ;;  %v127_v48 = vmul.f32 1.442695, %v125_v42  ;;  %v161_v54 = vsub.f32 %v670_v12, %v711_v38 }
  0x23   :  { %v129_v50 = vmul.f32 1.442695, %v126_v43  ;;  %v139_v53 = vmul.f32 1.442695, %v137_v44  ;;  %v141_v56 = vmul.f32 1.442695, %v138_v45  ;;  %v162_v57 = vsub.f32 %v672_v13, %v714_v39 }
  0x24   :  { %468 = vpow2.f32 %v115_v46  ;;  %v151_v58 = vmul.f32 1.442695, %v149_v49  ;;  %v173_v59 = vsub.f32 %v676_v16, %v711_v38  ;;  %v153_v60 = vmul.f32 1.442695, %v150_v51 }
  0x25   :  { %470 = vpow2.f32 %v117_v47  ;;  %v174_v61 = vsub.f32 %v678_v17, %v714_v39  ;;  %v163_v62 = vmul.f32 1.442695, %v161_v54  ;;  %v185_v63 = vsub.f32 %v682_v20, %v711_v38 }
  0x26   :  { %472 = vpow2.f32 %v127_v48  ;;  %v135_v0 = vsel %vm133_vm2, %v654_v2, %v123_v52  ;;  %v165_v1 = vmul.f32 1.442695, %v162_v57  ;;  %v186_v4 = vsub.f32 %v684_v21, %v714_v39 }
  0x27   :  { %474 = vpow2.f32 %v129_v50  ;;  %v175_v11 = vmul.f32 1.442695, %v173_v59  ;;  %v197_v14 = vsub.f32 %v688_v24, %v711_v38  ;;  %v177_v18 = vmul.f32 1.442695, %v174_v61 }
  0x28   :  { %476 = vpow2.f32 %v139_v53  ;;  %v198_v2 = vsub.f32 %v690_v25, %v714_v39  ;;  %v187_v22 = vmul.f32 1.442695, %v185_v63  ;;  %v209_v3 = vsub.f32 %v694_v28, %v711_v38 }
  0x29   :  { %478 = vpow2.f32 %v141_v56  ;;  %v189_v27 = vmul.f32 1.442695, %v186_v4  ;;  %v210_v30 = vsub.f32 %v696_v29, %v714_v39  ;;  %v199_v35 = vmul.f32 1.442695, %v197_v14 }
  0x2a   :  { %v469_v5 = vpop.eup %468  ;;  %480 = vpow2.f32 %v151_v58  ;;  %v221_v40 = vsub.f32 %v700_v32, %v711_v38  ;;  %v201_v43 = vmul.f32 1.442695, %v198_v2  ;;  %v222_v44 = vsub.f32 %v702_v33, %v714_v39 }
  0x2b   :  { %v471_v15 = vpop.eup %470  ;;  %482 = vpow2.f32 %v153_v60  ;;  %v147_v47 = vsel %vm145_vm4, %v660_v6, %v135_v0  ;;  %v211_v48 = vmul.f32 1.442695, %v209_v3  ;;  %v148_v50 = vsel %vm146_vm5, %v662_v7, %v136_v10 }
  0x2c   :  { %v473_v19 = vpop.eup %472  ;;  %484 = vpow2.f32 %v163_v62  ;;  %v213_v52 = vmul.f32 1.442695, %v210_v30  ;;  %v223_v55 = vmul.f32 1.442695, %v221_v40  ;;  %v225_v57 = vmul.f32 1.442695, %v222_v44 }
  0x2d   :  { %v475_v23 = vpop.eup %474  ;;  %v131_v26 = vadd.f32 %v473_v19, %v469_v5  ;;  %486 = vpow2.f32 %v165_v1  ;;  %v159_v7 = vsel %vm157_vm6, %v664_v8, %v147_v47  ;;  %v160_v63 = vsel %vm158_vm7, %v666_v9, %v148_v50 }
  0x2e   :  { %v477_v31 = vpop.eup %476  ;;  %v132_v34 = vadd.f32 %v475_v23, %v471_v15  ;;  %488 = vpow2.f32 %v175_v11  ;;  %v171_v10 = vsel %vm169_vm8, %v670_v12, %v159_v7  ;;  %v172_v14 = vsel %vm170_vm9, %v672_v13, %v160_v63 }
  0x2f   :  { %v479_v41 = vpop.eup %478  ;;  %v143_v42 = vadd.f32 %v477_v31, %v131_v26  ;;  %490 = vpow2.f32 %v177_v18  ;;  %v183_v19 = vsel %vm181_vm10, %v676_v16, %v171_v10  ;;  %v184_v12 = vsel %vm182_vm11, %v678_v17, %v172_v14 }
  0x30   :  { %v481_v45 = vpop.eup %480  ;;  %v144_v46 = vadd.f32 %v479_v41, %v132_v34  ;;  %492 = vpow2.f32 %v187_v22  ;;  %v195_v13 = vsel %vm193_vm12, %v682_v20, %v183_v19  ;;  %v196_v31 = vsel %vm194_vm13, %v684_v21, %v184_v12 }
  0x31   :  { %v483_v49 = vpop.eup %482  ;;  %v155_v51 = vadd.f32 %v481_v45, %v143_v42  ;;  %494 = vpow2.f32 %v189_v27  ;;  %v207_v16 = vsel %vm205_vm14, %v688_v24, %v195_v13  ;;  %v208_v17 = vsel %vm206_vm15, %v690_v25, %v196_v31 }
  0x32   :  { %v485_v53 = vpop.eup %484  ;;  %v156_v54 = vadd.f32 %v483_v49, %v144_v46  ;;  %496 = vpow2.f32 %v199_v35  ;;  %v219_v34 = vsel %vm217_vm0, %v694_v28, %v207_v16  ;;  %vm229_vm2 = vcmp.eq.s32.totalorder %v706_v36, 9 }
  0x33   :  { %v487_v56 = vpop.eup %486  ;;  %v167_v6 = vadd.f32 %v485_v53, %v155_v51  ;;  %498 = vpow2.f32 %v201_v43  ;;  %v220_v35 = vsel %vm218_vm1, %v696_v29, %v208_v17  ;;  %v231_v41 = vsel %vm229_vm2, %v700_v32, %v219_v34 }
  0x34   :  { %v489_v58 = vpop.eup %488  ;;  %v168_v59 = vadd.f32 %v487_v56, %v156_v54  ;;  %500 = vpow2.f32 %v211_v48  ;;  %v232_v42 = vsel %vm230_vm3, %v702_v33, %v220_v35 }
  0x35   :  { %v491_v60 = vpop.eup %490  ;;  %v179_v61 = vadd.f32 %v489_v58, %v167_v6  ;;  %502 = vpow2.f32 %v213_v52 }
  0x36   :  { %v493_v62 = vpop.eup %492  ;;  %v180_v0 = vadd.f32 %v491_v60, %v168_v59  ;;  %504 = vpow2.f32 %v223_v55 }
  0x37   :  { %v495_v1 = vpop.eup %494  ;;  %v191_v4 = vadd.f32 %v493_v62, %v179_v61  ;;  %506 = vpow2.f32 %v225_v57 }
  0x38   :  { %v497_v5 = vpop.eup %496  ;;  %v192_v8 = vadd.f32 %v495_v1, %v180_v0 }
  0x39   :  { %v499_v11 = vpop.eup %498  ;;  %v203_v15 = vadd.f32 %v497_v5, %v191_v4 }
  0x3a   :  { %v501_v9 = vpop.eup %500  ;;  %v204_v18 = vadd.f32 %v499_v11, %v192_v8 }
  0x3b   :  { %v503_v2 = vpop.eup %502  ;;  %v215_v22 = vadd.f32 %v501_v9, %v203_v15 }
  0x3c   :  { %v505_v3 = vpop.eup %504  ;;  %v216_v23 = vadd.f32 %v503_v2, %v204_v18 }
  0x3d   :  { %v507_v26 = vpop.eup %506  ;;  %v227_v27 = vadd.f32 %v505_v3, %v215_v22 }
  0x3e   :  { %v228_v30 = vadd.f32 %v507_v26, %v216_v23 }
  0x3f   :  { %508 = vlog2.f32 %v227_v27 }
  0x40   :  { %510 = vlog2.f32 %v228_v30 }
  0x45   :  { %v509_v20 = vpop.eup %508 }
  0x46   :  { %v511_v21 = vpop.eup %510  ;;  %v234_v40 = vmul.f32 0.6931472, %v509_v20 }
  0x47   :  { %v236_v24 = vmul.f32 0.6931472, %v511_v21 }
  0x48   :  { %v237_v25 = vadd.f32 %v234_v40, %v711_v38 }
  0x49   :  { %v238_v43 = vadd.f32 %v236_v24, %v714_v39 }
  0x4a   :  { %v239_v44 = vsub.f32 %v237_v25, %v231_v41 }
  0x4b   :  { %v240_v28 = vsub.f32 %v238_v43, %v232_v42 }
  0x4c   :  { %v798_v45 = vadd.f32 -2.3025851, %v239_v44 }
  0x4d   :  { %v800_v36 = vadd.f32 -2.3025851, %v240_v28 }
  0x4e   :  { %v243_v29 = vmax.f32 %v798_v45, -0.7357589 }
  0x4f   :  { %v244_v37 = vmax.f32 %v800_v36, -0.7357589 }
  0x50   :  { %v804_v46 = vmul.f32 0.5, %v243_v29 }
  0x51   :  { %v806_v32 = vmul.f32 0.5, %v244_v37 }
  0x52   :  { %v247_v33 = vmul.f32 2.7182817, %v804_v46  ;;  %v293_v39 = vmax.f32 %v804_v46, 1e-30  ;;  %v295_v48 = vmax.f32 %v804_v46, -0.999 }
  0x53   :  { %v248_v38 = vmul.f32 2.7182817, %v806_v32  ;;  %v296_v49 = vmax.f32 %v806_v32, -0.999  ;;  %vm291_vm4 = vcmp.ge.f32.partialorder %v804_v46, 3.0  ;;  %vm292_vm5 = vcmp.ge.f32.partialorder %v806_v32, 3.0 }
  0x54   :  { %v249_v47 = vadd.f32 1.0, %v247_v33  ;;  %v294_v51 = vmax.f32 %v806_v32, 1e-30  ;;  %v297_v53 = vadd.f32 1.0, %v295_v48  ;;  %vm315_vm10 = vcmp.lt.f32.partialorder %v804_v46, -0.25 }
  0x55   :  { %v250_v50 = vadd.f32 1.0, %v248_v38  ;;  %v298_v54 = vadd.f32 1.0, %v296_v49  ;;  %vm316_vm11 = vcmp.lt.f32.partialorder %v806_v32, -0.25 }
  0x56   :  { %v251_v52 = vmul.f32 2.0, %v249_v47  ;;  %v299_v6 = vsel %vm291_vm4, %v293_v39, %v297_v53 }
  0x57   :  { %v252_v55 = vmul.f32 2.0, %v250_v50  ;;  %v300_v58 = vsel %vm292_vm5, %v294_v51, %v298_v54  ;;  %512 = vlog2.f32 %v299_v6 }
  0x58   :  { %v253_v56 = vmax.f32 %v251_v52, 0.0 }
  0x59   :  { %v254_v57 = vmax.f32 %v252_v55, 0.0 }
  0x5a   :  { %514 = vrsqrt.f32 %v253_v56  ;;  %vm262_vm6 = vcmp.eq.f32.partialorder %v253_v56, inf  ;;  %v265_v2 = vand.u32 2147483648, %v253_v56  ;;  %vm264_vm7 = vcmp.eq.f32.partialorder %v253_v56, 0.0 }
  0x5b   :  { %516 = vrsqrt.f32 %v254_v57  ;;  %vm274_vm8 = vcmp.eq.f32.partialorder %v254_v57, inf  ;;  %v277_v3 = vand.u32 2147483648, %v254_v57  ;;  %vm276_vm9 = vcmp.eq.f32.partialorder %v254_v57, 0.0 }
  0x5c   :  { %518 = vlog2.f32 %v300_v58 }
  0x5d   :  { %v513_v59 = vpop.eup %512 }
  0x5e   :  { %v302_v7 = vmul.f32 0.6931472, %v513_v59 }
  0x60   :  { %v515_v60 = vpop.eup %514  ;;  %v305_v5 = vmax.f32 %v302_v7, 1e-30 }
  0x61   :  { %v517_v61 = vpop.eup %516  ;;  %v256_v62 = vmul.f32 %v515_v60, %v253_v56 }
  0x62   :  { %v519_v63 = vpop.eup %518  ;;  %v268_v0 = vmul.f32 %v517_v61, %v254_v57  ;;  %520 = vlog2.f32 %v305_v5 }
  0x63   :  { %v257_v1 = vmul.f32 %v515_v60, %v256_v62  ;;  %v304_v4 = vmul.f32 0.6931472, %v519_v63 }
  0x64   :  { %v269_v10 = vmul.f32 %v517_v61, %v268_v0 }
  0x65   :  { %v258_v8 = vmul.f32 0.5, %v257_v1  ;;  %v306_v11 = vmax.f32 %v304_v4, 1e-30 }
  0x66   :  { %v270_v14 = vmul.f32 0.5, %v269_v10 }
  0x67   :  { %v259_v15 = vsub.f32 1.5, %v258_v8  ;;  %522 = vlog2.f32 %v306_v11 }
  0x68   :  { %v271_v9 = vsub.f32 1.5, %v270_v14  ;;  %v521_v23 = vpop.eup %520 }
  0x69   :  { %v260_v18 = vmul.f32 %v515_v60, %v259_v15  ;;  %v308_v34 = vmul.f32 0.6931472, %v521_v23 }
  0x6a   :  { %v272_v19 = vmul.f32 %v517_v61, %v271_v9 }
  0x6b   :  { %v261_v22 = vmul.f32 %v260_v18, %v253_v56  ;;  %v311_v24 = vsub.f32 %v302_v7, %v308_v34 }
  0x6c   :  { %v273_v12 = vmul.f32 %v272_v19, %v254_v57 }
  0x6d   :  { %v263_v26 = vsel %vm262_vm6, %v253_v56, %v261_v22  ;;  %v523_v27 = vpop.eup %522  ;;  %v313_v29 = vsel %vm291_vm4, %v311_v24, %v302_v7 }
  0x6e   :  { %v266_v13 = vsel %vm264_vm7, %v265_v2, %v263_v26  ;;  %v275_v30 = vsel %vm274_vm8, %v254_v57, %v273_v12  ;;  %v310_v35 = vmul.f32 0.6931472, %v523_v27 }
  0x6f   :  { %v278_v31 = vsel %vm276_vm9, %v277_v3, %v275_v30  ;;  %v279_v16 = vmul.f32 0.15277778, %v266_v13 }
  0x70   :  { %v280_v17 = vmul.f32 0.15277778, %v278_v31  ;;  %v312_v25 = vsub.f32 %v304_v4, %v310_v35 }
  0x71   :  { %v281_v20 = vadd.f32 -0.33333334, %v279_v16 }
  0x72   :  { %v282_v21 = vadd.f32 -0.33333334, %v280_v17  ;;  %v314_v33 = vsel %vm292_vm5, %v312_v25, %v304_v4 }
  0x73   :  { %v283_v40 = vmul.f32 %v281_v20, %v266_v13 }
  0x74   :  { %v284_v41 = vmul.f32 %v282_v21, %v278_v31 }
  0x75   :  { %v285_v42 = vadd.f32 1.0, %v283_v40 }
  0x76   :  { %v286_v43 = vadd.f32 1.0, %v284_v41 }
  0x77   :  { %v287_v44 = vmul.f32 %v285_v42, %v266_v13 }
  0x78   :  { %v288_v28 = vmul.f32 %v286_v43, %v278_v31 }
  0x79   :  { %v289_v37 = vadd.f32 -1.0, %v287_v44 }
  0x7a   :  { %v290_v38 = vadd.f32 -1.0, %v288_v28 }
  0x7b   :  { %v317_v39 = vsel %vm315_vm10, %v289_v37, %v313_v29 }
  0x7c   :  { %v318_v47 = vsel %vm316_vm11, %v290_v38, %v314_v33  ;;  %v319_v48 = vmul.f32 1.442695, %v317_v39  ;;  %v327_v49 = vadd.f32 1.0, %v317_v39  ;;  %v345_v7 = vadd.f32 2.0, %v317_v39 }
  0x7d   :  { %v321_v50 = vmul.f32 1.442695, %v318_v47  ;;  %v328_v51 = vadd.f32 1.0, %v318_v47  ;;  %v346_v63 = vadd.f32 2.0, %v318_v47 }
  0x7e   :  { %524 = vpow2.f32 %v319_v48  ;;  %v329_v52 = vand.u32 2147483647, %v327_v49 }
  0x7f   :  { %526 = vpow2.f32 %v321_v50  ;;  %v330_v53 = vand.u32 2147483647, %v328_v51 }
  0x80   :  { %vm826_vm12 = vcmp.lt.f32.partialorder %v329_v52, 1e-06 }
  0x81   :  { %vm830_vm13 = vcmp.lt.f32.partialorder %v330_v53, 1e-06  ;;  %v333_v6 = vsel %vm826_vm12, 1.0, %v327_v49 }
  0x82   :  { %v334_v59 = vsel %vm830_vm13, 1.0, %v328_v51  ;;  %v335_v19 = vmul.f32 2.0, %v333_v6 }
  0x83   :  { %v336_v3 = vmul.f32 2.0, %v334_v59 }
  0x84   :  { %v525_v56 = vpop.eup %524 }
  0x85   :  { %v527_v57 = vpop.eup %526  ;;  %v323_v58 = vmul.f32 %v525_v56, %v317_v39  ;;  %v339_v60 = vmul.f32 2.0, %v525_v56 }
  0x86   :  { %v324_v61 = vmul.f32 %v527_v57, %v318_v47  ;;  %v340_v62 = vmul.f32 2.0, %v527_v57 }
  0x87   :  { %v325_v0 = vsub.f32 %v323_v58, %v804_v46  ;;  %v341_v1 = vmul.f32 %v339_v60, %v333_v6 }
  0x88   :  { %v326_v4 = vsub.f32 %v324_v61, %v806_v32  ;;  %v342_v5 = vmul.f32 %v340_v62, %v334_v59 }
  0x89   :  { %v343_v10 = vmul.f32 %v341_v1, %v333_v6  ;;  %v347_v8 = vmul.f32 %v345_v7, %v325_v0  ;;  %v337_v23 = vmul.f32 %v335_v19, %v325_v0 }
  0x8a   :  { %v344_v11 = vmul.f32 %v342_v5, %v334_v59  ;;  %v348_v14 = vmul.f32 %v346_v63, %v326_v4  ;;  %v338_v26 = vmul.f32 %v336_v3, %v326_v4 }
  0x8b   :  { %v349_v15 = vsub.f32 %v343_v10, %v347_v8 }
  0x8c   :  { %v350_v9 = vsub.f32 %v344_v11, %v348_v14 }
  0x8d   :  { %v351_v18 = vand.u32 2147483647, %v349_v15 }
  0x8e   :  { %v352_v2 = vand.u32 2147483647, %v350_v9 }
  0x8f   :  { %vm353_vm14 = vcmp.lt.f32.partialorder %v351_v18, 1e-30 }
  0x90   :  { %vm354_vm15 = vcmp.lt.f32.partialorder %v352_v2, 1e-30  ;;  %v355_v22 = vsel %vm353_vm14, 1e-30, %v349_v15 }
  0x91   :  { %v356_v12 = vsel %vm354_vm15, 1e-30, %v350_v9  ;;  %528 = vrcp.f32 %v355_v22 }
  0x92   :  { %530 = vrcp.f32 %v356_v12 }
  0x97   :  { %v529_v27 = vpop.eup %528 }
  0x98   :  { %v531_v13 = vpop.eup %530  ;;  %v359_v30 = vmul.f32 %v529_v27, %v337_v23 }
  0x99   :  { %v360_v31 = vmul.f32 %v531_v13, %v338_v26 }
  0x9a   :  { %v361_v16 = vsel %vm826_vm12, 0.0, %v359_v30 }
  0x9b   :  { %v362_v17 = vsel %vm830_vm13, 0.0, %v360_v31  ;;  %v363_v34 = vsub.f32 %v317_v39, %v361_v16 }
  0x9c   :  { %v364_v20 = vsub.f32 %v318_v47, %v362_v17 }
  0x9d   :  { %v365_v35 = vmul.f32 1.442695, %v363_v34  ;;  %v373_v21 = vadd.f32 1.0, %v363_v34  ;;  %v391_v39 = vadd.f32 2.0, %v363_v34 }
  0x9e   :  { %v367_v40 = vmul.f32 1.442695, %v364_v20  ;;  %v374_v41 = vadd.f32 1.0, %v364_v20  ;;  %v392_v49 = vadd.f32 2.0, %v364_v20 }
  0x9f   :  { %532 = vpow2.f32 %v365_v35  ;;  %v375_v24 = vand.u32 2147483647, %v373_v21 }
  0xa0   :  { %534 = vpow2.f32 %v367_v40  ;;  %v376_v42 = vand.u32 2147483647, %v374_v41 }
  0xa1   :  { %vm844_vm0 = vcmp.lt.f32.partialorder %v375_v24, 1e-06 }
  0xa2   :  { %vm848_vm1 = vcmp.lt.f32.partialorder %v376_v42, 1e-06  ;;  %v379_v28 = vsel %vm844_vm0, 1.0, %v373_v21 }
  0xa3   :  { %v380_v33 = vsel %vm848_vm1, 1.0, %v374_v41  ;;  %v381_v7 = vmul.f32 2.0, %v379_v28 }
  0xa4   :  { %v382_v62 = vmul.f32 2.0, %v380_v33 }
  0xa5   :  { %v533_v44 = vpop.eup %532 }
  0xa6   :  { %v535_v29 = vpop.eup %534  ;;  %v369_v37 = vmul.f32 %v533_v44, %v363_v34  ;;  %v385_v38 = vmul.f32 2.0, %v533_v44 }
  0xa7   :  { %v370_v47 = vmul.f32 %v535_v29, %v364_v20  ;;  %v386_v48 = vmul.f32 2.0, %v535_v29 }
  0xa8   :  { %v371_v50 = vsub.f32 %v369_v37, %v804_v46  ;;  %v387_v51 = vmul.f32 %v385_v38, %v379_v28 }
  0xa9   :  { %v372_v52 = vsub.f32 %v370_v47, %v806_v32  ;;  %v388_v53 = vmul.f32 %v386_v48, %v380_v33  ;;  %v44_v32 = vlaneseq }
  0xaa   :  { %v389_v54 = vmul.f32 %v387_v51, %v379_v28  ;;  %v393_v55 = vmul.f32 %v391_v39, %v371_v50  ;;  %v383_v46 = vmul.f32 %v381_v7, %v371_v50 }
  0xab   :  { %v390_v56 = vmul.f32 %v388_v53, %v380_v33  ;;  %v394_v6 = vmul.f32 %v392_v49, %v372_v52  ;;  %v384_v0 = vmul.f32 %v382_v62, %v372_v52  ;;  %v45_v8 = vshrl.u32 %v44_v32, 7 }
  0xac   :  { %v395_v57 = vsub.f32 %v389_v54, %v393_v55  ;;  %v50_v23 = vand.u32 127, %v44_v32 }
  0xad   :  { %v396_v58 = vsub.f32 %v390_v56, %v394_v6  ;;  %v46_v2 = vadd.s32 8, %v45_v8  ;;  %v47_v12 = vmul.u32 128, %v45_v8 }
  0xae   :  { %v397_v59 = vand.u32 2147483647, %v395_v57 }
  0xaf   :  { %v398_v60 = vand.u32 2147483647, %v396_v58  ;;  %v48_v26 = vmul.u32 128, %v46_v2  ;;  %v51_v27 = vadd.s32 %v50_v23, %v47_v12 }
  0xb0   :  { %vm399_vm2 = vcmp.lt.f32.partialorder %v397_v59, 1e-30 }
  0xb1   :  { %vm400_vm3 = vcmp.lt.f32.partialorder %v398_v60, 1e-30  ;;  %v401_v61 = vsel %vm399_vm2, 1e-30, %v395_v57  ;;  %v52_v13 = vadd.s32 %v50_v23, %v48_v26  ;;  %vm424_vm4 = vcmp.lt.s32.totalorder %v51_v27, 8 }
  0xb2   :  { %v402_v63 = vsel %vm400_vm3, 1e-30, %v396_v58  ;;  %536 = vrcp.f32 %v401_v61 }
  0xb3   :  { %538 = vrcp.f32 %v402_v63  ;;  %vm425_vm5 = vcmp.lt.s32.totalorder %v52_v13, 8 }
  0xb8   :  { %v537_v1 = vpop.eup %536 }
  0xb9   :  { %v539_v4 = vpop.eup %538  ;;  %v405_v5 = vmul.f32 %v537_v1, %v383_v46 }
  0xba   :  { %v406_v10 = vmul.f32 %v539_v4, %v384_v0 }
  0xbb   :  { %v407_v11 = vsel %vm844_vm0, 0.0, %v405_v5 }
  0xbc   :  { %v408_v14 = vsel %vm848_vm1, 0.0, %v406_v10  ;;  %v409_v15 = vsub.f32 %v363_v34, %v407_v11 }
  0xbd   :  { %v410_v9 = vsub.f32 %v364_v20, %v408_v14 }
  0xbe   :  { %v411_v18 = vsub.f32 0.0, %v409_v15 }
  0xbf   :  { %v412_v19 = vsub.f32 0.0, %v410_v9 }
  0xc0   :  { %v413_v22 = vmul.f32 1.442695, %v411_v18  ;;  %v419_v30 = vmul.f32 %v411_v18, %v411_v18 }
  0xc1   :  { %v415_v3 = vmul.f32 1.442695, %v412_v19  ;;  %v420_v16 = vmul.f32 %v412_v19, %v412_v19 }
  0xc2   :  { %540 = vpow2.f32 %v413_v22 }
  0xc3   :  { %542 = vpow2.f32 %v415_v3 }
  0xc8   :  { %v541_v31 = vpop.eup %540 }
  0xc9   :  { %v543_v17 = vpop.eup %542  ;;  %v417_v35 = vmul.f32 %v541_v31, %v798_v45 }
  0xca   :  { %v418_v34 = vmul.f32 %v543_v17, %v800_v36 }
  0xcb   :  { %v421_v20 = vadd.f32 %v419_v30, %v417_v35 }
  0xcc   :  { %v422_v21 = vadd.f32 %v420_v16, %v418_v34 }
  0xcd   :  { %v426_v40 = vsel %vm424_vm4, %v421_v20, 0.0 }
  0xce   :  { %v427_v41 = vsel %vm425_vm5, %v422_v21, 0.0  ;;  %430 = vst [vmem:[#allocation7] sm:$0xff] %v426_v40 }
  0xcf   :  { %431 = vst [vmem:[#allocation7 + $0x8] sm:$0xff] %v427_v41 }
  0xd0   :  { %444 = dma.vmem_to_hbm [thread:$0]  %s437_s1, 256, %s439_s23, [#allocation4], %s623_s17, %s623_s17, %s624_s18  }
  0xd1   :  { %620 = dma.done.wait [#allocation4], 256  }
  0xd2   :  { %621 = vsyncadd [#allocation4], 4294967040 }
  0xd3   :  { %449 = vsyncpa [#allocation3], 1 }
  0xd4   :  { %450 = vsyncpa [#allocation6], 1 }
  0xd5   :  { %451 = vsyncpa [#allocation4], 1 }

</bundles_post_ra>
